<compile_context>
chip_gen: v7x
topology: tpu7x:2x2x1
jax: 0.10.0
libtpu: 0.0.40
codegen_flags: <defaults>
</compile_context>

<pallas_src>
import jax
import jax.numpy as jnp
from jax.experimental import pallas as pl
from jax.experimental.pallas import tpu as pltpu

EEG_DIM = 768          # already a multiple of 128
H_DIM = 900
Y_DIM = 150            # _netD2.__init__ default
H_PAD = 1024           # 900 -> next multiple of 128
HEAD_OUT = 1 + Y_DIM   # gan (1) + aux (150) fused
HEAD_PAD = 256         # 151 -> next multiple of 128

TB_MAX = 512           # max batch tile (sweepable: 512/1024)
ROW_ALIGN = 16         # bf16 (16,128) sublane packing for the x tile


def _round_up(x, m):
    return ((x + m - 1) // m) * m


def _netd2_kernel(x_ref, w1_ref, b1_ref, wh_ref, bh_ref, out_ref):
    # Shared trunk: h = relu(x @ W1 + b1). x and W1 are bf16; MXU accumulates f32.
    h = jnp.dot(x_ref[...], w1_ref[...], preferred_element_type=jnp.float32)
    h = jnp.maximum(h + b1_ref[...], 0.0)
    # Fused heads: one matmul producing [gan | aux | zero-pad] columns.
    out = jnp.dot(h.astype(jnp.bfloat16), wh_ref[...],
                  preferred_element_type=jnp.float32) + bh_ref[...]
    out_ref[...] = out.astype(out_ref.dtype)


def prepare_params(w1, b1, w_gan, b_gan, w_aux, b_aux):
    """Fuse heads, zero-pad to lane-aligned shapes, cast weights to bf16.

    Weights are (in_features, out_features) (transposed vs. PyTorch
    nn.Linear.weight). Biases may be PyTorch-style (out,) or (1, out).
    """
    b1 = jnp.asarray(b1, jnp.float32).reshape(1, -1)
    b_gan = jnp.asarray(b_gan, jnp.float32).reshape(1, -1)
    b_aux = jnp.asarray(b_aux, jnp.float32).reshape(1, -1)

    w_heads = jnp.concatenate([w_gan, w_aux], axis=1)      # (H_DIM, 1+Y_DIM)
    b_heads = jnp.concatenate([b_gan, b_aux], axis=1)      # (1, 1+Y_DIM)

    w1_p = jnp.zeros((EEG_DIM, H_PAD), jnp.bfloat16)
    w1_p = w1_p.at[:, :H_DIM].set(w1.astype(jnp.bfloat16))
    b1_p = jnp.zeros((1, H_PAD), jnp.float32).at[:, :H_DIM].set(b1)

    wh_p = jnp.zeros((H_PAD, HEAD_PAD), jnp.bfloat16)
    wh_p = wh_p.at[:H_DIM, :HEAD_OUT].set(w_heads.astype(jnp.bfloat16))
    bh_p = jnp.zeros((1, HEAD_PAD), jnp.float32).at[:, :HEAD_OUT].set(b_heads)
    return w1_p, b1_p, wh_p, bh_p


def _choose_tiling(B):
    """Return (TB, B_pad, num_tiles).

    - TB is a multiple of 16 (bf16 sublane packing), capped at TB_MAX.
    - >= 2 tiles once B >= 256 so the "parallel" grid axis feeds both v7x TCs.
    - TB is sized to ceil(B / n), so padding waste is always < one tile.
    """
    B = max(int(B), 1)
    if B < 256:
        TB = _round_up(B, ROW_ALIGN)
        return TB, TB, 1
    n = max(2, pl.cdiv(B, TB_MAX))
    TB = _round_up(pl.cdiv(B, n), ROW_ALIGN)
    return TB, TB * n, n


def _resident_spec(shape, pipeline_mode):
    # Grid-resident operand (constant index_map).
    if pipeline_mode is None:
        return pl.BlockSpec(shape, lambda i: (0, 0))
    return pl.BlockSpec(shape, lambda i: (0, 0), pipeline_mode=pipeline_mode)


def _build_call(TB, nb, B_pad, single_buffer_weights):
    # Constant index_map => weights/biases stay resident across the grid; a
    # second pipeline buffer for them is pure VMEM waste, so request
    # single-buffering when the build supports it.
    wmode = pl.Buffered(1) if single_buffer_weights else None

    flops = 2 * B_pad * (EEG_DIM * H_PAD + H_PAD * HEAD_PAD)
    bytes_accessed = (
        (EEG_DIM * H_PAD + H_PAD * HEAD_PAD) * 2        # bf16 weights
        + (H_PAD + HEAD_PAD) * 4                        # f32 biases
        + B_pad * EEG_DIM * 2                           # bf16 x
        + B_pad * HEAD_PAD * 4)                         # f32 out

    return pl.pallas_call(
        _netd2_kernel,
        out_shape=jax.ShapeDtypeStruct((B_pad, HEAD_PAD), jnp.float32),
        grid=(nb,),
        in_specs=[
            pl.BlockSpec((TB, EEG_DIM), lambda i: (i, 0)),   # x tile (pipelined)
            _resident_spec((EEG_DIM, H_PAD), wmode),         # W1 (resident)
            _resident_spec((1, H_PAD), wmode),               # b1 (resident)
            _resident_spec((H_PAD, HEAD_PAD), wmode),        # fused head W (resident)
            _resident_spec((1, HEAD_PAD), wmode),            # fused head b (resident)
        ],
        out_specs=pl.BlockSpec((TB, HEAD_PAD), lambda i: (i, 0)),
        compiler_params=pltpu.CompilerParams(
            dimension_semantics=("parallel",),  # batch tiles shard across v7x TCs
            vmem_limit_bytes=32 << 20,          # TB=512 working set ~10 MiB
        ),
        cost_estimate=pl.CostEstimate(
            flops=flops, transcendentals=0, bytes_accessed=bytes_accessed),
    )


def netd2_forward(x, w1_p, b1_p, wh_p, bh_p, y_dim=Y_DIM):
    B = x.shape[0]
    if x.dtype != jnp.bfloat16:
        # Ideally the upstream producer emits bf16 directly (saves this extra
        # HBM pass); either way the kernel only streams bf16 rows.
        x = x.astype(jnp.bfloat16)
    TB, B_pad, nb = _choose_tiling(B)
    if B_pad != B:
        x = jnp.pad(x, ((0, B_pad - B), (0, 0)))
    args = (x, w1_p, b1_p, wh_p, bh_p)

    # TODO(synk): tiny-batch (B~8) wall time is weight-DMA + launch latency;
    # hiding it needs a cross-call weight prefetch (P10) or fusion with the
    # producer of x, which cannot be expressed inside this single pallas_call.
    try:
        out = _build_call(TB, nb, B_pad, single_buffer_weights=True)(*args)
    except Exception:
        # pl.Buffered(1) on resident operands is a VMEM micro-opt; fall back to
        # default double-buffering if this JAX/Mosaic build rejects it.
        out = _build_call(TB, nb, B_pad, single_buffer_weights=False)(*args)

    gan = out[:B, 0:1]
    aux = out[:B, 1:1 + y_dim]
    return gan, aux


def init_params(key):
    """PyTorch-style uniform(+-1/sqrt(fan_in)) init; weights (in, out), biases (out,)."""
    ks = jax.random.split(key, 6)

    def lin(kw, kb, fan_in, fan_out):
        bound = 1.0 / jnp.sqrt(fan_in)
        w = jax.random.uniform(kw, (fan_in, fan_out), jnp.float32, -bound, bound)
        b = jax.random.uniform(kb, (fan_out,), jnp.float32, -bound, bound)
        return w, b

    w1, b1 = lin(ks[0], ks[1], EEG_DIM, H_DIM)
    w_gan, b_gan = lin(ks[2], ks[3], H_DIM, 1)
    w_aux, b_aux = lin(ks[4], ks[5], H_DIM, Y_DIM)
    return w1, b1, w_gan, b_gan, w_aux, b_aux


if __name__ == "__main__":
    key = jax.random.PRNGKey(0)
    k_x, k_p = jax.random.split(key)

    w1, b1, wg, bg, wa, ba = init_params(k_p)
    packed = prepare_params(w1, b1, wg, bg, wa, ba)

    # Pure-JAX reference matching the kernel's bf16 weight/activation path.
    def q(a):
        return a.astype(jnp.bfloat16).astype(jnp.float32)

    def reference(x):
        xq = q(x)
        h = jnp.maximum(xq @ q(w1) + b1, 0.0)
        hq = q(h)
        return hq @ q(wg) + bg, hq @ q(wa) + ba

    # B=8 exercises the single-tile small-batch path; B=272 exercises the
    # multi-tile (nb=2, TB=144) path with batch padding.
    for B in (8, 272):
        x = jax.random.normal(jax.random.fold_in(k_x, B), (B, EEG_DIM), jnp.float32)
        gan_out, aux_out = netd2_forward(x, *packed)
        jax.block_until_ready((gan_out, aux_out))

        gan_ref, aux_ref = reference(x)
        assert gan_out.shape == (B, 1) and aux_out.shape == (B, Y_DIM)
        assert jnp.allclose(gan_out, gan_ref, atol=2e-2, rtol=2e-2)
        assert jnp.allclose(aux_out, aux_ref, atol=2e-2, rtol=2e-2)

    print("KERNEL_OK")
</pallas_src>

<mosaic_0001>
module attributes {stable_mosaic.version = 11 : i64} {
  func.func @_netd2_kernel(%arg0: i32, %arg1: memref<16x768xbf16, #tpu.memory_space<vmem>>, %arg2: memref<768x1024xbf16, #tpu.memory_space<vmem>>, %arg3: memref<1x1024xf32, #tpu.memory_space<vmem>>, %arg4: memref<1024x256xbf16, #tpu.memory_space<vmem>>, %arg5: memref<1x256xf32, #tpu.memory_space<vmem>>, %arg6: memref<16x256xf32, #tpu.memory_space<vmem>>) attributes {dimension_semantics = [#tpu.dimension_semantics<parallel>], iteration_bounds = array<i64: 1>, scalar_prefetch = 0 : i64, scratch_operands = 0 : i64, tpu.core_type = #tpu.core_type<tc>, window_params = [{transform_indices = @transform_0, window_bounds = array<i64: 16, 768>}, {pipeline_mode = #tpu.pipeline_mode<synchronous>, transform_indices = @transform_1, window_bounds = array<i64: 768, 1024>}, {pipeline_mode = #tpu.pipeline_mode<synchronous>, transform_indices = @transform_2, window_bounds = array<i64: 1, 1024>}, {pipeline_mode = #tpu.pipeline_mode<synchronous>, transform_indices = @transform_3, window_bounds = array<i64: 1024, 256>}, {pipeline_mode = #tpu.pipeline_mode<synchronous>, transform_indices = @transform_4, window_bounds = array<i64: 1, 256>}, {transform_indices = @transform_5, window_bounds = array<i64: 16, 256>}]} {
    %c0 = arith.constant 0 : index
    %c0_0 = arith.constant 0 : index
    %0 = vector.load %arg1[%c0, %c0_0] : memref<16x768xbf16, #tpu.memory_space<vmem>>, vector<16x768xbf16>
    %c0_1 = arith.constant 0 : index
    %c0_2 = arith.constant 0 : index
    %1 = vector.load %arg2[%c0_1, %c0_2] : memref<768x1024xbf16, #tpu.memory_space<vmem>>, vector<768x1024xbf16>
    %cst = arith.constant dense<0.000000e+00> : vector<16x1024xf32>
    %2 = tpu.matmul %0, %1, %cst {dimension_numbers = #tpu.dot_dimension_numbers<[1], [0], [0], [1], [0, 0, 1, 1], [], []>} : vector<16x768xbf16>, vector<768x1024xbf16>, vector<16x1024xf32> -> vector<16x1024xf32>
    %c0_3 = arith.constant 0 : index
    %c0_4 = arith.constant 0 : index
    %3 = vector.load %arg3[%c0_3, %c0_4] : memref<1x1024xf32, #tpu.memory_space<vmem>>, vector<1x1024xf32>
    %4 = vector.broadcast %3 : vector<1x1024xf32> to vector<16x1024xf32>
    %5 = arith.addf %2, %4 : vector<16x1024xf32>
    %cst_5 = arith.constant 0.000000e+00 : f32
    %6 = vector.broadcast %cst_5 : f32 to vector<16x1024xf32>
    %7 = arith.maximumf %5, %6 : vector<16x1024xf32>
    %8 = arith.truncf %7 : vector<16x1024xf32> to vector<16x1024xbf16>
    %c0_6 = arith.constant 0 : index
    %c0_7 = arith.constant 0 : index
    %9 = vector.load %arg4[%c0_6, %c0_7] : memref<1024x256xbf16, #tpu.memory_space<vmem>>, vector<1024x256xbf16>
    %cst_8 = arith.constant dense<0.000000e+00> : vector<16x256xf32>
    %10 = tpu.matmul %8, %9, %cst_8 {dimension_numbers = #tpu.dot_dimension_numbers<[1], [0], [0], [1], [0, 0, 1, 1], [], []>} : vector<16x1024xbf16>, vector<1024x256xbf16>, vector<16x256xf32> -> vector<16x256xf32>
    %c0_9 = arith.constant 0 : index
    %c0_10 = arith.constant 0 : index
    %11 = vector.load %arg5[%c0_9, %c0_10] : memref<1x256xf32, #tpu.memory_space<vmem>>, vector<1x256xf32>
    %12 = vector.broadcast %11 : vector<1x256xf32> to vector<16x256xf32>
    %13 = arith.addf %10, %12 : vector<16x256xf32>
    %c0_11 = arith.constant 0 : index
    %c0_12 = arith.constant 0 : index
    %14 = vector.load %arg6[%c0_11, %c0_12] : memref<16x256xf32, #tpu.memory_space<vmem>>, vector<16x256xf32>
    tpu.vector_store %arg6[%c0_11, %c0_12], %13 {strides = array<i32>} : memref<16x256xf32, #tpu.memory_space<vmem>>, vector<16x256xf32>,
    return
  }
  func.func @transform_0(%arg0: i32) -> (i32, i32) {
    %c0_i32 = arith.constant 0 : i32
    %c0_i32_0 = arith.constant 0 : i32
    return %arg0, %c0_i32 : i32, i32
  }
  func.func @transform_1(%arg0: i32) -> (i32, i32) {
    %c0_i32 = arith.constant 0 : i32
    %c0_i32_0 = arith.constant 0 : i32
    %c0_i32_1 = arith.constant 0 : i32
    return %c0_i32, %c0_i32_0 : i32, i32
  }
  func.func @transform_2(%arg0: i32) -> (i32, i32) {
    %c0_i32 = arith.constant 0 : i32
    %c0_i32_0 = arith.constant 0 : i32
    %c0_i32_1 = arith.constant 0 : i32
    return %c0_i32, %c0_i32_0 : i32, i32
  }
  func.func @transform_3(%arg0: i32) -> (i32, i32) {
    %c0_i32 = arith.constant 0 : i32
    %c0_i32_0 = arith.constant 0 : i32
    %c0_i32_1 = arith.constant 0 : i32
    return %c0_i32, %c0_i32_0 : i32, i32
  }
  func.func @transform_4(%arg0: i32) -> (i32, i32) {
    %c0_i32 = arith.constant 0 : i32
    %c0_i32_0 = arith.constant 0 : i32
    %c0_i32_1 = arith.constant 0 : i32
    return %c0_i32, %c0_i32_0 : i32, i32
  }
  func.func @transform_5(%arg0: i32) -> (i32, i32) {
    %c0_i32 = arith.constant 0 : i32
    %c0_i32_0 = arith.constant 0 : i32
    return %arg0, %c0_i32 : i32, i32
  }
}

module attributes {stable_mosaic.version = 11 : i64} {
  func.func @_netd2_kernel(%arg0: i32, %arg1: memref<16x768xbf16, #tpu.memory_space<vmem>>, %arg2: memref<768x1024xbf16, #tpu.memory_space<vmem>>, %arg3: memref<1x1024xf32, #tpu.memory_space<vmem>>, %arg4: memref<1024x256xbf16, #tpu.memory_space<vmem>>, %arg5: memref<1x256xf32, #tpu.memory_space<vmem>>, %arg6: memref<16x256xf32, #tpu.memory_space<vmem>>) attributes {dimension_semantics = [#tpu.dimension_semantics<parallel>], iteration_bounds = array<i64: 1>, scalar_prefetch = 0 : i64, scratch_operands = 0 : i64, tpu.core_type = #tpu.core_type<tc>, window_params = [{transform_indices = @transform_0, window_bounds = array<i64: 16, 768>}, {pipeline_mode = #tpu.pipeline_mode<synchronous>, transform_indices = @transform_1, window_bounds = array<i64: 768, 1024>}, {pipeline_mode = #tpu.pipeline_mode<synchronous>, transform_indices = @transform_2, window_bounds = array<i64: 1, 1024>}, {pipeline_mode = #tpu.pipeline_mode<synchronous>, transform_indices = @transform_3, window_bounds = array<i64: 1024, 256>}, {pipeline_mode = #tpu.pipeline_mode<synchronous>, transform_indices = @transform_4, window_bounds = array<i64: 1, 256>}, {transform_indices = @transform_5, window_bounds = array<i64: 16, 256>}]} {
    %c0 = arith.constant 0 : index
    %c0_0 = arith.constant 0 : index
    %0 = vector.load %arg1[%c0, %c0_0] : memref<16x768xbf16, #tpu.memory_space<vmem>>, vector<16x768xbf16>
    %c0_1 = arith.constant 0 : index
    %c0_2 = arith.constant 0 : index
    %1 = vector.load %arg2[%c0_1, %c0_2] : memref<768x1024xbf16, #tpu.memory_space<vmem>>, vector<768x1024xbf16>
    %cst = arith.constant dense<0.000000e+00> : vector<16x1024xf32>
    %2 = tpu.matmul %0, %1, %cst {dimension_numbers = #tpu.dot_dimension_numbers<[1], [0], [0], [1], [0, 0, 1, 1], [], []>} : vector<16x768xbf16>, vector<768x1024xbf16>, vector<16x1024xf32> -> vector<16x1024xf32>
    %c0_3 = arith.constant 0 : index
    %c0_4 = arith.constant 0 : index
    %3 = vector.load %arg3[%c0_3, %c0_4] : memref<1x1024xf32, #tpu.memory_space<vmem>>, vector<1x1024xf32>
    %4 = vector.broadcast %3 : vector<1x1024xf32> to vector<16x1024xf32>
    %5 = arith.addf %2, %4 : vector<16x1024xf32>
    %cst_5 = arith.constant 0.000000e+00 : f32
    %6 = vector.broadcast %cst_5 : f32 to vector<16x1024xf32>
    %7 = arith.maximumf %5, %6 : vector<16x1024xf32>
    %8 = arith.truncf %7 : vector<16x1024xf32> to vector<16x1024xbf16>
    %c0_6 = arith.constant 0 : index
    %c0_7 = arith.constant 0 : index
    %9 = vector.load %arg4[%c0_6, %c0_7] : memref<1024x256xbf16, #tpu.memory_space<vmem>>, vector<1024x256xbf16>
    %cst_8 = arith.constant dense<0.000000e+00> : vector<16x256xf32>
    %10 = tpu.matmul %8, %9, %cst_8 {dimension_numbers = #tpu.dot_dimension_numbers<[1], [0], [0], [1], [0, 0, 1, 1], [], []>} : vector<16x1024xbf16>, vector<1024x256xbf16>, vector<16x256xf32> -> vector<16x256xf32>
    %c0_9 = arith.constant 0 : index
    %c0_10 = arith.constant 0 : index
    %11 = vector.load %arg5[%c0_9, %c0_10] : memref<1x256xf32, #tpu.memory_space<vmem>>, vector<1x256xf32>
    %12 = vector.broadcast %11 : vector<1x256xf32> to vector<16x256xf32>
    %13 = arith.addf %10, %12 : vector<16x256xf32>
    %c0_11 = arith.constant 0 : index
    %c0_12 = arith.constant 0 : index
    %14 = vector.load %arg6[%c0_11, %c0_12] : memref<16x256xf32, #tpu.memory_space<vmem>>, vector<16x256xf32>
    tpu.vector_store %arg6[%c0_11, %c0_12], %13 {strides = array<i32>} : memref<16x256xf32, #tpu.memory_space<vmem>>, vector<16x256xf32>,
    return
  }
  func.func @transform_0(%arg0: i32) -> (i32, i32) {
    %c0_i32 = arith.constant 0 : i32
    %c0_i32_0 = arith.constant 0 : i32
    return %arg0, %c0_i32 : i32, i32
  }
  func.func @transform_1(%arg0: i32) -> (i32, i32) {
    %c0_i32 = arith.constant 0 : i32
    %c0_i32_0 = arith.constant 0 : i32
    %c0_i32_1 = arith.constant 0 : i32
    return %c0_i32, %c0_i32_0 : i32, i32
  }
  func.func @transform_2(%arg0: i32) -> (i32, i32) {
    %c0_i32 = arith.constant 0 : i32
    %c0_i32_0 = arith.constant 0 : i32
    %c0_i32_1 = arith.constant 0 : i32
    return %c0_i32, %c0_i32_0 : i32, i32
  }
  func.func @transform_3(%arg0: i32) -> (i32, i32) {
    %c0_i32 = arith.constant 0 : i32
    %c0_i32_0 = arith.constant 0 : i32
    %c0_i32_1 = arith.constant 0 : i32
    return %c0_i32, %c0_i32_0 : i32, i32
  }
  func.func @transform_4(%arg0: i32) -> (i32, i32) {
    %c0_i32 = arith.constant 0 : i32
    %c0_i32_0 = arith.constant 0 : i32
    %c0_i32_1 = arith.constant 0 : i32
    return %c0_i32, %c0_i32_0 : i32, i32
  }
  func.func @transform_5(%arg0: i32) -> (i32, i32) {
    %c0_i32 = arith.constant 0 : i32
    %c0_i32_0 = arith.constant 0 : i32
    return %arg0, %c0_i32 : i32, i32
  }
}

</mosaic_0001>

<bundles_post_ra>
// kernel: tpu_custom_call.1
= control target key start
LH: loop header
LB: loop body
LE: loop exit
PB: predicated region body
PF: predicated region fallthrough
CT: control target
= control target key end

     0   :  { %10 = vsyncpa [#allocation3], 0  ;;  %s5113_s0 = inlined_call_operand.hbm [shape: bf16[16,768], index: 0, kind: input, shape index: {}]   ;;  %s5114_s1 = inlined_call_operand.hbm [shape: bf16[768,1024], index: 1, kind: input, shape index: {}]   ;;  %s5115_s2 = inlined_call_operand.hbm [shape: f32[1,1024], index: 2, kind: input, shape index: {}]   ;;  %s5116_s3 = inlined_call_operand.hbm [shape: bf16[1024,256], index: 3, kind: input, shape index: {}]   ;;  %s5117_s4 = inlined_call_operand.hbm [shape: f32[1,256], index: 4, kind: input, shape index: {}]   ;;  %s5118_s5 = inlined_call_operand.hbm [shape: f32[16,256], index: 5, kind: output, shape index: {}]  }
   0x1   :  { %11 = vsyncpa [#allocation6], 0 }
   0x2   :  { %12 = vsyncpa [#allocation9], 0 }
   0x3   :  { %13 = vsyncpa [#allocation4], 0  ;;  %s4930_s18 = smov [#allocation5]   ;;  %s4790_s22 = scalar_lea.hbm %s5114_s1, 49152 }
   0x4   :  { %s31_s19 = sshll.u32 %s4930_s18, 4  ;;  %p4791_p0 = scmp.ne.s32.totalorder %s5114_s1, %s4790_s22  ;;  %s32_s19 = int_to_ptr.vmem [resolvable:$true] %s31_s19 }
   0x5   :  { %p4794_p1 = scmp.lt.u32.totalorder %s4790_s22, %s5114_s1 }
   0x7   :  { %p4796_p2 = pnand %p4794_p1, %p4791_p0 }
   0x9   :  { %4799 = shalt.err (!%p4796_p2)
}
   0xa   :  { %s4800_s27 = scalar_lea.vmem %s32_s19, 49152  ;;  %p4805_p4 = scmp.lt.s32.totalorder %s32_s19, %s32_s19 }
   0xb   :  { %p4801_p3 = scmp.ne.s32.totalorder %s32_s19, %s4800_s27  ;;  %p4806_p5 = scmp.lt.s32.totalorder %s4800_s27, %s4800_s27 }
   0xd   :  { %p4807_p6 = por %p4806_p5, %p4805_p4 }
   0xf   :  { %p4808_p7 = pnand %p4807_p6, %p4801_p3 }
  0x11   :  { %4811 = shalt.err (!%p4808_p7)
}
  0x12   :  { %s4931_s28 = smov 512   ;;  %s4932_s29 = smov 32  }
  0x13   :  { %37 = dma.hbm_to_vmem [thread:$0]  %s5114_s1, 49152, %s32_s19, [#allocation6], %s4931_s28, %s4931_s28, %s4932_s29  }
  0x14   :  { %s4933_s7 = smov [#allocation8]   ;;  %s4812_s11 = scalar_lea.hbm %s5116_s3, 16384 }
  0x15   :  { %s53_s8 = sshll.u32 %s4933_s7, 4  ;;  %p4813_p8 = scmp.ne.s32.totalorder %s5116_s3, %s4812_s11  ;;  %s54_s8 = int_to_ptr.vmem [resolvable:$true] %s53_s8 }
  0x16   :  { %p4816_p9 = scmp.lt.u32.totalorder %s4812_s11, %s5116_s3 }
  0x18   :  { %p4818_p10 = pnand %p4816_p9, %p4813_p8 }
  0x1a   :  { %4821 = shalt.err (!%p4818_p10)
}
  0x1b   :  { %s4822_s16 = scalar_lea.vmem %s54_s8, 16384  ;;  %p4827_p12 = scmp.lt.s32.totalorder %s54_s8, %s54_s8 }
  0x1c   :  { %p4823_p11 = scmp.ne.s32.totalorder %s54_s8, %s4822_s16  ;;  %p4828_p13 = scmp.lt.s32.totalorder %s4822_s16, %s4822_s16 }
  0x1e   :  { %p4829_p0 = por %p4828_p13, %p4827_p12 }
  0x20   :  { %p4830_p1 = pnand %p4829_p0, %p4823_p11 }
  0x22   :  { %4833 = shalt.err (!%p4830_p1)
}
  0x23   :  { %s4934_s1 = smov 128   ;;  %s4935_s17 = smov 8  }
  0x24   :  { %59 = dma.hbm_to_vmem [thread:$0]  %s5116_s3, 16384, %s54_s8, [#allocation9], %s4934_s1, %s4934_s1, %s4935_s17  }
  0x25   :  { %s4936_s20 = smov [#allocation2]   ;;  %s4834_s24 = scalar_lea.hbm %s5113_s0, 768 }
  0x26   :  { %s19_s21 = sshll.u32 %s4936_s20, 4  ;;  %p4835_p2 = scmp.ne.s32.totalorder %s5113_s0, %s4834_s24  ;;  %s20_s21 = int_to_ptr.vmem [resolvable:$true] %s19_s21 }
  0x27   :  { %p4838_p3 = scmp.lt.u32.totalorder %s4834_s24, %s5113_s0 }
  0x29   :  { %p4840_p4 = pnand %p4838_p3, %p4835_p2 }
  0x2b   :  { %4843 = shalt.err (!%p4840_p4)
}
  0x2c   :  { %s4844_s29 = scalar_lea.vmem %s20_s21, 768  ;;  %p4849_p6 = scmp.lt.s32.totalorder %s20_s21, %s20_s21 }
  0x2d   :  { %p4845_p5 = scmp.ne.s32.totalorder %s20_s21, %s4844_s29  ;;  %p4850_p7 = scmp.lt.s32.totalorder %s4844_s29, %s4844_s29 }
  0x2f   :  { %p4851_p8 = por %p4850_p7, %p4849_p6 }
  0x31   :  { %p4852_p9 = pnand %p4851_p8, %p4845_p5 }
  0x33   :  { %4855 = shalt.err (!%p4852_p9)
}
  0x34   :  { %s4937_s3 = smov 384   ;;  %s4938_s30 = smov 24  }
  0x35   :  { %25 = dma.hbm_to_vmem [thread:$0]  %s5113_s0, 768, %s20_s21, [#allocation3], %s4937_s3, %s4937_s3, %s4938_s30  }
  0x36   :  { %s4939_s8 = smov [#allocation7]   ;;  %s4940_s10 = smov [#allocation10]  }
  0x37   :  { %s44_s9 = sshll.u32 %s4939_s8, 4  ;;  %s66_s11 = sshll.u32 %s4940_s10, 4  ;;  %s45_s9 = int_to_ptr.vmem [resolvable:$true] %s44_s9  ;;  %s67_s11 = int_to_ptr.vmem [resolvable:$true] %s66_s11 }
  0x38   :  { %s4856_s14 = scalar_lea.hbm %s5115_s2, 128 }
  0x39   :  { %p4857_p10 = scmp.ne.s32.totalorder %s5115_s2, %s4856_s14  ;;  %p4860_p11 = scmp.lt.u32.totalorder %s4856_s14, %s5115_s2 }
  0x3b   :  { %p4862_p12 = pnand %p4860_p11, %p4857_p10 }
  0x3d   :  { %4865 = shalt.err (!%p4862_p12)
}
  0x3e   :  { %s4866_s0 = scalar_lea.vmem %s45_s9, 128  ;;  %p4871_p0 = scmp.lt.s32.totalorder %s45_s9, %s45_s9 }
  0x3f   :  { %p4867_p13 = scmp.ne.s32.totalorder %s45_s9, %s4866_s0  ;;  %p4872_p1 = scmp.lt.s32.totalorder %s4866_s0, %s4866_s0 }
  0x41   :  { %p4873_p2 = por %p4872_p1, %p4871_p0 }
  0x43   :  { %p4874_p3 = pnand %p4873_p2, %p4867_p13 }
  0x45   :  { %4877 = shalt.err (!%p4874_p3)
}
  0x46   :  { %47 = dma.hbm_to_vmem [thread:$0]  %s5115_s2, 128, %s45_s9, [#allocation6]  }
  0x47   :  { %s4878_s22 = scalar_lea.hbm %s5117_s4, 32 }
  0x48   :  { %p4879_p4 = scmp.ne.s32.totalorder %s5117_s4, %s4878_s22  ;;  %p4882_p5 = scmp.lt.u32.totalorder %s4878_s22, %s5117_s4 }
  0x4a   :  { %p4884_p6 = pnand %p4882_p5, %p4879_p4 }
  0x4c   :  { %4887 = shalt.err (!%p4884_p6)
}
  0x4d   :  { %s4888_s27 = scalar_lea.vmem %s67_s11, 32  ;;  %p4893_p8 = scmp.lt.s32.totalorder %s67_s11, %s67_s11 }
  0x4e   :  { %p4889_p7 = scmp.ne.s32.totalorder %s67_s11, %s4888_s27  ;;  %p4894_p9 = scmp.lt.s32.totalorder %s4888_s27, %s4888_s27 }
  0x50   :  { %p4895_p10 = por %p4894_p9, %p4893_p8 }
  0x52   :  { %p4896_p11 = pnand %p4895_p10, %p4889_p7 }
  0x54   :  { %4899 = shalt.err (!%p4896_p11)
}
  0x55   :  { %69 = dma.hbm_to_vmem [thread:$0]  %s5117_s4, 32, %s67_s11, [#allocation9]  }
  0x56   :  { %4922 = dma.done.wait [#allocation3], 768  }
  0x57   :  { %4923 = vsyncadd [#allocation3], 4294966528 }
  0x58   :  { %4924 = dma.done.wait [#allocation6], 49280  }
  0x59   :  { %4925 = vsyncadd [#allocation6], 4294918016 }
  0x5a   :  { %4926 = dma.done.wait [#allocation9], 16416  }
  0x5b   :  { %4927 = vsyncadd [#allocation9], 4294950880  ;;  %v91_v0 = vld [vmem:[#allocation5] sm:$0xff]  ;;  %v5034_v39 = vld [vmem:[#allocation2 + $0x4] ss:$24 sps:$4 sm:$0xff]   ;;  %s4941_s4 = smov [#allocation11]  }
  0x5c   :  { %v95_v1 = vld [vmem:[#allocation5 + $0x20] sm:$0xff]  ;;  %2499 = vmatprep.mubr.bf16.mxu1 %v5034_v39  ;;  %s3968_s29 = sshll.u32 %s4941_s4, 4  ;;  %s3969_s29 = int_to_ptr.vmem [resolvable:$true] %s3968_s29 }
  0x5d   :  { %v99_v2 = vld [vmem:[#allocation5 + $0x40] sm:$0xff]  ;;  %v3989_v3 = vcombine.high %v91_v0, %v95_v1  ;;  %v3988_v4 = vcombine.low %v91_v0, %v95_v1  ;;  %s4900_s3 = scalar_lea.vmem %s3969_s29, 512  ;;  %p4905_p13 = scmp.lt.s32.totalorder %s3969_s29, %s3969_s29 }
  0x5e   :  { %v103_v5 = vld [vmem:[#allocation5 + $0x60] sm:$0xff]  ;;  %p4901_p12 = scmp.ne.s32.totalorder %s3969_s29, %s4900_s3  ;;  %p4906_p0 = scmp.lt.s32.totalorder %s4900_s3, %s4900_s3 }
  0x5f   :  { %v3997_v6 = vcombine.high %v99_v2, %v103_v5  ;;  %v107_v7 = vld [vmem:[#allocation5 + $0x80] sm:$0xff]  ;;  %2467 = vmatprep.subr.bf16.mxu1 %v3989_v3  ;;  %v3996_v9 = vcombine.low %v99_v2, %v103_v5 }
  0x60   :  { %v111_v8 = vld [vmem:[#allocation5 + $0xa0] sm:$0xff]  ;;  %2468 = vmatpush1.bf16.msra.mxu1 %v3988_v4  ;;  %p4907_p1 = por %p4906_p0, %p4905_p13 }
  0x61   :  { %2469 = vmatprep.subr.bf16.mxu1 %v3997_v6  ;;  %v4005_v10 = vcombine.high %v107_v7, %v111_v8  ;;  %v115_v11 = vld [vmem:[#allocation5 + $0xc0] sm:$0xff]  ;;  %v4004_v19 = vcombine.low %v107_v7, %v111_v8 }
  0x62   :  { %v119_v12 = vld [vmem:[#allocation5 + $0xe0] sm:$0xff]  ;;  %p4908_p2 = pnand %p4907_p1, %p4901_p12 }
  0x63   :  { %v347_v13 = vld [vmem:[#allocation5 + $0x800] sm:$0xff]  ;;  %v4013_v22 = vcombine.high %v115_v11, %v119_v12  ;;  %v4012_v28 = vcombine.low %v115_v11, %v119_v12 }
  0x64   :  { %v351_v14 = vld [vmem:[#allocation5 + $0x820] sm:$0xff]  ;;  %2470 = vmatpush1.bf16.msra.mxu1 %v3996_v9 }
  0x65   :  { %v4245_v15 = vcombine.high %v347_v13, %v351_v14  ;;  %v4244_v16 = vcombine.low %v347_v13, %v351_v14  ;;  %v355_v17 = vld [vmem:[#allocation5 + $0x840] sm:$0xff]  ;;  %2471 = vmatprep.subr.bf16.mxu1 %v4005_v10 }
  0x66   :  { %v359_v18 = vld [vmem:[#allocation5 + $0x860] sm:$0xff] }
  0x67   :  { %v4253_v20 = vcombine.high %v355_v17, %v359_v18  ;;  %v363_v21 = vld [vmem:[#allocation5 + $0x880] sm:$0xff]  ;;  %2553 = vmatprep.subr.bf16.mxu0 %v4245_v15  ;;  %v4252_v26 = vcombine.low %v355_v17, %v359_v18 }
  0x68   :  { %v367_v23 = vld [vmem:[#allocation5 + $0x8a0] sm:$0xff]  ;;  %2554 = vmatpush1.bf16.msra.mxu0 %v4244_v16  ;;  %2472 = vmatpush1.bf16.msra.mxu1 %v4004_v19 }
  0x69   :  { %v123_v24 = vld [vmem:[#allocation5 + $0x100] sm:$0xff]  ;;  %2555 = vmatprep.subr.bf16.mxu0 %v4253_v20  ;;  %v4261_v27 = vcombine.high %v363_v21, %v367_v23  ;;  %2473 = vmatprep.subr.bf16.mxu1 %v4013_v22  ;;  %v4260_v34 = vcombine.low %v363_v21, %v367_v23 }
  0x6a   :  { %v127_v25 = vld [vmem:[#allocation5 + $0x120] sm:$0xff] }
  0x6b   :  { %v371_v29 = vld [vmem:[#allocation5 + $0x8c0] sm:$0xff]  ;;  %v4021_v31 = vcombine.high %v123_v24, %v127_v25  ;;  %v4020_v38 = vcombine.low %v123_v24, %v127_v25 }
  0x6c   :  { %v375_v30 = vld [vmem:[#allocation5 + $0x8e0] sm:$0xff]  ;;  %2556 = vmatpush1.bf16.msra.mxu0 %v4252_v26  ;;  %2474 = vmatpush1.bf16.msra.mxu1 %v4012_v28 }
  0x6d   :  { %v131_v32 = vld [vmem:[#allocation5 + $0x140] sm:$0xff]  ;;  %2557 = vmatprep.subr.bf16.mxu0 %v4261_v27  ;;  %v4269_v35 = vcombine.high %v371_v29, %v375_v30  ;;  %2475 = vmatprep.subr.bf16.mxu1 %v4021_v31  ;;  %v4268_v43 = vcombine.low %v371_v29, %v375_v30 }
  0x6e   :  { %v135_v33 = vld [vmem:[#allocation5 + $0x160] sm:$0xff] }
  0x6f   :  { %v379_v36 = vld [vmem:[#allocation5 + $0x900] sm:$0xff]  ;;  %v4029_v40 = vcombine.high %v131_v32, %v135_v33  ;;  %v4028_v45 = vcombine.low %v131_v32, %v135_v33 }
  0x70   :  { %v383_v37 = vld [vmem:[#allocation5 + $0x920] sm:$0xff]  ;;  %2558 = vmatpush1.bf16.msra.mxu0 %v4260_v34  ;;  %2476 = vmatpush1.bf16.msra.mxu1 %v4020_v38 }
  0x71   :  { %v139_v41 = vld [vmem:[#allocation5 + $0x180] sm:$0xff]  ;;  %2559 = vmatprep.subr.bf16.mxu0 %v4269_v35  ;;  %v4277_v44 = vcombine.high %v379_v36, %v383_v37  ;;  %2477 = vmatprep.subr.bf16.mxu1 %v4029_v40  ;;  %v4276_v51 = vcombine.low %v379_v36, %v383_v37 }
  0x72   :  { %v143_v42 = vld [vmem:[#allocation5 + $0x1a0] sm:$0xff] }
  0x73   :  { %v387_v46 = vld [vmem:[#allocation5 + $0x940] sm:$0xff]  ;;  %v4037_v48 = vcombine.high %v139_v41, %v143_v42  ;;  %v4036_v53 = vcombine.low %v139_v41, %v143_v42 }
  0x74   :  { %v391_v47 = vld [vmem:[#allocation5 + $0x960] sm:$0xff]  ;;  %2560 = vmatpush1.bf16.msra.mxu0 %v4268_v43  ;;  %2478 = vmatpush1.bf16.msra.mxu1 %v4028_v45 }
  0x75   :  { %v147_v49 = vld [vmem:[#allocation5 + $0x1c0] sm:$0xff]  ;;  %2561 = vmatprep.subr.bf16.mxu0 %v4277_v44  ;;  %v4285_v52 = vcombine.high %v387_v46, %v391_v47  ;;  %2479 = vmatprep.subr.bf16.mxu1 %v4037_v48  ;;  %v4284_v59 = vcombine.low %v387_v46, %v391_v47 }
  0x76   :  { %v151_v50 = vld [vmem:[#allocation5 + $0x1e0] sm:$0xff] }
  0x77   :  { %v395_v54 = vld [vmem:[#allocation5 + $0x980] sm:$0xff]  ;;  %v4045_v56 = vcombine.high %v147_v49, %v151_v50  ;;  %v4044_v61 = vcombine.low %v147_v49, %v151_v50 }
  0x78   :  { %v399_v55 = vld [vmem:[#allocation5 + $0x9a0] sm:$0xff]  ;;  %2562 = vmatpush1.bf16.msra.mxu0 %v4276_v51  ;;  %2480 = vmatpush1.bf16.msra.mxu1 %v4036_v53 }
  0x79   :  { %v155_v57 = vld [vmem:[#allocation5 + $0x200] sm:$0xff]  ;;  %2563 = vmatprep.subr.bf16.mxu0 %v4285_v52  ;;  %v4293_v60 = vcombine.high %v395_v54, %v399_v55  ;;  %2481 = vmatprep.subr.bf16.mxu1 %v4045_v56  ;;  %v4292_v4 = vcombine.low %v395_v54, %v399_v55 }
  0x7a   :  { %v159_v58 = vld [vmem:[#allocation5 + $0x220] sm:$0xff] }
  0x7b   :  { %v403_v62 = vld [vmem:[#allocation5 + $0x9c0] sm:$0xff]  ;;  %v4053_v0 = vcombine.high %v155_v57, %v159_v58  ;;  %v4052_v6 = vcombine.low %v155_v57, %v159_v58 }
  0x7c   :  { %v407_v63 = vld [vmem:[#allocation5 + $0x9e0] sm:$0xff]  ;;  %2564 = vmatpush1.bf16.msra.mxu0 %v4284_v59  ;;  %2482 = vmatpush1.bf16.msra.mxu1 %v4044_v61 }
  0x7d   :  { %v4581_v1 = vld [vmem:[#allocation2 + $0x14] ss:$24 sps:$4 sm:$0xff]   ;;  %2565 = vmatprep.subr.bf16.mxu0 %v4293_v60  ;;  %v4301_v5 = vcombine.high %v403_v62, %v407_v63  ;;  %2483 = vmatprep.subr.bf16.mxu1 %v4053_v0  ;;  %v4300_v12 = vcombine.low %v403_v62, %v407_v63 }
  0x7e   :  { %v163_v2 = vld [vmem:[#allocation5 + $0x240] sm:$0xff]  ;;  %2585 = vmatprep.mubr.bf16.mxu0 %v4581_v1 }
  0x7f   :  { %v167_v3 = vld [vmem:[#allocation5 + $0x260] sm:$0xff] }
  0x80   :  { %v411_v7 = vld [vmem:[#allocation5 + $0xa00] sm:$0xff]  ;;  %v4061_v9 = vcombine.high %v163_v2, %v167_v3  ;;  %2566 = vmatpush1.bf16.msra.mxu0 %v4292_v4  ;;  %2484 = vmatpush1.bf16.msra.mxu1 %v4052_v6  ;;  %v4060_v14 = vcombine.low %v163_v2, %v167_v3  ;;  %v5037_v3 = vld [vmem:[#allocation2] ss:$24 sps:$4 sm:$0xff]  }
  0x81   :  { %v415_v8 = vld [vmem:[#allocation5 + $0xa20] sm:$0xff]  ;;  %2567 = vmatprep.subr.bf16.mxu0 %v4301_v5 }
  0x82   :  { %v171_v10 = vld [vmem:[#allocation5 + $0x280] sm:$0xff]  ;;  %v4309_v13 = vcombine.high %v411_v7, %v415_v8  ;;  %2485 = vmatprep.subr.bf16.mxu1 %v4061_v9  ;;  %v4308_v20 = vcombine.low %v411_v7, %v415_v8 }
  0x83   :  { %v175_v11 = vld [vmem:[#allocation5 + $0x2a0] sm:$0xff] }
  0x84   :  { %v419_v15 = vld [vmem:[#allocation5 + $0xa40] sm:$0xff]  ;;  %v4069_v17 = vcombine.high %v171_v10, %v175_v11  ;;  %2568 = vmatpush1.bf16.msra.mxu0 %v4300_v12  ;;  %2486 = vmatpush1.bf16.msra.mxu1 %v4060_v14  ;;  %v4068_v23 = vcombine.low %v171_v10, %v175_v11  ;;  %v93_v10 = vld [vmem:[#allocation5 + $0x10] sm:$0xff] }
  0x85   :  { %v423_v16 = vld [vmem:[#allocation5 + $0xa60] sm:$0xff]  ;;  %2569 = vmatprep.subr.bf16.mxu0 %v4309_v13  ;;  %v97_v11 = vld [vmem:[#allocation5 + $0x30] sm:$0xff] }
  0x86   :  { %v179_v18 = vld [vmem:[#allocation5 + $0x2c0] sm:$0xff]  ;;  %v4317_v21 = vcombine.high %v419_v15, %v423_v16  ;;  %2487 = vmatprep.subr.bf16.mxu1 %v4069_v17  ;;  %v4316_v28 = vcombine.low %v419_v15, %v423_v16  ;;  %v5039_v12 = vld [vmem:[#allocation2 + $0xc] ss:$24 sps:$4 sm:$0xff]   ;;  %v3993_v16 = vcombine.high %v93_v10, %v97_v11 }
  0x87   :  { %v183_v19 = vld [vmem:[#allocation5 + $0x2e0] sm:$0xff] }
  0x88   :  { %v427_v22 = vld [vmem:[#allocation5 + $0xa80] sm:$0xff]  ;;  %v4077_v25 = vcombine.high %v179_v18, %v183_v19  ;;  %2570 = vmatpush1.bf16.msra.mxu0 %v4308_v20  ;;  %2488 = vmatpush1.bf16.msra.mxu1 %v4068_v23  ;;  %v4076_v30 = vcombine.low %v179_v18, %v183_v19  ;;  %v101_v20 = vld [vmem:[#allocation5 + $0x50] sm:$0xff] }
  0x89   :  { %v431_v24 = vld [vmem:[#allocation5 + $0xaa0] sm:$0xff]  ;;  %2571 = vmatprep.subr.bf16.mxu0 %v4317_v21  ;;  %v105_v21 = vld [vmem:[#allocation5 + $0x70] sm:$0xff] }
  0x8a   :  { %v187_v26 = vld [vmem:[#allocation5 + $0x300] sm:$0xff]  ;;  %v4325_v29 = vcombine.high %v427_v22, %v431_v24  ;;  %2489 = vmatprep.subr.bf16.mxu1 %v4077_v25  ;;  %v4324_v36 = vcombine.low %v427_v22, %v431_v24  ;;  %v3992_v24 = vcombine.low %v93_v10, %v97_v11  ;;  %v4001_v25 = vcombine.high %v101_v20, %v105_v21 }
  0x8b   :  { %v191_v27 = vld [vmem:[#allocation5 + $0x320] sm:$0xff] }
  0x8c   :  { %v435_v31 = vld [vmem:[#allocation5 + $0xac0] sm:$0xff]  ;;  %v4085_v33 = vcombine.high %v187_v26, %v191_v27  ;;  %2572 = vmatpush1.bf16.msra.mxu0 %v4316_v28  ;;  %2490 = vmatpush1.bf16.msra.mxu1 %v4076_v30  ;;  %v4084_v38 = vcombine.low %v187_v26, %v191_v27  ;;  %v109_v28 = vld [vmem:[#allocation5 + $0x90] sm:$0xff] }
  0x8d   :  { %v439_v32 = vld [vmem:[#allocation5 + $0xae0] sm:$0xff]  ;;  %2573 = vmatprep.subr.bf16.mxu0 %v4325_v29  ;;  %v113_v29 = vld [vmem:[#allocation5 + $0xb0] sm:$0xff] }
  0x8e   :  { %v195_v34 = vld [vmem:[#allocation5 + $0x340] sm:$0xff]  ;;  %v4333_v37 = vcombine.high %v435_v31, %v439_v32  ;;  %2491 = vmatprep.subr.bf16.mxu1 %v4085_v33  ;;  %v4332_v45 = vcombine.low %v435_v31, %v439_v32  ;;  %v4000_v32 = vcombine.low %v101_v20, %v105_v21  ;;  %v4009_v33 = vcombine.high %v109_v28, %v113_v29 }
  0x8f   :  { %v199_v35 = vld [vmem:[#allocation5 + $0x360] sm:$0xff] }
  0x90   :  { %v443_v40 = vld [vmem:[#allocation5 + $0xb00] sm:$0xff]  ;;  %v4093_v42 = vcombine.high %v195_v34, %v199_v35  ;;  %2574 = vmatpush1.bf16.msra.mxu0 %v4324_v36  ;;  %2492 = vmatpush1.bf16.msra.mxu1 %v4084_v38  ;;  %v4092_v47 = vcombine.low %v195_v34, %v199_v35  ;;  %v117_v36 = vld [vmem:[#allocation5 + $0xd0] sm:$0xff] }
  0x91   :  { %v447_v41 = vld [vmem:[#allocation5 + $0xb20] sm:$0xff]  ;;  %2575 = vmatprep.subr.bf16.mxu0 %v4333_v37  ;;  %v121_v37 = vld [vmem:[#allocation5 + $0xf0] sm:$0xff] }
  0x92   :  { %v203_v43 = vld [vmem:[#allocation5 + $0x380] sm:$0xff]  ;;  %v4341_v46 = vcombine.high %v443_v40, %v447_v41  ;;  %2493 = vmatprep.subr.bf16.mxu1 %v4093_v42  ;;  %v4340_v53 = vcombine.low %v443_v40, %v447_v41  ;;  %v4008_v41 = vcombine.low %v109_v28, %v113_v29  ;;  %v4017_v42 = vcombine.high %v117_v36, %v121_v37 }
  0x93   :  { %v207_v44 = vld [vmem:[#allocation5 + $0x3a0] sm:$0xff] }
  0x94   :  { %v451_v48 = vld [vmem:[#allocation5 + $0xb40] sm:$0xff]  ;;  %v4101_v50 = vcombine.high %v203_v43, %v207_v44  ;;  %2576 = vmatpush1.bf16.msra.mxu0 %v4332_v45  ;;  %2494 = vmatpush1.bf16.msra.mxu1 %v4092_v47  ;;  %v4100_v55 = vcombine.low %v203_v43, %v207_v44  ;;  %v125_v45 = vld [vmem:[#allocation5 + $0x110] sm:$0xff] }
  0x95   :  { %v455_v49 = vld [vmem:[#allocation5 + $0xb60] sm:$0xff]  ;;  %2577 = vmatprep.subr.bf16.mxu0 %v4341_v46  ;;  %v129_v46 = vld [vmem:[#allocation5 + $0x130] sm:$0xff] }
  0x96   :  { %v211_v51 = vld [vmem:[#allocation5 + $0x3c0] sm:$0xff]  ;;  %v4349_v54 = vcombine.high %v451_v48, %v455_v49  ;;  %2495 = vmatprep.subr.bf16.mxu1 %v4101_v50  ;;  %v4348_v61 = vcombine.low %v451_v48, %v455_v49  ;;  %v4016_v49 = vcombine.low %v117_v36, %v121_v37  ;;  %v4025_v50 = vcombine.high %v125_v45, %v129_v46 }
  0x97   :  { %v215_v52 = vld [vmem:[#allocation5 + $0x3e0] sm:$0xff] }
  0x98   :  { %v459_v56 = vld [vmem:[#allocation5 + $0xb80] sm:$0xff]  ;;  %v4109_v58 = vcombine.high %v211_v51, %v215_v52  ;;  %2578 = vmatpush1.bf16.msra.mxu0 %v4340_v53  ;;  %2496 = vmatpush1.bf16.msra.mxu1 %v4100_v55  ;;  %v4108_v63 = vcombine.low %v211_v51, %v215_v52  ;;  %v133_v53 = vld [vmem:[#allocation5 + $0x150] sm:$0xff] }
  0x99   :  { %v463_v57 = vld [vmem:[#allocation5 + $0xba0] sm:$0xff]  ;;  %2579 = vmatprep.subr.bf16.mxu0 %v4349_v54  ;;  %v137_v54 = vld [vmem:[#allocation5 + $0x170] sm:$0xff] }
  0x9a   :  { %v219_v59 = vld [vmem:[#allocation5 + $0x400] sm:$0xff]  ;;  %v4357_v62 = vcombine.high %v459_v56, %v463_v57  ;;  %2497 = vmatprep.subr.bf16.mxu1 %v4109_v58  ;;  %v4356_v6 = vcombine.low %v459_v56, %v463_v57  ;;  %v4024_v57 = vcombine.low %v125_v45, %v129_v46  ;;  %v4033_v58 = vcombine.high %v133_v53, %v137_v54 }
  0x9b   :  { %v223_v60 = vld [vmem:[#allocation5 + $0x420] sm:$0xff] }
  0x9c   :  { %v467_v0 = vld [vmem:[#allocation5 + $0xbc0] sm:$0xff]  ;;  %v4117_v2 = vcombine.high %v219_v59, %v223_v60  ;;  %2580 = vmatpush1.bf16.msra.mxu0 %v4348_v61  ;;  %2498 = vmatpush1.bf16.msra.mxu1 %v4108_v63  ;;  %v4116_v8 = vcombine.low %v219_v59, %v223_v60  ;;  %v141_v61 = vld [vmem:[#allocation5 + $0x190] sm:$0xff] }
  0x9d   :  { %v471_v1 = vld [vmem:[#allocation5 + $0xbe0] sm:$0xff]  ;;  %2581 = vmatprep.subr.bf16.mxu0 %v4357_v62  ;;  %v145_v62 = vld [vmem:[#allocation5 + $0x1b0] sm:$0xff] }
  0x9e   :  { %v227_v4 = vld [vmem:[#allocation5 + $0x440] sm:$0xff]  ;;  %v4365_v7 = vcombine.high %v467_v0, %v471_v1  ;;  %2510 = vmatprep.subr.bf16.mxu1 %v4117_v2  ;;  %v4364_v15 = vcombine.low %v467_v0, %v471_v1  ;;  %v4032_v1 = vcombine.low %v133_v53, %v137_v54  ;;  %v4041_v2 = vcombine.high %v141_v61, %v145_v62 }
  0x9f   :  { %v231_v5 = vld [vmem:[#allocation5 + $0x460] sm:$0xff]  ;;  %2500 = vmatmul.mubr.bf16.vlgmr.msra.gmra.mrb[0].mxu1 %v5037_v3  ;;  %v4040_v10 = vcombine.low %v141_v61, %v145_v62 }
  0xa0   :  { %v235_v9 = vld [vmem:[#allocation5 + $0x480] sm:$0xff]  ;;  %v4125_v13 = vcombine.high %v227_v4, %v231_v5  ;;  %2582 = vmatpush1.bf16.msra.mxu0 %v4356_v6  ;;  %2511 = vmatpush1.bf16.msra.mxu1 %v4116_v8  ;;  %v4124_v17 = vcombine.low %v227_v4, %v231_v5  ;;  %v149_v6 = vld [vmem:[#allocation5 + $0x1d0] sm:$0xff] }
  0xa1   :  { %v239_v14 = vld [vmem:[#allocation5 + $0x4a0] sm:$0xff]  ;;  %2583 = vmatprep.subr.bf16.mxu0 %v4365_v7  ;;  %2542 = vmatprep.mubr.bf16.mxu1 %v5039_v12  ;;  %v153_v7 = vld [vmem:[#allocation5 + $0x1f0] sm:$0xff] }
  0xa2   :  { %v243_v18 = vld [vmem:[#allocation5 + $0x4c0] sm:$0xff]  ;;  %2512 = vmatprep.subr.bf16.mxu1 %v4125_v13  ;;  %v4133_v22 = vcombine.high %v235_v9, %v239_v14  ;;  %v4132_v26 = vcombine.low %v235_v9, %v239_v14  ;;  %v4049_v11 = vcombine.high %v149_v6, %v153_v7 }
  0xa3   :  { %v247_v19 = vld [vmem:[#allocation5 + $0x4e0] sm:$0xff] }
  0xa4   :  { %v4583_v23 = vld [vmem:[#allocation2 + $0x10] ss:$24 sps:$4 sm:$0xff]   ;;  %2584 = vmatpush1.bf16.msra.mxu0 %v4364_v15  ;;  %2513 = vmatpush1.bf16.msra.mxu1 %v4124_v17  ;;  %v4141_v30 = vcombine.high %v243_v18, %v247_v19  ;;  %v4140_v34 = vcombine.low %v243_v18, %v247_v19  ;;  %v157_v15 = vld [vmem:[#allocation5 + $0x210] sm:$0xff]  ;;  %v4048_v19 = vcombine.low %v149_v6, %v153_v7 }
  0xa5   :  { %2725 = vmatprep.subr.bf16.mxu0 %v3993_v16  ;;  %v251_v27 = vld [vmem:[#allocation5 + $0x500] sm:$0xff]  ;;  %2514 = vmatprep.subr.bf16.mxu1 %v4133_v22  ;;  %v161_v16 = vld [vmem:[#allocation5 + $0x230] sm:$0xff] }
  0xa6   :  { %v255_v31 = vld [vmem:[#allocation5 + $0x520] sm:$0xff]  ;;  %v4057_v20 = vcombine.high %v157_v15, %v161_v16 }
  0xa7   :  { %2586 = vmatmul.mubr.bf16.vlgmr.msra.gmra.mrb[0].mxu0 %v4583_v23  ;;  %v259_v35 = vld [vmem:[#allocation5 + $0x540] sm:$0xff]  ;;  %v4149_v38 = vcombine.high %v251_v27, %v255_v31  ;;  %v4148_v43 = vcombine.low %v251_v27, %v255_v31  ;;  %v165_v23 = vld [vmem:[#allocation5 + $0x250] sm:$0xff]  ;;  %v4056_v27 = vcombine.low %v157_v15, %v161_v16 }
  0xa8   :  { %2726 = vmatpush1.bf16.msra.mxu0 %v3992_v24  ;;  %2757 = vmatprep.mubr.bf16.mxu0 %v5034_v39  ;;  %v263_v40 = vld [vmem:[#allocation5 + $0x560] sm:$0xff]  ;;  %v169_v24 = vld [vmem:[#allocation5 + $0x270] sm:$0xff] }
  0xa9   :  { %2727 = vmatprep.subr.bf16.mxu0 %v4001_v25  ;;  %2515 = vmatpush1.bf16.msra.mxu1 %v4132_v26  ;;  %v267_v44 = vld [vmem:[#allocation5 + $0x580] sm:$0xff]  ;;  %v4157_v47 = vcombine.high %v259_v35, %v263_v40  ;;  %v4156_v51 = vcombine.low %v259_v35, %v263_v40  ;;  %v4065_v28 = vcombine.high %v165_v23, %v169_v24  ;;  %v173_v31 = vld [vmem:[#allocation5 + $0x290] sm:$0xff] }
  0xaa   :  { %2516 = vmatprep.subr.bf16.mxu1 %v4141_v30  ;;  %v271_v48 = vld [vmem:[#allocation5 + $0x5a0] sm:$0xff]  ;;  %v4064_v35 = vcombine.low %v165_v23, %v169_v24  ;;  %v181_v40 = vld [vmem:[#allocation5 + $0x2d0] sm:$0xff] }
  0xab   :  { %v275_v52 = vld [vmem:[#allocation5 + $0x5c0] sm:$0xff]  ;;  %v4165_v55 = vcombine.high %v267_v44, %v271_v48  ;;  %v4164_v59 = vcombine.low %v267_v44, %v271_v48  ;;  %v189_v48 = vld [vmem:[#allocation5 + $0x310] sm:$0xff] }
  0xac   :  { %2728 = vmatpush1.bf16.msra.mxu0 %v4000_v32  ;;  %v279_v56 = vld [vmem:[#allocation5 + $0x5e0] sm:$0xff]  ;;  %v177_v32 = vld [vmem:[#allocation5 + $0x2b0] sm:$0xff] }
  0xad   :  { %2729 = vmatprep.subr.bf16.mxu0 %v4009_v33  ;;  %2517 = vmatpush1.bf16.msra.mxu1 %v4140_v34  ;;  %v283_v60 = vld [vmem:[#allocation5 + $0x600] sm:$0xff]  ;;  %v4173_v63 = vcombine.high %v275_v52, %v279_v56  ;;  %v4172_v4 = vcombine.low %v275_v52, %v279_v56  ;;  %v4073_v36 = vcombine.high %v173_v31, %v177_v32  ;;  %v197_v56 = vld [vmem:[#allocation5 + $0x350] sm:$0xff] }
  0xae   :  { %2518 = vmatprep.subr.bf16.mxu1 %v4149_v38  ;;  %v287_v0 = vld [vmem:[#allocation5 + $0x620] sm:$0xff]  ;;  %v4072_v44 = vcombine.low %v173_v31, %v177_v32  ;;  %v5044_v15 = vld [vmem:[#allocation2 + $0x8] ss:$24 sps:$4 sm:$0xff]  }
  0xaf   :  { %v291_v5 = vld [vmem:[#allocation5 + $0x640] sm:$0xff]  ;;  %v4181_v8 = vcombine.high %v283_v60, %v287_v0  ;;  %v4180_v13 = vcombine.low %v283_v60, %v287_v0  ;;  %v205_v0 = vld [vmem:[#allocation5 + $0x390] sm:$0xff] }
  0xb0   :  { %2730 = vmatpush1.bf16.msra.mxu0 %v4008_v41  ;;  %v295_v9 = vld [vmem:[#allocation5 + $0x660] sm:$0xff]  ;;  %v185_v41 = vld [vmem:[#allocation5 + $0x2f0] sm:$0xff] }
  0xb1   :  { %2731 = vmatprep.subr.bf16.mxu0 %v4017_v42  ;;  %2519 = vmatpush1.bf16.msra.mxu1 %v4148_v43  ;;  %v299_v14 = vld [vmem:[#allocation5 + $0x680] sm:$0xff]  ;;  %v4189_v17 = vcombine.high %v291_v5, %v295_v9  ;;  %v4188_v21 = vcombine.low %v291_v5, %v295_v9  ;;  %v4081_v45 = vcombine.high %v181_v40, %v185_v41  ;;  %v217_v9 = vld [vmem:[#allocation5 + $0x3f0] sm:$0xff] }
  0xb2   :  { %2520 = vmatprep.subr.bf16.mxu1 %v4157_v47  ;;  %v303_v18 = vld [vmem:[#allocation5 + $0x6a0] sm:$0xff]  ;;  %v4080_v52 = vcombine.low %v181_v40, %v185_v41 }
  0xb3   :  { %v307_v22 = vld [vmem:[#allocation5 + $0x6c0] sm:$0xff]  ;;  %v4197_v25 = vcombine.high %v299_v14, %v303_v18  ;;  %v4196_v29 = vcombine.low %v299_v14, %v303_v18  ;;  %v221_v18 = vld [vmem:[#allocation5 + $0x410] sm:$0xff] }
  0xb4   :  { %2732 = vmatpush1.bf16.msra.mxu0 %v4016_v49  ;;  %v311_v26 = vld [vmem:[#allocation5 + $0x6e0] sm:$0xff]  ;;  %v193_v49 = vld [vmem:[#allocation5 + $0x330] sm:$0xff] }
  0xb5   :  { %2733 = vmatprep.subr.bf16.mxu0 %v4025_v50  ;;  %2521 = vmatpush1.bf16.msra.mxu1 %v4156_v51  ;;  %v315_v30 = vld [vmem:[#allocation5 + $0x700] sm:$0xff]  ;;  %v4205_v33 = vcombine.high %v307_v22, %v311_v26  ;;  %v4204_v37 = vcombine.low %v307_v22, %v311_v26  ;;  %v4089_v53 = vcombine.high %v189_v48, %v193_v49  ;;  %v112_v22 = vld [vmem:[#allocation5 + $0xa8] sm:$0xff]  ;;  %v229_v26 = vld [vmem:[#allocation5 + $0x450] sm:$0xff] }
  0xb6   :  { %2522 = vmatprep.subr.bf16.mxu1 %v4165_v55  ;;  %v319_v34 = vld [vmem:[#allocation5 + $0x720] sm:$0xff]  ;;  %v4088_v60 = vcombine.low %v189_v48, %v193_v49  ;;  %v253_v49 = vld [vmem:[#allocation5 + $0x510] sm:$0xff] }
  0xb7   :  { %v323_v38 = vld [vmem:[#allocation5 + $0x740] sm:$0xff]  ;;  %v4213_v42 = vcombine.high %v315_v30, %v319_v34  ;;  %v4212_v46 = vcombine.low %v315_v30, %v319_v34  ;;  %v120_v30 = vld [vmem:[#allocation5 + $0xe8] sm:$0xff]  ;;  %v237_v34 = vld [vmem:[#allocation5 + $0x490] sm:$0xff] }
  0xb8   :  { %2734 = vmatpush1.bf16.msra.mxu0 %v4024_v57  ;;  %v327_v43 = vld [vmem:[#allocation5 + $0x760] sm:$0xff]  ;;  %v201_v57 = vld [vmem:[#allocation5 + $0x370] sm:$0xff] }
  0xb9   :  { %2735 = vmatprep.subr.bf16.mxu0 %v4033_v58  ;;  %2523 = vmatpush1.bf16.msra.mxu1 %v4164_v59  ;;  %v331_v47 = vld [vmem:[#allocation5 + $0x780] sm:$0xff]  ;;  %v4221_v50 = vcombine.high %v323_v38, %v327_v43  ;;  %v4220_v54 = vcombine.low %v323_v38, %v327_v43  ;;  %v4097_v61 = vcombine.high %v197_v56, %v201_v57  ;;  %v128_v38 = vld [vmem:[#allocation5 + $0x128] sm:$0xff]  ;;  %v249_v43 = vld [vmem:[#allocation5 + $0x4f0] sm:$0xff] }
  0xba   :  { %2524 = vmatprep.subr.bf16.mxu1 %v4173_v63  ;;  %v335_v51 = vld [vmem:[#allocation5 + $0x7a0] sm:$0xff]  ;;  %v92_v63 = vld [vmem:[#allocation5 + $0x8] sm:$0xff]  ;;  %v4096_v5 = vcombine.low %v197_v56, %v201_v57  ;;  %v261_v56 = vld [vmem:[#allocation5 + $0x550] sm:$0xff] }
  0xbb   :  { %v339_v55 = vld [vmem:[#allocation5 + $0x7c0] sm:$0xff]  ;;  %v4229_v58 = vcombine.high %v331_v47, %v335_v51  ;;  %v4228_v62 = vcombine.low %v331_v47, %v335_v51  ;;  %v140_v51 = vld [vmem:[#allocation5 + $0x188] sm:$0xff]  ;;  %v265_v57 = vld [vmem:[#allocation5 + $0x570] sm:$0xff] }
  0xbc   :  { %2736 = vmatpush1.bf16.msra.mxu0 %v4032_v1  ;;  %v343_v59 = vld [vmem:[#allocation5 + $0x7e0] sm:$0xff]  ;;  %v209_v1 = vld [vmem:[#allocation5 + $0x3b0] sm:$0xff] }
  0xbd   :  { %2737 = vmatprep.subr.bf16.mxu0 %v4041_v2  ;;  %2525 = vmatpush1.bf16.msra.mxu1 %v4172_v4  ;;  %v4237_v2 = vcombine.high %v339_v55, %v343_v59  ;;  %v96_v4 = vld [vmem:[#allocation5 + $0x28] sm:$0xff]  ;;  %v4105_v6 = vcombine.high %v205_v0, %v209_v1  ;;  %v4236_v7 = vcombine.low %v339_v55, %v343_v59 }
  0xbe   :  { %2526 = vmatprep.subr.bf16.mxu1 %v4181_v8  ;;  %v213_v8 = vld [vmem:[#allocation5 + $0x3d0] sm:$0xff]  ;;  %v4104_v14 = vcombine.low %v205_v0, %v209_v1  ;;  %v148_v59 = vld [vmem:[#allocation5 + $0x1c8] sm:$0xff] }
  0xbf   :  { %v4113_v16 = vcombine.high %v213_v8, %v217_v9  ;;  %v4112_v23 = vcombine.low %v213_v8, %v217_v9  ;;  %v269_v0 = vld [vmem:[#allocation5 + $0x590] sm:$0xff] }
  0xc0   :  { %2738 = vmatpush1.bf16.msra.mxu0 %v4040_v10  ;;  %v3991_v10 = vcombine.high %v92_v63, %v96_v4  ;;  %v273_v1 = vld [vmem:[#allocation5 + $0x5b0] sm:$0xff] }
  0xc1   :  { %2739 = vmatprep.subr.bf16.mxu0 %v4049_v11  ;;  %2527 = vmatpush1.bf16.msra.mxu1 %v4180_v13  ;;  %v100_v11 = vld [vmem:[#allocation5 + $0x48] sm:$0xff]  ;;  %v277_v9 = vld [vmem:[#allocation5 + $0x5d0] sm:$0xff] }
  0xc2   :  { %2528 = vmatprep.subr.bf16.mxu1 %v4189_v17  ;;  %v104_v13 = vld [vmem:[#allocation5 + $0x68] sm:$0xff]  ;;  %v3990_v17 = vcombine.low %v92_v63, %v96_v4 }
  0xc3   :  { %v156_v4 = vld [vmem:[#allocation5 + $0x208] sm:$0xff] }
  0xc4   :  { %2740 = vmatpush1.bf16.msra.mxu0 %v4048_v19  ;;  %v225_v19 = vld [vmem:[#allocation5 + $0x430] sm:$0xff] }
  0xc5   :  { %2741 = vmatprep.subr.bf16.mxu0 %v4057_v20  ;;  %2529 = vmatpush1.bf16.msra.mxu1 %v4188_v21  ;;  %v3999_v20 = vcombine.high %v100_v11, %v104_v13  ;;  %v108_v21 = vld [vmem:[#allocation5 + $0x88] sm:$0xff]  ;;  %v4121_v24 = vcombine.high %v221_v18, %v225_v19  ;;  %v4120_v31 = vcombine.low %v221_v18, %v225_v19  ;;  %v285_v19 = vld [vmem:[#allocation5 + $0x610] sm:$0xff] }
  0xc6   :  { %2530 = vmatprep.subr.bf16.mxu1 %v4197_v25  ;;  %v3998_v25 = vcombine.low %v100_v11, %v104_v13  ;;  %v164_v13 = vld [vmem:[#allocation5 + $0x248] sm:$0xff] }
  0xc8   :  { %2742 = vmatpush1.bf16.msra.mxu0 %v4056_v27  ;;  %v233_v27 = vld [vmem:[#allocation5 + $0x470] sm:$0xff] }
  0xc9   :  { %2743 = vmatprep.subr.bf16.mxu0 %v4065_v28  ;;  %2531 = vmatpush1.bf16.msra.mxu1 %v4196_v29  ;;  %v4007_v28 = vcombine.high %v108_v21, %v112_v22  ;;  %v116_v29 = vld [vmem:[#allocation5 + $0xc8] sm:$0xff]  ;;  %v4129_v32 = vcombine.high %v229_v26, %v233_v27 }
  0xca   :  { %2532 = vmatprep.subr.bf16.mxu1 %v4205_v33  ;;  %v4006_v33 = vcombine.low %v108_v21, %v112_v22  ;;  %v4014_v41 = vcombine.low %v116_v29, %v120_v30  ;;  %v172_v22 = vld [vmem:[#allocation5 + $0x288] sm:$0xff] }
  0xcc   :  { %2744 = vmatpush1.bf16.msra.mxu0 %v4064_v35  ;;  %v241_v35 = vld [vmem:[#allocation5 + $0x4b0] sm:$0xff] }
  0xcd   :  { %2745 = vmatprep.subr.bf16.mxu0 %v4073_v36  ;;  %2533 = vmatpush1.bf16.msra.mxu1 %v4204_v37  ;;  %v4015_v36 = vcombine.high %v116_v29, %v120_v30  ;;  %v124_v37 = vld [vmem:[#allocation5 + $0x108] sm:$0xff]  ;;  %v4137_v40 = vcombine.high %v237_v34, %v241_v35  ;;  %v4136_v47 = vcombine.low %v237_v34, %v241_v35  ;;  %v301_v35 = vld [vmem:[#allocation5 + $0x690] sm:$0xff] }
  0xce   :  { %2534 = vmatprep.subr.bf16.mxu1 %v4213_v42  ;;  %v245_v42 = vld [vmem:[#allocation5 + $0x4d0] sm:$0xff]  ;;  %v4022_v48 = vcombine.low %v124_v37, %v128_v38  ;;  %v180_v30 = vld [vmem:[#allocation5 + $0x2c8] sm:$0xff] }
  0xd0   :  { %2746 = vmatpush1.bf16.msra.mxu0 %v4072_v44  ;;  %v4023_v44 = vcombine.high %v124_v37, %v128_v38  ;;  %v188_v38 = vld [vmem:[#allocation5 + $0x308] sm:$0xff] }
  0xd1   :  { %2747 = vmatprep.subr.bf16.mxu0 %v4081_v45  ;;  %2535 = vmatpush1.bf16.msra.mxu1 %v4212_v46  ;;  %v132_v45 = vld [vmem:[#allocation5 + $0x148] sm:$0xff] }
  0xd2   :  { %2536 = vmatprep.subr.bf16.mxu1 %v4221_v50  ;;  %v136_v46 = vld [vmem:[#allocation5 + $0x168] sm:$0xff]  ;;  %v257_v50 = vld [vmem:[#allocation5 + $0x530] sm:$0xff] }
  0xd3   :  { %v4030_v55 = vcombine.low %v132_v45, %v136_v46 }
  0xd4   :  { %2748 = vmatpush1.bf16.msra.mxu0 %v4080_v52  ;;  %v144_v52 = vld [vmem:[#allocation5 + $0x1a8] sm:$0xff] }
  0xd5   :  { %2749 = vmatprep.subr.bf16.mxu0 %v4089_v53  ;;  %2537 = vmatpush1.bf16.msra.mxu1 %v4220_v54  ;;  %v4144_v53 = vcombine.low %v245_v42, %v249_v43  ;;  %v4153_v54 = vcombine.high %v253_v49, %v257_v50  ;;  %v4038_v63 = vcombine.low %v140_v51, %v144_v52 }
  0xd6   :  { %2538 = vmatprep.subr.bf16.mxu1 %v4229_v58  ;;  %v4039_v58 = vcombine.high %v140_v51, %v144_v52  ;;  %v204_v52 = vld [vmem:[#allocation5 + $0x388] sm:$0xff] }
  0xd8   :  { %2750 = vmatpush1.bf16.msra.mxu0 %v4088_v60  ;;  %v152_v60 = vld [vmem:[#allocation5 + $0x1e8] sm:$0xff] }
  0xd9   :  { %2751 = vmatprep.subr.bf16.mxu0 %v4097_v61  ;;  %2539 = vmatpush1.bf16.msra.mxu1 %v4228_v62  ;;  %v4152_v61 = vcombine.low %v253_v49, %v257_v50  ;;  %v4161_v62 = vcombine.high %v261_v56, %v265_v57  ;;  %v4046_v8 = vcombine.low %v148_v59, %v152_v60  ;;  %v317_v50 = vld [vmem:[#allocation5 + $0x710] sm:$0xff] }
  0xda   :  { %2540 = vmatprep.subr.bf16.mxu1 %v4237_v2  ;;  %v4047_v2 = vcombine.high %v148_v59, %v152_v60  ;;  %v212_v60 = vld [vmem:[#allocation5 + $0x3c8] sm:$0xff] }
  0xdc   :  { %2752 = vmatpush1.bf16.msra.mxu0 %v4096_v5  ;;  %v160_v5 = vld [vmem:[#allocation5 + $0x228] sm:$0xff] }
  0xdd   :  { %2753 = vmatprep.subr.bf16.mxu0 %v4105_v6  ;;  %2541 = vmatpush1.bf16.msra.mxu1 %v4236_v7  ;;  %v4160_v6 = vcombine.low %v261_v56, %v265_v57  ;;  %v4169_v7 = vcombine.high %v269_v0, %v273_v1  ;;  %v4055_v11 = vcombine.high %v156_v4, %v160_v5  ;;  %v325_v57 = vld [vmem:[#allocation5 + $0x750] sm:$0xff] }
  0xde   :  { %2596 = vmatprep.subr.bf16.mxu1 %v3991_v10  ;;  %v281_v10 = vld [vmem:[#allocation5 + $0x5f0] sm:$0xff]  ;;  %v4054_v18 = vcombine.low %v156_v4, %v160_v5  ;;  %v220_v5 = vld [vmem:[#allocation5 + $0x408] sm:$0xff] }
  0xe0   :  { %2754 = vmatpush1.bf16.msra.mxu0 %v4104_v14  ;;  %2543 = vmatmul.mubr.bf16.vlgmr.msra.gmra.mrb[0].mxu1 %v5044_v15  ;;  %v168_v14 = vld [vmem:[#allocation5 + $0x268] sm:$0xff] }
  0xe1   :  { %2755 = vmatprep.subr.bf16.mxu0 %v4113_v16  ;;  %2597 = vmatpush1.bf16.msra.mxu1 %v3990_v17  ;;  %v4168_v16 = vcombine.low %v269_v0, %v273_v1  ;;  %v4177_v17 = vcombine.high %v277_v9, %v281_v10  ;;  %v4063_v21 = vcombine.high %v164_v13, %v168_v14  ;;  %v333_v1 = vld [vmem:[#allocation5 + $0x790] sm:$0xff] }
  0xe2   :  { %2628 = vmatprep.mubr.bf16.mxu1 %v5034_v39  ;;  %2598 = vmatprep.subr.bf16.mxu1 %v3999_v20  ;;  %v4128_v39 = vcombine.low %v229_v26, %v233_v27  ;;  %v289_v20 = vld [vmem:[#allocation5 + $0x630] sm:$0xff]  ;;  %v4062_v26 = vcombine.low %v164_v13, %v168_v14  ;;  %v228_v14 = vld [vmem:[#allocation5 + $0x448] sm:$0xff] }
  0xe3   :  { %v293_v27 = vld [vmem:[#allocation5 + $0x650] sm:$0xff] }
  0xe4   :  { %2756 = vmatpush1.bf16.msra.mxu0 %v4112_v23  ;;  %v176_v23 = vld [vmem:[#allocation5 + $0x2a8] sm:$0xff] }
  0xe5   :  { %2768 = vmatprep.subr.bf16.mxu0 %v4121_v24  ;;  %2599 = vmatpush1.bf16.msra.mxu1 %v3998_v25  ;;  %v4176_v24 = vcombine.low %v277_v9, %v281_v10  ;;  %v4185_v25 = vcombine.high %v285_v19, %v289_v20  ;;  %v4071_v29 = vcombine.high %v172_v22, %v176_v23  ;;  %v341_v10 = vld [vmem:[#allocation5 + $0x7d0] sm:$0xff] }
  0xe6   :  { %2600 = vmatprep.subr.bf16.mxu1 %v4007_v28  ;;  %v297_v28 = vld [vmem:[#allocation5 + $0x670] sm:$0xff]  ;;  %v4070_v34 = vcombine.low %v172_v22, %v176_v23  ;;  %v236_v23 = vld [vmem:[#allocation5 + $0x488] sm:$0xff] }
  0xe7   :  { %2758 = vmatmul.mubr.bf16.vlgmr.msra.gmra.mrb[4].mxu0 %v5037_v3  ;;  %v4145_v3 = vcombine.high %v245_v42, %v249_v43  ;;  %v309_v43 = vld [vmem:[#allocation5 + $0x6d0] sm:$0xff] }
  0xe8   :  { %2769 = vmatpush1.bf16.msra.mxu0 %v4120_v31  ;;  %2800 = vmatprep.mubr.bf16.mxu0 %v5039_v12  ;;  %v4031_v12 = vcombine.high %v132_v45, %v136_v46  ;;  %v184_v31 = vld [vmem:[#allocation5 + $0x2e8] sm:$0xff] }
  0xe9   :  { %2770 = vmatprep.subr.bf16.mxu0 %v4129_v32  ;;  %2601 = vmatpush1.bf16.msra.mxu1 %v4006_v33  ;;  %v4184_v32 = vcombine.low %v285_v19, %v289_v20  ;;  %v4193_v33 = vcombine.high %v293_v27, %v297_v28  ;;  %v4079_v37 = vcombine.high %v180_v30, %v184_v31  ;;  %v196_v46 = vld [vmem:[#allocation5 + $0x348] sm:$0xff]  ;;  %v349_v20 = vld [vmem:[#allocation5 + $0x810] sm:$0xff] }
  0xea   :  { %2602 = vmatprep.subr.bf16.mxu1 %v4015_v36  ;;  %v305_v36 = vld [vmem:[#allocation5 + $0x6b0] sm:$0xff]  ;;  %v4078_v42 = vcombine.low %v180_v30, %v184_v31 }
  0xeb   :  { %v361_v30 = vld [vmem:[#allocation5 + $0x870] sm:$0xff] }
  0xec   :  { %2771 = vmatpush1.bf16.msra.mxu0 %v4128_v39  ;;  %v192_v39 = vld [vmem:[#allocation5 + $0x328] sm:$0xff]  ;;  %v4780_v31 = vld [vmem:[#allocation2 + $0xc] ss:$24 sps:$4 sm:$0xff]  }
  0xed   :  { %2772 = vmatprep.subr.bf16.mxu0 %v4137_v40  ;;  %2603 = vmatpush1.bf16.msra.mxu1 %v4014_v41  ;;  %v4192_v40 = vcombine.low %v293_v27, %v297_v28  ;;  %v4201_v41 = vcombine.high %v301_v35, %v305_v36  ;;  %v4087_v45 = vcombine.high %v188_v38, %v192_v39 }
  0xee   :  { %2604 = vmatprep.subr.bf16.mxu1 %v4023_v44  ;;  %v313_v44 = vld [vmem:[#allocation5 + $0x6f0] sm:$0xff]  ;;  %v4086_v49 = vcombine.low %v188_v38, %v192_v39 }
  0xef   :  { %v365_v38 = vld [vmem:[#allocation5 + $0x890] sm:$0xff] }
  0xf0   :  { %2773 = vmatpush1.bf16.msra.mxu0 %v4136_v47  ;;  %v200_v47 = vld [vmem:[#allocation5 + $0x368] sm:$0xff]  ;;  %v369_v39 = vld [vmem:[#allocation5 + $0x8b0] sm:$0xff] }
  0xf1   :  { %2774 = vmatprep.subr.bf16.mxu0 %v4145_v3  ;;  %2605 = vmatpush1.bf16.msra.mxu1 %v4022_v48  ;;  %v4200_v3 = vcombine.low %v301_v35, %v305_v36  ;;  %v4209_v48 = vcombine.high %v309_v43, %v313_v44  ;;  %v4095_v51 = vcombine.high %v196_v46, %v200_v47 }
  0xf2   :  { %2606 = vmatprep.subr.bf16.mxu1 %v4031_v12  ;;  %v321_v12 = vld [vmem:[#allocation5 + $0x730] sm:$0xff]  ;;  %v4094_v56 = vcombine.low %v196_v46, %v200_v47 }
  0xf3   :  { %v373_v47 = vld [vmem:[#allocation5 + $0x8d0] sm:$0xff] }
  0xf4   :  { %2775 = vmatpush1.bf16.msra.mxu0 %v4144_v53  ;;  %v208_v53 = vld [vmem:[#allocation5 + $0x3a8] sm:$0xff] }
  0xf5   :  { %2776 = vmatprep.subr.bf16.mxu0 %v4153_v54  ;;  %2607 = vmatpush1.bf16.msra.mxu1 %v4030_v55  ;;  %v4208_v54 = vcombine.low %v309_v43, %v313_v44  ;;  %v4217_v55 = vcombine.high %v317_v50, %v321_v12  ;;  %v4103_v59 = vcombine.high %v204_v52, %v208_v53  ;;  %v5051_v44 = vld [vmem:[#allocation2 + $0x14] ss:$24 sps:$4 sm:$0xff]  }
  0xf6   :  { %2608 = vmatprep.subr.bf16.mxu1 %v4039_v58  ;;  %v329_v58 = vld [vmem:[#allocation5 + $0x770] sm:$0xff]  ;;  %v4102_v0 = vcombine.low %v204_v52, %v208_v53 }
  0xf7   :  { %v381_v53 = vld [vmem:[#allocation5 + $0x910] sm:$0xff] }
  0xf8   :  { %2777 = vmatpush1.bf16.msra.mxu0 %v4152_v61  ;;  %v216_v61 = vld [vmem:[#allocation5 + $0x3e8] sm:$0xff] }
  0xf9   :  { %2778 = vmatprep.subr.bf16.mxu0 %v4161_v62  ;;  %2609 = vmatpush1.bf16.msra.mxu1 %v4038_v63  ;;  %v4216_v62 = vcombine.low %v317_v50, %v321_v12  ;;  %v4225_v63 = vcombine.high %v325_v57, %v329_v58  ;;  %v4111_v4 = vcombine.high %v212_v60, %v216_v61  ;;  %v264_v50 = vld [vmem:[#allocation5 + $0x568] sm:$0xff] }
  0xfa   :  { %2610 = vmatprep.subr.bf16.mxu1 %v4047_v2  ;;  %v337_v2 = vld [vmem:[#allocation5 + $0x7b0] sm:$0xff]  ;;  %v4110_v9 = vcombine.low %v212_v60, %v216_v61  ;;  %v4264_v12 = vcombine.low %v365_v38, %v369_v39 }
  0xfb   :  { %v389_v61 = vld [vmem:[#allocation5 + $0x950] sm:$0xff] }
  0xfc   :  { %2779 = vmatpush1.bf16.msra.mxu0 %v4160_v6  ;;  %v224_v6 = vld [vmem:[#allocation5 + $0x428] sm:$0xff] }
  0xfd   :  { %2780 = vmatprep.subr.bf16.mxu0 %v4169_v7  ;;  %2611 = vmatpush1.bf16.msra.mxu1 %v4046_v8  ;;  %v4224_v7 = vcombine.low %v325_v57, %v329_v58  ;;  %v4233_v8 = vcombine.high %v333_v1, %v337_v2  ;;  %v4119_v13 = vcombine.high %v220_v5, %v224_v6  ;;  %v272_v57 = vld [vmem:[#allocation5 + $0x5a8] sm:$0xff] }
  0xfe   :  { %2612 = vmatprep.subr.bf16.mxu1 %v4055_v11  ;;  %v345_v11 = vld [vmem:[#allocation5 + $0x7f0] sm:$0xff]  ;;  %v4118_v19 = vcombine.low %v220_v5, %v224_v6 }
  0xff   :  { %v397_v6 = vld [vmem:[#allocation5 + $0x990] sm:$0xff] }
 0x100   :  { %2781 = vmatpush1.bf16.msra.mxu0 %v4168_v16  ;;  %v232_v16 = vld [vmem:[#allocation5 + $0x468] sm:$0xff] }
 0x101   :  { %2782 = vmatprep.subr.bf16.mxu0 %v4177_v17  ;;  %2613 = vmatpush1.bf16.msra.mxu1 %v4054_v18  ;;  %v4232_v17 = vcombine.low %v333_v1, %v337_v2  ;;  %v4241_v18 = vcombine.high %v341_v10, %v345_v11  ;;  %v4127_v22 = vcombine.high %v228_v14, %v232_v16  ;;  %v280_v1 = vld [vmem:[#allocation5 + $0x5e8] sm:$0xff] }
 0x102   :  { %2614 = vmatprep.subr.bf16.mxu1 %v4063_v21  ;;  %v353_v21 = vld [vmem:[#allocation5 + $0x830] sm:$0xff]  ;;  %v4126_v28 = vcombine.low %v228_v14, %v232_v16 }
 0x103   :  { %v4249_v27 = vcombine.high %v349_v20, %v353_v21  ;;  %v4248_v35 = vcombine.low %v349_v20, %v353_v21  ;;  %v405_v16 = vld [vmem:[#allocation5 + $0x9d0] sm:$0xff]  ;;  %v296_v20 = vld [vmem:[#allocation5 + $0x668] sm:$0xff] }
 0x104   :  { %2783 = vmatpush1.bf16.msra.mxu0 %v4176_v24  ;;  %v240_v24 = vld [vmem:[#allocation5 + $0x4a8] sm:$0xff] }
 0x105   :  { %2784 = vmatprep.subr.bf16.mxu0 %v4185_v25  ;;  %2615 = vmatpush1.bf16.msra.mxu1 %v4062_v26  ;;  %v4240_v25 = vcombine.low %v341_v10, %v345_v11  ;;  %v4779_v26 = vld [vmem:[#allocation2] ss:$24 sps:$4 sm:$0xff]  }
 0x106   :  { %2616 = vmatprep.subr.bf16.mxu1 %v4071_v29  ;;  %v357_v29 = vld [vmem:[#allocation5 + $0x850] sm:$0xff]  ;;  %v288_v10 = vld [vmem:[#allocation5 + $0x628] sm:$0xff] }
 0x107   :  { %v4257_v36 = vcombine.high %v357_v29, %v361_v30  ;;  %v4256_v43 = vcombine.low %v357_v29, %v361_v30 }
 0x108   :  { %2785 = vmatpush1.bf16.msra.mxu0 %v4184_v32  ;;  %v4135_v32 = vcombine.high %v236_v23, %v240_v24 }
 0x109   :  { %2786 = vmatprep.subr.bf16.mxu0 %v4193_v33  ;;  %2617 = vmatpush1.bf16.msra.mxu1 %v4070_v34  ;;  %v244_v33 = vld [vmem:[#allocation5 + $0x4c8] sm:$0xff] }
 0x10a   :  { %2618 = vmatprep.subr.bf16.mxu1 %v4079_v37  ;;  %v248_v34 = vld [vmem:[#allocation5 + $0x4e8] sm:$0xff]  ;;  %v4134_v37 = vcombine.low %v236_v23, %v240_v24  ;;  %v413_v24 = vld [vmem:[#allocation5 + $0xa10] sm:$0xff] }
 0x10b   :  { %v4142_v46 = vcombine.low %v244_v33, %v248_v34 }
 0x10c   :  { %2787 = vmatpush1.bf16.msra.mxu0 %v4192_v40  ;;  %v4143_v40 = vcombine.high %v244_v33, %v248_v34  ;;  %v425_v33 = vld [vmem:[#allocation5 + $0xa70] sm:$0xff] }
 0x10d   :  { %2788 = vmatprep.subr.bf16.mxu0 %v4201_v41  ;;  %2619 = vmatpush1.bf16.msra.mxu1 %v4078_v42  ;;  %v252_v41 = vld [vmem:[#allocation5 + $0x508] sm:$0xff] }
 0x10e   :  { %2620 = vmatprep.subr.bf16.mxu1 %v4087_v45  ;;  %v256_v42 = vld [vmem:[#allocation5 + $0x528] sm:$0xff]  ;;  %v4265_v45 = vcombine.high %v365_v38, %v369_v39 }
 0x10f   :  { %v4150_v52 = vcombine.low %v252_v41, %v256_v42 }
 0x110   :  { %2789 = vmatpush1.bf16.msra.mxu0 %v4200_v3  ;;  %v377_v3 = vld [vmem:[#allocation5 + $0x8f0] sm:$0xff] }
 0x111   :  { %2790 = vmatprep.subr.bf16.mxu0 %v4209_v48  ;;  %2621 = vmatpush1.bf16.msra.mxu1 %v4086_v49  ;;  %v4151_v48 = vcombine.high %v252_v41, %v256_v42  ;;  %v260_v49 = vld [vmem:[#allocation5 + $0x548] sm:$0xff]  ;;  %v4272_v58 = vcombine.low %v373_v47, %v377_v3  ;;  %v433_v41 = vld [vmem:[#allocation5 + $0xab0] sm:$0xff] }
 0x112   :  { %2622 = vmatprep.subr.bf16.mxu1 %v4095_v51  ;;  %v4273_v51 = vcombine.high %v373_v47, %v377_v3  ;;  %v4158_v60 = vcombine.low %v260_v49, %v264_v50 }
 0x114   :  { %2791 = vmatpush1.bf16.msra.mxu0 %v4208_v54  ;;  %v385_v54 = vld [vmem:[#allocation5 + $0x930] sm:$0xff] }
 0x115   :  { %2792 = vmatprep.subr.bf16.mxu0 %v4217_v55  ;;  %2623 = vmatpush1.bf16.msra.mxu1 %v4094_v56  ;;  %v4159_v55 = vcombine.high %v260_v49, %v264_v50  ;;  %v268_v56 = vld [vmem:[#allocation5 + $0x588] sm:$0xff]  ;;  %v4280_v2 = vcombine.low %v381_v53, %v385_v54  ;;  %v441_v49 = vld [vmem:[#allocation5 + $0xaf0] sm:$0xff] }
 0x116   :  { %2624 = vmatprep.subr.bf16.mxu1 %v4103_v59  ;;  %v4281_v59 = vcombine.high %v381_v53, %v385_v54  ;;  %v4166_v5 = vcombine.low %v268_v56, %v272_v57 }
 0x118   :  { %2793 = vmatpush1.bf16.msra.mxu0 %v4216_v62  ;;  %v393_v62 = vld [vmem:[#allocation5 + $0x970] sm:$0xff] }
 0x119   :  { %2794 = vmatprep.subr.bf16.mxu0 %v4225_v63  ;;  %2625 = vmatpush1.bf16.msra.mxu1 %v4102_v0  ;;  %v4167_v63 = vcombine.high %v268_v56, %v272_v57  ;;  %v276_v0 = vld [vmem:[#allocation5 + $0x5c8] sm:$0xff]  ;;  %v4288_v11 = vcombine.low %v389_v61, %v393_v62  ;;  %v449_v56 = vld [vmem:[#allocation5 + $0xb30] sm:$0xff] }
 0x11a   :  { %2626 = vmatprep.subr.bf16.mxu1 %v4111_v4  ;;  %v4289_v4 = vcombine.high %v389_v61, %v393_v62  ;;  %v4174_v14 = vcombine.low %v276_v0, %v280_v1 }
 0x11c   :  { %2795 = vmatpush1.bf16.msra.mxu0 %v4224_v7  ;;  %v401_v7 = vld [vmem:[#allocation5 + $0x9b0] sm:$0xff] }
 0x11d   :  { %2796 = vmatprep.subr.bf16.mxu0 %v4233_v8  ;;  %2627 = vmatpush1.bf16.msra.mxu1 %v4110_v9  ;;  %v4175_v8 = vcombine.high %v276_v0, %v280_v1  ;;  %v284_v9 = vld [vmem:[#allocation5 + $0x608] sm:$0xff]  ;;  %v4296_v21 = vcombine.low %v397_v6, %v401_v7  ;;  %v457_v0 = vld [vmem:[#allocation5 + $0xb70] sm:$0xff] }
 0x11e   :  { %2639 = vmatprep.subr.bf16.mxu1 %v4119_v13  ;;  %v4297_v13 = vcombine.high %v397_v6, %v401_v7  ;;  %v4182_v23 = vcombine.low %v284_v9, %v288_v10 }
 0x120   :  { %2797 = vmatpush1.bf16.msra.mxu0 %v4232_v17  ;;  %2629 = vmatmul.mubr.bf16.vlgmr.msra.gmra.mrb[4].mxu1 %v4779_v26  ;;  %v409_v17 = vld [vmem:[#allocation5 + $0x9f0] sm:$0xff] }
 0x121   :  { %2798 = vmatprep.subr.bf16.mxu0 %v4241_v18  ;;  %2640 = vmatpush1.bf16.msra.mxu1 %v4118_v19  ;;  %v4183_v18 = vcombine.high %v284_v9, %v288_v10  ;;  %v292_v19 = vld [vmem:[#allocation5 + $0x648] sm:$0xff]  ;;  %v4304_v29 = vcombine.low %v405_v16, %v409_v17  ;;  %v465_v9 = vld [vmem:[#allocation5 + $0xbb0] sm:$0xff] }
 0x122   :  { %2671 = vmatprep.mubr.bf16.mxu1 %v4780_v31  ;;  %2641 = vmatprep.subr.bf16.mxu1 %v4127_v22  ;;  %v4305_v22 = vcombine.high %v405_v16, %v409_v17  ;;  %v4191_v26 = vcombine.high %v292_v19, %v296_v20  ;;  %v4190_v31 = vcombine.low %v292_v19, %v296_v20  ;;  %v473_v19 = vld [vmem:[#allocation5 + $0xbf0] sm:$0xff] }
 0x124   :  { %2799 = vmatpush1.bf16.msra.mxu0 %v4240_v25  ;;  %v417_v25 = vld [vmem:[#allocation5 + $0xa30] sm:$0xff] }
 0x125   :  { %2811 = vmatprep.subr.bf16.mxu0 %v4249_v27  ;;  %2642 = vmatpush1.bf16.msra.mxu1 %v4126_v28  ;;  %v300_v27 = vld [vmem:[#allocation5 + $0x688] sm:$0xff]  ;;  %v4313_v30 = vcombine.high %v413_v24, %v417_v25 }
 0x126   :  { %2643 = vmatprep.subr.bf16.mxu1 %v4135_v32  ;;  %v304_v28 = vld [vmem:[#allocation5 + $0x6a8] sm:$0xff]  ;;  %v421_v32 = vld [vmem:[#allocation5 + $0xa50] sm:$0xff] }
 0x127   :  { %2801 = vmatmul.mubr.bf16.vlgmr.msra.gmra.mrb[4].mxu0 %v5044_v15  ;;  %v4199_v34 = vcombine.high %v300_v27, %v304_v28  ;;  %v4321_v38 = vcombine.high %v421_v32, %v425_v33  ;;  %v4198_v39 = vcombine.low %v300_v27, %v304_v28  ;;  %v364_v27 = vld [vmem:[#allocation5 + $0x888] sm:$0xff] }
 0x128   :  { %2812 = vmatpush1.bf16.msra.mxu0 %v4248_v35  ;;  %2843 = vmatprep.mubr.bf16.mxu0 %v5051_v44  ;;  %v308_v35 = vld [vmem:[#allocation5 + $0x6c8] sm:$0xff] }
 0x129   :  { %2813 = vmatprep.subr.bf16.mxu0 %v4257_v36  ;;  %2644 = vmatpush1.bf16.msra.mxu1 %v4134_v37  ;;  %v312_v36 = vld [vmem:[#allocation5 + $0x6e8] sm:$0xff]  ;;  %v4312_v37 = vcombine.low %v413_v24, %v417_v25 }
 0x12a   :  { %2645 = vmatprep.subr.bf16.mxu1 %v4143_v40  ;;  %v429_v40 = vld [vmem:[#allocation5 + $0xa90] sm:$0xff]  ;;  %v4207_v42 = vcombine.high %v308_v35, %v312_v36  ;;  %v4206_v3 = vcombine.low %v308_v35, %v312_v36  ;;  %v368_v28 = vld [vmem:[#allocation5 + $0x8a8] sm:$0xff]  ;;  %v4592_v36 = vld [vmem:[#allocation8 + $0x14] ss:$8 sps:$4 sm:$0xff]  }
 0x12b   :  { %v4329_v47 = vcombine.high %v429_v40, %v433_v41  ;;  %v4587_v35 = vld [vmem:[#allocation8] ss:$8 sps:$4 sm:$0xff]  }
 0x12c   :  { %2814 = vmatpush1.bf16.msra.mxu0 %v4256_v43  ;;  %v316_v43 = vld [vmem:[#allocation5 + $0x708] sm:$0xff] }
 0x12d   :  { %2815 = vmatprep.subr.bf16.mxu0 %v4265_v45  ;;  %2646 = vmatpush1.bf16.msra.mxu1 %v4142_v46  ;;  %v320_v45 = vld [vmem:[#allocation5 + $0x728] sm:$0xff]  ;;  %v4320_v46 = vcombine.low %v421_v32, %v425_v33  ;;  %v4263_v32 = vcombine.high %v364_v27, %v368_v28 }
 0x12e   :  { %2647 = vmatprep.subr.bf16.mxu1 %v4151_v48  ;;  %v437_v48 = vld [vmem:[#allocation5 + $0xad0] sm:$0xff]  ;;  %v4215_v50 = vcombine.high %v316_v43, %v320_v45  ;;  %v4214_v54 = vcombine.low %v316_v43, %v320_v45  ;;  %v372_v33 = vld [vmem:[#allocation5 + $0x8c8] sm:$0xff] }
 0x12f   :  { %v4337_v53 = vcombine.high %v437_v48, %v441_v49  ;;  %v388_v45 = vld [vmem:[#allocation5 + $0x948] sm:$0xff] }
 0x130   :  { %2816 = vmatpush1.bf16.msra.mxu0 %v4264_v12  ;;  %v324_v12 = vld [vmem:[#allocation5 + $0x748] sm:$0xff] }
 0x131   :  { %2817 = vmatprep.subr.bf16.mxu0 %v4273_v51  ;;  %2648 = vmatpush1.bf16.msra.mxu1 %v4150_v52  ;;  %v328_v51 = vld [vmem:[#allocation5 + $0x768] sm:$0xff]  ;;  %v4328_v52 = vcombine.low %v429_v40, %v433_v41 }
 0x132   :  { %2649 = vmatprep.subr.bf16.mxu1 %v4159_v55  ;;  %v445_v55 = vld [vmem:[#allocation5 + $0xb10] sm:$0xff]  ;;  %v4223_v57 = vcombine.high %v324_v12, %v328_v51  ;;  %v4222_v62 = vcombine.low %v324_v12, %v328_v51  ;;  %v384_v40 = vld [vmem:[#allocation5 + $0x928] sm:$0xff]  ;;  %v4596_v51 = vld [vmem:[#allocation8 + $0x30] ss:$8 sps:$4 sm:$0xff]  }
 0x133   :  { %v4345_v61 = vcombine.high %v445_v55, %v449_v56  ;;  %v4595_v41 = vld [vmem:[#allocation8 + $0x24] ss:$8 sps:$4 sm:$0xff]  }
 0x134   :  { %2818 = vmatpush1.bf16.msra.mxu0 %v4272_v58  ;;  %v332_v58 = vld [vmem:[#allocation5 + $0x788] sm:$0xff] }
 0x135   :  { %2819 = vmatprep.subr.bf16.mxu0 %v4281_v59  ;;  %2650 = vmatpush1.bf16.msra.mxu1 %v4158_v60  ;;  %v336_v59 = vld [vmem:[#allocation5 + $0x7a8] sm:$0xff]  ;;  %v4336_v60 = vcombine.low %v437_v48, %v441_v49 }
 0x136   :  { %2651 = vmatprep.subr.bf16.mxu1 %v4167_v63  ;;  %v453_v63 = vld [vmem:[#allocation5 + $0xb50] sm:$0xff]  ;;  %v4231_v1 = vcombine.high %v332_v58, %v336_v59  ;;  %v4230_v7 = vcombine.low %v332_v58, %v336_v59  ;;  %v400_v12 = vld [vmem:[#allocation5 + $0x9a8] sm:$0xff]  ;;  %v4604_v58 = vld [vmem:[#allocation8 + $0x54] ss:$8 sps:$4 sm:$0xff]  }
 0x137   :  { %v4353_v6 = vcombine.high %v453_v63, %v457_v0 }
 0x138   :  { %2820 = vmatpush1.bf16.msra.mxu0 %v4280_v2  ;;  %v340_v2 = vld [vmem:[#allocation5 + $0x7c8] sm:$0xff] }
 0x139   :  { %2821 = vmatprep.subr.bf16.mxu0 %v4289_v4  ;;  %2652 = vmatpush1.bf16.msra.mxu1 %v4166_v5  ;;  %v344_v4 = vld [vmem:[#allocation5 + $0x7e8] sm:$0xff]  ;;  %v4344_v5 = vcombine.low %v445_v55, %v449_v56 }
 0x13a   :  { %2653 = vmatprep.subr.bf16.mxu1 %v4175_v8  ;;  %v461_v8 = vld [vmem:[#allocation5 + $0xb90] sm:$0xff]  ;;  %v4239_v10 = vcombine.high %v340_v2, %v344_v4  ;;  %v4238_v17 = vcombine.low %v340_v2, %v344_v4  ;;  %v404_v55 = vld [vmem:[#allocation5 + $0x9c8] sm:$0xff] }
 0x13b   :  { %v4361_v16 = vcombine.high %v461_v8, %v465_v9  ;;  %v408_v56 = vld [vmem:[#allocation5 + $0x9e8] sm:$0xff] }
 0x13c   :  { %2822 = vmatpush1.bf16.msra.mxu0 %v4288_v11  ;;  %v348_v11 = vld [vmem:[#allocation5 + $0x808] sm:$0xff] }
 0x13d   :  { %2823 = vmatprep.subr.bf16.mxu0 %v4297_v13  ;;  %2654 = vmatpush1.bf16.msra.mxu1 %v4174_v14  ;;  %v352_v13 = vld [vmem:[#allocation5 + $0x828] sm:$0xff]  ;;  %v4352_v14 = vcombine.low %v453_v63, %v457_v0  ;;  %v4602_v63 = vld [vmem:[#allocation8 + $0x50] ss:$8 sps:$4 sm:$0xff]  }
 0x13e   :  { %2655 = vmatprep.subr.bf16.mxu1 %v4183_v18  ;;  %v469_v18 = vld [vmem:[#allocation5 + $0xbd0] sm:$0xff]  ;;  %v4247_v20 = vcombine.high %v348_v11, %v352_v13  ;;  %v4246_v25 = vcombine.low %v348_v11, %v352_v13 }
 0x13f   :  { %v4369_v24 = vcombine.high %v469_v18, %v473_v19  ;;  %v4607_v0 = vld [vmem:[#allocation8 + $0x64] ss:$8 sps:$4 sm:$0xff]  }
 0x140   :  { %2824 = vmatpush1.bf16.msra.mxu0 %v4296_v21  ;;  %v356_v21 = vld [vmem:[#allocation5 + $0x848] sm:$0xff] }
 0x141   :  { %2825 = vmatprep.subr.bf16.mxu0 %v4305_v22  ;;  %2656 = vmatpush1.bf16.msra.mxu1 %v4182_v23  ;;  %v360_v22 = vld [vmem:[#allocation5 + $0x868] sm:$0xff]  ;;  %v4360_v23 = vcombine.low %v461_v8, %v465_v9 }
 0x142   :  { %2657 = vmatprep.subr.bf16.mxu1 %v4191_v26  ;;  %v4255_v26 = vcombine.high %v356_v21, %v360_v22  ;;  %v4605_v8 = vld [vmem:[#allocation8 + $0x60] ss:$8 sps:$4 sm:$0xff]  }
 0x144   :  { %2826 = vmatpush1.bf16.msra.mxu0 %v4304_v29  ;;  %v4368_v29 = vcombine.low %v469_v18, %v473_v19  ;;  %v4608_v18 = vld [vmem:[#allocation8 + $0x70] ss:$8 sps:$4 sm:$0xff]   ;;  %v4613_v19 = vld [vmem:[#allocation8 + $0x84] ss:$8 sps:$4 sm:$0xff]  }
 0x145   :  { %2827 = vmatprep.subr.bf16.mxu0 %v4313_v30  ;;  %2658 = vmatpush1.bf16.msra.mxu1 %v4190_v31  ;;  %v4589_v30 = vld [vmem:[#allocation8 + $0x4] ss:$8 sps:$4 sm:$0xff]   ;;  %v4254_v31 = vcombine.low %v356_v21, %v360_v22 }
 0x146   :  { %2659 = vmatprep.subr.bf16.mxu1 %v4199_v34  ;;  %v376_v34 = vld [vmem:[#allocation5 + $0x8e8] sm:$0xff] }
 0x147   :  { %v436_v22 = vld [vmem:[#allocation5 + $0xac8] sm:$0xff] }
 0x148   :  { %2828 = vmatpush1.bf16.msra.mxu0 %v4312_v37  ;;  %v4262_v37 = vcombine.low %v364_v27, %v368_v28  ;;  %v444_v28 = vld [vmem:[#allocation5 + $0xb08] sm:$0xff] }
 0x149   :  { %2829 = vmatprep.subr.bf16.mxu0 %v4321_v38  ;;  %2660 = vmatpush1.bf16.msra.mxu1 %v4198_v39  ;;  %v4271_v38 = vcombine.high %v372_v33, %v376_v34  ;;  %v5056_v39 = vld [vmem:[#allocation2 + $0x10] ss:$24 sps:$4 sm:$0xff]  }
 0x14a   :  { %2661 = vmatprep.subr.bf16.mxu1 %v4207_v42  ;;  %v4270_v42 = vcombine.low %v372_v33, %v376_v34  ;;  %v452_v34 = vld [vmem:[#allocation5 + $0xb48] sm:$0xff] }
 0x14c   :  { %2830 = vmatpush1.bf16.msra.mxu0 %v4320_v46  ;;  %v392_v46 = vld [vmem:[#allocation5 + $0x968] sm:$0xff] }
 0x14d   :  { %2831 = vmatprep.subr.bf16.mxu0 %v4329_v47  ;;  %2662 = vmatpush1.bf16.msra.mxu1 %v4206_v3  ;;  %v4593_v47 = vld [vmem:[#allocation8 + $0x20] ss:$8 sps:$4 sm:$0xff]   ;;  %v4598_v3 = vld [vmem:[#allocation8 + $0x34] ss:$8 sps:$4 sm:$0xff]   ;;  %v4287_v49 = vcombine.high %v388_v45, %v392_v46 }
 0x14e   :  { %2663 = vmatprep.subr.bf16.mxu1 %v4215_v50  ;;  %v396_v50 = vld [vmem:[#allocation5 + $0x988] sm:$0xff] }
 0x14f   :  { %v4294_v59 = vcombine.low %v396_v50, %v400_v12 }
 0x150   :  { %2832 = vmatpush1.bf16.msra.mxu0 %v4328_v52  ;;  %v4601_v52 = vld [vmem:[#allocation8 + $0x44] ss:$8 sps:$4 sm:$0xff]  }
 0x151   :  { %2833 = vmatprep.subr.bf16.mxu0 %v4337_v53  ;;  %2664 = vmatpush1.bf16.msra.mxu1 %v4214_v54  ;;  %v4286_v53 = vcombine.low %v388_v45, %v392_v46  ;;  %v4295_v54 = vcombine.high %v396_v50, %v400_v12  ;;  %v468_v46 = vld [vmem:[#allocation5 + $0xbc8] sm:$0xff]  ;;  %v94_v12 = vld [vmem:[#allocation5 + $0x18] sm:$0xff] }
 0x152   :  { %2665 = vmatprep.subr.bf16.mxu1 %v4223_v57  ;;  %v4599_v57 = vld [vmem:[#allocation8 + $0x40] ss:$8 sps:$4 sm:$0xff]  }
 0x154   :  { %2834 = vmatpush1.bf16.msra.mxu0 %v4336_v60  ;;  %v4303_v60 = vcombine.high %v404_v55, %v408_v56 }
 0x155   :  { %2835 = vmatprep.subr.bf16.mxu0 %v4345_v61  ;;  %2666 = vmatpush1.bf16.msra.mxu1 %v4222_v62  ;;  %v412_v61 = vld [vmem:[#allocation5 + $0xa08] sm:$0xff] }
 0x156   :  { %2667 = vmatprep.subr.bf16.mxu1 %v4231_v1  ;;  %v416_v62 = vld [vmem:[#allocation5 + $0xa28] sm:$0xff]  ;;  %v4302_v1 = vcombine.low %v404_v55, %v408_v56  ;;  %v102_v56 = vld [vmem:[#allocation5 + $0x58] sm:$0xff] }
 0x157   :  { %v4311_v4 = vcombine.high %v412_v61, %v416_v62  ;;  %v4310_v13 = vcombine.low %v412_v61, %v416_v62  ;;  %v110_v62 = vld [vmem:[#allocation5 + $0x98] sm:$0xff] }
 0x158   :  { %2836 = vmatpush1.bf16.msra.mxu0 %v4344_v5 }
 0x159   :  { %2837 = vmatprep.subr.bf16.mxu0 %v4353_v6  ;;  %2668 = vmatpush1.bf16.msra.mxu1 %v4230_v7  ;;  %v420_v6 = vld [vmem:[#allocation5 + $0xa48] sm:$0xff] }
 0x15a   :  { %2669 = vmatprep.subr.bf16.mxu1 %v4239_v10  ;;  %v424_v7 = vld [vmem:[#allocation5 + $0xa68] sm:$0xff]  ;;  %v4610_v10 = vld [vmem:[#allocation8 + $0x74] ss:$8 sps:$4 sm:$0xff]  }
 0x15c   :  { %2838 = vmatpush1.bf16.msra.mxu0 %v4352_v14  ;;  %v4319_v14 = vcombine.high %v420_v6, %v424_v7 }
 0x15d   :  { %2839 = vmatprep.subr.bf16.mxu0 %v4361_v16  ;;  %2670 = vmatpush1.bf16.msra.mxu1 %v4238_v17  ;;  %v428_v16 = vld [vmem:[#allocation5 + $0xa88] sm:$0xff] }
 0x15e   :  { %2682 = vmatprep.subr.bf16.mxu1 %v4247_v20  ;;  %v432_v17 = vld [vmem:[#allocation5 + $0xaa8] sm:$0xff]  ;;  %v4318_v20 = vcombine.low %v420_v6, %v424_v7  ;;  %v118_v7 = vld [vmem:[#allocation5 + $0xd8] sm:$0xff] }
 0x15f   :  { %v4327_v21 = vcombine.high %v428_v16, %v432_v17 }
 0x160   :  { %2840 = vmatpush1.bf16.msra.mxu0 %v4360_v23  ;;  %2672 = vmatmul.mubr.bf16.vlgmr.msra.gmra.mrb[4].mxu1 %v5044_v15  ;;  %v380_v15 = vld [vmem:[#allocation5 + $0x908] sm:$0xff] }
 0x161   :  { %2841 = vmatprep.subr.bf16.mxu0 %v4369_v24  ;;  %2683 = vmatpush1.bf16.msra.mxu1 %v4246_v25  ;;  %v4279_v43 = vcombine.high %v380_v15, %v384_v40  ;;  %v4278_v48 = vcombine.low %v380_v15, %v384_v40  ;;  %v440_v23 = vld [vmem:[#allocation5 + $0xae8] sm:$0xff]  ;;  %v4616_v25 = vld [vmem:[#allocation8 + $0x94] ss:$8 sps:$4 sm:$0xff]  }
 0x162   :  { %2714 = vmatprep.mubr.bf16.mxu1 %v5051_v44  ;;  %2684 = vmatprep.subr.bf16.mxu1 %v4255_v26  ;;  %v4590_v44 = vld [vmem:[#allocation8 + $0x10] ss:$8 sps:$4 sm:$0xff]   ;;  %v4611_v24 = vld [vmem:[#allocation8 + $0x80] ss:$8 sps:$4 sm:$0xff]   ;;  %v4326_v26 = vcombine.low %v428_v16, %v432_v17  ;;  %v4335_v27 = vcombine.high %v436_v22, %v440_v23 }
 0x163   :  { %v460_v40 = vld [vmem:[#allocation5 + $0xb88] sm:$0xff]  ;;  %v126_v16 = vld [vmem:[#allocation5 + $0x118] sm:$0xff] }
 0x164   :  { %2842 = vmatpush1.bf16.msra.mxu0 %v4368_v29  ;;  %v448_v29 = vld [vmem:[#allocation5 + $0xb28] sm:$0xff]  ;;  %v130_v17 = vld [vmem:[#allocation5 + $0x138] sm:$0xff] }
 0x165   :  { %3787 = vmatprep.subr.bf16.mxu0 %v4589_v30  ;;  %2685 = vmatpush1.bf16.msra.mxu1 %v4254_v31  ;;  %v4614_v30 = vld [vmem:[#allocation8 + $0x90] ss:$8 sps:$4 sm:$0xff]   ;;  %v4619_v31 = vld [vmem:[#allocation8 + $0xa4] ss:$8 sps:$4 sm:$0xff]   ;;  %v4343_v33 = vcombine.high %v444_v28, %v448_v29 }
 0x166   :  { %2686 = vmatprep.subr.bf16.mxu1 %v4263_v32  ;;  %v4334_v32 = vcombine.low %v436_v22, %v440_v23  ;;  %v4026_v23 = vcombine.low %v126_v16, %v130_v17 }
 0x167   :  { %2844 = vmatmul.mubr.bf16.vlgmr.msra.gmra.mrb[4].mxu0 %v5056_v39 }
 0x168   :  { %3788 = vmatpush1.bf16.msra.mxu0 %v4587_v35  ;;  %v456_v35 = vld [vmem:[#allocation5 + $0xb68] sm:$0xff] }
 0x169   :  { %3789 = vmatprep.subr.bf16.mxu0 %v4592_v36  ;;  %2687 = vmatpush1.bf16.msra.mxu1 %v4262_v37  ;;  %v4617_v36 = vld [vmem:[#allocation8 + $0xa0] ss:$8 sps:$4 sm:$0xff]   ;;  %v4622_v37 = vld [vmem:[#allocation8 + $0xb4] ss:$8 sps:$4 sm:$0xff]   ;;  %v4351_v15 = vcombine.high %v452_v34, %v456_v35 }
 0x16a   :  { %2688 = vmatprep.subr.bf16.mxu1 %v4271_v38  ;;  %v4342_v38 = vcombine.low %v444_v28, %v448_v29  ;;  %v146_v28 = vld [vmem:[#allocation5 + $0x1b8] sm:$0xff] }
 0x16c   :  { %3790 = vmatpush1.bf16.msra.mxu0 %v4590_v44  ;;  %v464_v44 = vld [vmem:[#allocation5 + $0xba8] sm:$0xff] }
 0x16d   :  { %3791 = vmatprep.subr.bf16.mxu0 %v4595_v41  ;;  %2689 = vmatpush1.bf16.msra.mxu1 %v4270_v42  ;;  %v4620_v41 = vld [vmem:[#allocation8 + $0xb0] ss:$8 sps:$4 sm:$0xff]   ;;  %v4625_v42 = vld [vmem:[#allocation8 + $0xc4] ss:$8 sps:$4 sm:$0xff]   ;;  %v4359_v45 = vcombine.high %v460_v40, %v464_v44 }
 0x16e   :  { %2690 = vmatprep.subr.bf16.mxu1 %v4279_v43  ;;  %v4350_v43 = vcombine.low %v452_v34, %v456_v35  ;;  %v150_v34 = vld [vmem:[#allocation5 + $0x1d8] sm:$0xff] }
 0x16f   :  { %v154_v35 = vld [vmem:[#allocation5 + $0x1f8] sm:$0xff] }
 0x170   :  { %3792 = vmatpush1.bf16.msra.mxu0 %v4593_v47  ;;  %v472_v47 = vld [vmem:[#allocation5 + $0xbe8] sm:$0xff] }
 0x171   :  { %3793 = vmatprep.subr.bf16.mxu0 %v4598_v3  ;;  %2691 = vmatpush1.bf16.msra.mxu1 %v4278_v48  ;;  %v4623_v3 = vld [vmem:[#allocation8 + $0xc0] ss:$8 sps:$4 sm:$0xff]   ;;  %v4628_v48 = vld [vmem:[#allocation8 + $0xd4] ss:$8 sps:$4 sm:$0xff]   ;;  %v4367_v50 = vcombine.high %v468_v46, %v472_v47 }
 0x172   :  { %2692 = vmatprep.subr.bf16.mxu1 %v4287_v49  ;;  %v4358_v49 = vcombine.low %v460_v40, %v464_v44 }
 0x174   :  { %3794 = vmatpush1.bf16.msra.mxu0 %v4596_v51  ;;  %v98_v51 = vld [vmem:[#allocation5 + $0x38] sm:$0xff] }
 0x175   :  { %3795 = vmatprep.subr.bf16.mxu0 %v4601_v52  ;;  %2693 = vmatpush1.bf16.msra.mxu1 %v4286_v53  ;;  %v4626_v52 = vld [vmem:[#allocation8 + $0xd0] ss:$8 sps:$4 sm:$0xff]   ;;  %v4631_v53 = vld [vmem:[#allocation8 + $0xe4] ss:$8 sps:$4 sm:$0xff]   ;;  %v3995_v55 = vcombine.high %v94_v12, %v98_v51 }
 0x176   :  { %2694 = vmatprep.subr.bf16.mxu1 %v4295_v54  ;;  %v4366_v54 = vcombine.low %v468_v46, %v472_v47  ;;  %v158_v47 = vld [vmem:[#allocation5 + $0x218] sm:$0xff] }
 0x178   :  { %3796 = vmatpush1.bf16.msra.mxu0 %v4599_v57  ;;  %v106_v57 = vld [vmem:[#allocation5 + $0x78] sm:$0xff] }
 0x179   :  { %3797 = vmatprep.subr.bf16.mxu0 %v4604_v58  ;;  %2695 = vmatpush1.bf16.msra.mxu1 %v4294_v59  ;;  %v4629_v58 = vld [vmem:[#allocation8 + $0xe0] ss:$8 sps:$4 sm:$0xff]   ;;  %v4634_v59 = vld [vmem:[#allocation8 + $0xf4] ss:$8 sps:$4 sm:$0xff]   ;;  %v4003_v61 = vcombine.high %v102_v56, %v106_v57 }
 0x17a   :  { %v5059_v2 = vpop.f32.mrb[0].mxu0  ;;  %2696 = vmatprep.subr.bf16.mxu1 %v4303_v60  ;;  %v3994_v60 = vcombine.low %v94_v12, %v98_v51 }
 0x17b   :  { %v5061_v5 = vpop.f32.mrb[1].mxu0 }
 0x17c   :  { %3798 = vmatpush1.bf16.msra.mxu0 %v4602_v63  ;;  %v5063_v9 = vpop.f32.mrb[2].mxu0  ;;  %v114_v63 = vld [vmem:[#allocation5 + $0xb8] sm:$0xff] }
 0x17d   :  { %3799 = vmatprep.subr.bf16.mxu0 %v4607_v0  ;;  %v5065_v11 = vpop.f32.mrb[3].mxu0  ;;  %2697 = vmatpush1.bf16.msra.mxu1 %v4302_v1  ;;  %v4632_v0 = vld [vmem:[#allocation8 + $0xf0] ss:$8 sps:$4 sm:$0xff]   ;;  %v4002_v1 = vcombine.low %v102_v56, %v106_v57  ;;  %v4011_v6 = vcombine.high %v110_v62, %v114_v63  ;;  %v4637_v56 = vld [vmem:[#allocation8 + $0x104] ss:$8 sps:$4 sm:$0xff]  }
 0x17e   :  { %2698 = vmatprep.subr.bf16.mxu1 %v4311_v4  ;;  %v4783_v4 = vld [vmem:[#allocation2 + $0x4] ss:$24 sps:$4 sm:$0xff]  }
 0x180   :  { %3800 = vmatpush1.bf16.msra.mxu0 %v4605_v8  ;;  %v122_v8 = vld [vmem:[#allocation5 + $0xf8] sm:$0xff] }
 0x181   :  { %3801 = vmatprep.subr.bf16.mxu0 %v4610_v10  ;;  %2699 = vmatpush1.bf16.msra.mxu1 %v4310_v13  ;;  %v477_v10 = vlaneseq  ;;  %v4010_v13 = vcombine.low %v110_v62, %v114_v63  ;;  %v4638_v63 = vld [vmem:[#allocation8 + $0x110] ss:$8 sps:$4 sm:$0xff]  }
 0x182   :  { %2700 = vmatprep.subr.bf16.mxu1 %v4319_v14  ;;  %v4019_v14 = vcombine.high %v118_v7, %v122_v8 }
 0x184   :  { %3802 = vmatpush1.bf16.msra.mxu0 %v4608_v18  ;;  %v5068_v18 = vshrl.u32 %v477_v10, 7 }
 0x185   :  { %3803 = vmatprep.subr.bf16.mxu0 %v4613_v19  ;;  %2701 = vmatpush1.bf16.msra.mxu1 %v4318_v20  ;;  %v4027_v19 = vcombine.high %v126_v16, %v130_v17  ;;  %v134_v20 = vld [vmem:[#allocation5 + $0x158] sm:$0xff] }
 0x186   :  { %2702 = vmatprep.subr.bf16.mxu1 %v4327_v21  ;;  %v138_v21 = vld [vmem:[#allocation5 + $0x178] sm:$0xff]  ;;  %v479_v22 = vsub.s32 0, %v5068_v18 }
 0x187   :  { %v4646_v16 = vld [vmem:[#allocation8 + $0x134] ss:$8 sps:$4 sm:$0xff]  }
 0x188   :  { %3804 = vmatpush1.bf16.msra.mxu0 %v4611_v24  ;;  %v5071_v24 = vld [vmem:[#allocation7] sm:$0xff] }
 0x189   :  { %3805 = vmatprep.subr.bf16.mxu0 %v4616_v25  ;;  %2703 = vmatpush1.bf16.msra.mxu1 %v4326_v26  ;;  %v483_v25 = vsub.s32 1, %v5068_v18  ;;  %v4035_v26 = vcombine.high %v134_v20, %v138_v21  ;;  %v480_v29 = vrot.slane %v5071_v24, %v479_v22 }
 0x18a   :  { %2704 = vmatprep.subr.bf16.mxu1 %v4335_v27  ;;  %v142_v27 = vld [vmem:[#allocation5 + $0x198] sm:$0xff] }
 0x18b   :  { %v4042_v40 = vcombine.low %v142_v27, %v146_v28 }
 0x18c   :  { %3806 = vmatpush1.bf16.msra.mxu0 %v4614_v30  ;;  %v484_v30 = vrot.slane %v5071_v24, %v483_v25 }
 0x18d   :  { %3807 = vmatprep.subr.bf16.mxu0 %v4619_v31  ;;  %2705 = vmatpush1.bf16.msra.mxu1 %v4334_v32  ;;  %v4034_v31 = vcombine.low %v134_v20, %v138_v21  ;;  %v4043_v32 = vcombine.high %v142_v27, %v146_v28  ;;  %v198_v20 = vld [vmem:[#allocation5 + $0x358] sm:$0xff]  ;;  %v4647_v27 = vld [vmem:[#allocation8 + $0x140] ss:$8 sps:$4 sm:$0xff]  }
 0x18e   :  { %2706 = vmatprep.subr.bf16.mxu1 %v4343_v33  ;;  %v202_v21 = vld [vmem:[#allocation5 + $0x378] sm:$0xff] }
 0x18f   :  { %v4099_v28 = vcombine.high %v198_v20, %v202_v21 }
 0x190   :  { %3808 = vmatpush1.bf16.msra.mxu0 %v4617_v36 }
 0x191   :  { %3809 = vmatprep.subr.bf16.mxu0 %v4622_v37  ;;  %2707 = vmatpush1.bf16.msra.mxu1 %v4342_v38 }
 0x192   :  { %2708 = vmatprep.subr.bf16.mxu1 %v4351_v15 }
 0x194   :  { %3810 = vmatpush1.bf16.msra.mxu0 %v4620_v41 }
 0x195   :  { %3811 = vmatprep.subr.bf16.mxu0 %v4625_v42  ;;  %2709 = vmatpush1.bf16.msra.mxu1 %v4350_v43  ;;  %v4051_v43 = vcombine.high %v150_v34, %v154_v35 }
 0x196   :  { %2710 = vmatprep.subr.bf16.mxu1 %v4359_v45 }
 0x198   :  { %3812 = vmatpush1.bf16.msra.mxu0 %v4623_v3  ;;  %v162_v3 = vld [vmem:[#allocation5 + $0x238] sm:$0xff] }
 0x199   :  { %3813 = vmatprep.subr.bf16.mxu0 %v4628_v48  ;;  %2711 = vmatpush1.bf16.msra.mxu1 %v4358_v49 }
 0x19a   :  { %2712 = vmatprep.subr.bf16.mxu1 %v4367_v50  ;;  %v4050_v50 = vcombine.low %v150_v34, %v154_v35  ;;  %v214_v35 = vld [vmem:[#allocation5 + $0x3d8] sm:$0xff] }
 0x19c   :  { %3814 = vmatpush1.bf16.msra.mxu0 %v4626_v52  ;;  %v4059_v52 = vcombine.high %v158_v47, %v162_v3 }
 0x19d   :  { %3815 = vmatprep.subr.bf16.mxu0 %v4631_v53  ;;  %2713 = vmatpush1.bf16.msra.mxu1 %v4366_v54  ;;  %v166_v54 = vld [vmem:[#allocation5 + $0x258] sm:$0xff] }
 0x19e   :  { %2854 = vmatprep.subr.bf16.mxu1 %v3995_v55  ;;  %v170_v55 = vld [vmem:[#allocation5 + $0x278] sm:$0xff] }
 0x19f   :  { %v4066_v62 = vcombine.low %v166_v54, %v170_v55 }
 0x1a0   :  { %3816 = vmatpush1.bf16.msra.mxu0 %v4629_v58  ;;  %2715 = vmatmul.mubr.bf16.vlgmr.msra.gmra.mrb[4].mxu1 %v5056_v39  ;;  %v4018_v39 = vcombine.low %v118_v7, %v122_v8  ;;  %v4641_v8 = vld [vmem:[#allocation8 + $0x120] ss:$8 sps:$4 sm:$0xff]  }
 0x1a1   :  { %3817 = vmatprep.subr.bf16.mxu0 %v4634_v59  ;;  %2855 = vmatpush1.bf16.msra.mxu1 %v3994_v60  ;;  %v4635_v59 = vld [vmem:[#allocation8 + $0x100] ss:$8 sps:$4 sm:$0xff]   ;;  %v178_v60 = vld [vmem:[#allocation5 + $0x2b8] sm:$0xff] }
 0x1a2   :  { %2886 = vmatprep.mubr.bf16.mxu1 %v4783_v4  ;;  %2856 = vmatprep.subr.bf16.mxu1 %v4003_v61  ;;  %v4640_v61 = vld [vmem:[#allocation8 + $0x114] ss:$8 sps:$4 sm:$0xff]  }
 0x1a3   :  { %v186_v4 = vld [vmem:[#allocation5 + $0x2f8] sm:$0xff] }
 0x1a4   :  { %3818 = vmatpush1.bf16.msra.mxu0 %v4632_v0 }
 0x1a5   :  { %2857 = vmatpush1.bf16.msra.mxu1 %v4002_v1  ;;  %3830 = vmatprep.subr.bf16.mxu0 %v4637_v56  ;;  %v182_v1 = vld [vmem:[#allocation5 + $0x2d8] sm:$0xff] }
 0x1a6   :  { %2858 = vmatprep.subr.bf16.mxu1 %v4011_v6  ;;  %v4643_v6 = vld [vmem:[#allocation8 + $0x124] ss:$8 sps:$4 sm:$0xff]   ;;  %v4083_v10 = vcombine.high %v182_v1, %v186_v4  ;;  %v4082_v17 = vcombine.low %v182_v1, %v186_v4  ;;  %v4668_v4 = vld [vmem:[#allocation8 + $0x1b0] ss:$8 sps:$4 sm:$0xff]  }
 0x1a9   :  { %2859 = vmatpush1.bf16.msra.mxu1 %v4010_v13  ;;  %v190_v13 = vld [vmem:[#allocation5 + $0x318] sm:$0xff] }
 0x1aa   :  { %2860 = vmatprep.subr.bf16.mxu1 %v4019_v14  ;;  %v194_v14 = vld [vmem:[#allocation5 + $0x338] sm:$0xff] }
 0x1ad   :  { %2861 = vmatpush1.bf16.msra.mxu1 %v4018_v39  ;;  %v4644_v39 = vld [vmem:[#allocation8 + $0x130] ss:$8 sps:$4 sm:$0xff]  }
 0x1ae   :  { %2862 = vmatprep.subr.bf16.mxu1 %v4027_v19  ;;  %v4091_v19 = vcombine.high %v190_v13, %v194_v14 }
 0x1b1   :  { %2863 = vmatpush1.bf16.msra.mxu1 %v4026_v23  ;;  %v4649_v23 = vld [vmem:[#allocation8 + $0x144] ss:$8 sps:$4 sm:$0xff]  }
 0x1b2   :  { %2864 = vmatprep.subr.bf16.mxu1 %v4035_v26  ;;  %v4090_v26 = vcombine.low %v190_v13, %v194_v14  ;;  %v4671_v14 = vld [vmem:[#allocation8 + $0x1c0] ss:$8 sps:$4 sm:$0xff]  }
 0x1b3   :  { %v2544_v33 = vpop.f32.mrb[0].mxu1 }
 0x1b4   :  { %v4500_v36 = vadd.f32 %v2544_v33, %v480_v29  ;;  %v2546_v37 = vpop.f32.mrb[1].mxu1  ;;  %v4650_v33 = vld [vmem:[#allocation8 + $0x150] ss:$8 sps:$4 sm:$0xff]  }
 0x1b5   :  { %v4502_v38 = vadd.f32 %v2546_v37, %v484_v30  ;;  %v2548_v15 = vpop.f32.mrb[2].mxu1  ;;  %2865 = vmatpush1.bf16.msra.mxu1 %v4034_v31  ;;  %v4652_v31 = vld [vmem:[#allocation8 + $0x154] ss:$8 sps:$4 sm:$0xff]   ;;  %v4655_v37 = vld [vmem:[#allocation8 + $0x164] ss:$8 sps:$4 sm:$0xff]  }
 0x1b6   :  { %v4504_v44 = vadd.f32 %v2548_v15, %v480_v29  ;;  %v4501_v41 = vadd.f32 %v4500_v36, %v5059_v2  ;;  %v2550_v42 = vpop.f32.mrb[3].mxu1  ;;  %2866 = vmatprep.subr.bf16.mxu1 %v4043_v32  ;;  %v206_v29 = vld [vmem:[#allocation5 + $0x398] sm:$0xff]  ;;  %v4098_v32 = vcombine.low %v198_v20, %v202_v21  ;;  %v4653_v15 = vld [vmem:[#allocation8 + $0x160] ss:$8 sps:$4 sm:$0xff]  }
 0x1b7   :  { %v4506_v45 = vadd.f32 %v2550_v42, %v484_v30  ;;  %v4503_v46 = vadd.f32 %v4502_v38, %v5061_v5  ;;  %v4058_v5 = vcombine.low %v158_v47, %v162_v3  ;;  %v210_v30 = vld [vmem:[#allocation5 + $0x3b8] sm:$0xff] }
 0x1b8   :  { %v4505_v48 = vadd.f32 %v4504_v44, %v5063_v9  ;;  %v2983_v12 = vmax.f32 %v4501_v41, 0.0  ;;  %v4067_v9 = vcombine.high %v166_v54, %v170_v55  ;;  %v4107_v34 = vcombine.high %v206_v29, %v210_v30  ;;  %v218_v36 = vld [vmem:[#allocation5 + $0x3f8] sm:$0xff] }
 0x1b9   :  { %v4507_v49 = vadd.f32 %v4506_v45, %v5065_v11  ;;  %2867 = vmatpush1.bf16.msra.mxu1 %v4042_v40  ;;  %v2984_v53 = vmax.f32 %v4503_v46, 0.0  ;;  %v174_v11 = vld [vmem:[#allocation5 + $0x298] sm:$0xff]  ;;  %v4106_v38 = vcombine.low %v206_v29, %v210_v30  ;;  %v4115_v40 = vcombine.high %v214_v35, %v218_v36  ;;  %v4677_v30 = vld [vmem:[#allocation8 + $0x1e0] ss:$8 sps:$4 sm:$0xff]  }
 0x1ba   :  { %v2991_v51 = vmax.f32 %v4505_v48, 0.0  ;;  %2868 = vmatprep.subr.bf16.mxu1 %v4051_v43  ;;  %v4075_v0 = vcombine.high %v174_v11, %v178_v60  ;;  %v4074_v7 = vcombine.low %v174_v11, %v178_v60  ;;  %v222_v44 = vld [vmem:[#allocation5 + $0x418] sm:$0xff]  ;;  %v4114_v43 = vcombine.low %v214_v35, %v218_v36  ;;  %v4661_v48 = vld [vmem:[#allocation8 + $0x184] ss:$8 sps:$4 sm:$0xff]   ;;  %v4665_v60 = vld [vmem:[#allocation8 + $0x1a0] ss:$8 sps:$4 sm:$0xff]  }
 0x1bb   :  { %v2992_v2 = vmax.f32 %v4507_v49, 0.0  ;;  %v226_v41 = vld [vmem:[#allocation5 + $0x438] sm:$0xff] }
 0x1bc   :  { %v2999_v57 = vpack.c.bf16 %v2991_v51, %v2983_v12  ;;  %v4658_v42 = vld [vmem:[#allocation8 + $0x174] ss:$8 sps:$4 sm:$0xff]   ;;  %v4656_v45 = vld [vmem:[#allocation8 + $0x170] ss:$8 sps:$4 sm:$0xff]   ;;  %v4123_v46 = vcombine.high %v222_v44, %v226_v41  ;;  %v4122_v49 = vcombine.low %v222_v44, %v226_v41  ;;  %v4659_v12 = vld [vmem:[#allocation8 + $0x180] ss:$8 sps:$4 sm:$0xff]  }
 0x1bd   :  { %v3000_v58 = vpack.c.bf16 %v2992_v2, %v2984_v53  ;;  %2869 = vmatpush1.bf16.msra.mxu1 %v4050_v50  ;;  %v230_v47 = vld [vmem:[#allocation5 + $0x458] sm:$0xff]  ;;  %v4784_v2 = vld [vmem:[#allocation2] ss:$24 sps:$4 sm:$0xff]  }
 0x1be   :  { %2870 = vmatprep.subr.bf16.mxu1 %v4059_v52  ;;  %v234_v3 = vld [vmem:[#allocation5 + $0x478] sm:$0xff] }
 0x1bf   :  { %3819 = vmatprep.mubr.bf16.mxu0 %v3000_v58  ;;  %v4131_v50 = vcombine.high %v230_v47, %v234_v3  ;;  %v238_v51 = vld [vmem:[#allocation5 + $0x498] sm:$0xff]  ;;  %v4130_v54 = vcombine.low %v230_v47, %v234_v3 }
 0x1c0   :  { %3820 = vmatmul.mubr.bf16.vlgmr.msra.gmra.mrb[8].mxu0 %v2999_v57  ;;  %v242_v52 = vld [vmem:[#allocation5 + $0x4b8] sm:$0xff] }
 0x1c1   :  { %2871 = vmatpush1.bf16.msra.mxu1 %v4058_v5  ;;  %3831 = vmatpush1.bf16.msra.mxu0 %v4635_v59  ;;  %v4664_v53 = vld [vmem:[#allocation8 + $0x194] ss:$8 sps:$4 sm:$0xff]   ;;  %v4139_v56 = vcombine.high %v238_v51, %v242_v52  ;;  %v4662_v57 = vld [vmem:[#allocation8 + $0x190] ss:$8 sps:$4 sm:$0xff]   ;;  %v4667_v59 = vld [vmem:[#allocation8 + $0x1a4] ss:$8 sps:$4 sm:$0xff]  }
 0x1c2   :  { %2872 = vmatprep.subr.bf16.mxu1 %v4067_v9  ;;  %3832 = vmatprep.subr.bf16.mxu0 %v4640_v61  ;;  %v4785_v55 = vld [vmem:[#allocation2 + $0xc] ss:$24 sps:$4 sm:$0xff]   ;;  %v4138_v9 = vcombine.low %v238_v51, %v242_v52  ;;  %v4674_v21 = vld [vmem:[#allocation8 + $0x1d0] ss:$8 sps:$4 sm:$0xff]  }
 0x1c3   :  { %v246_v58 = vld [vmem:[#allocation5 + $0x4d8] sm:$0xff] }
 0x1c4   :  { %v250_v5 = vld [vmem:[#allocation5 + $0x4f8] sm:$0xff] }
 0x1c5   :  { %2873 = vmatpush1.bf16.msra.mxu1 %v4066_v62  ;;  %3833 = vmatpush1.bf16.msra.mxu0 %v4638_v63  ;;  %v4147_v11 = vcombine.high %v246_v58, %v250_v5  ;;  %v254_v61 = vld [vmem:[#allocation5 + $0x518] sm:$0xff] }
 0x1c6   :  { %2874 = vmatprep.subr.bf16.mxu1 %v4075_v0  ;;  %3834 = vmatprep.subr.bf16.mxu0 %v4643_v6  ;;  %v258_v62 = vld [vmem:[#allocation5 + $0x538] sm:$0xff]  ;;  %v4146_v0 = vcombine.low %v246_v58, %v250_v5 }
 0x1c7   :  { %v4670_v63 = vld [vmem:[#allocation8 + $0x1b4] ss:$8 sps:$4 sm:$0xff]   ;;  %v4155_v1 = vcombine.high %v254_v61, %v258_v62  ;;  %v4680_v36 = vld [vmem:[#allocation8 + $0x1f0] ss:$8 sps:$4 sm:$0xff]  }
 0x1c8   :  { %v262_v6 = vld [vmem:[#allocation5 + $0x558] sm:$0xff] }
 0x1c9   :  { %2875 = vmatpush1.bf16.msra.mxu1 %v4074_v7  ;;  %3835 = vmatpush1.bf16.msra.mxu0 %v4641_v8  ;;  %v266_v7 = vld [vmem:[#allocation5 + $0x578] sm:$0xff]  ;;  %v4673_v8 = vld [vmem:[#allocation8 + $0x1c4] ss:$8 sps:$4 sm:$0xff]  }
 0x1ca   :  { %2876 = vmatprep.subr.bf16.mxu1 %v4083_v10  ;;  %3836 = vmatprep.subr.bf16.mxu0 %v4646_v16  ;;  %v4154_v10 = vcombine.low %v254_v61, %v258_v62  ;;  %v4163_v13 = vcombine.high %v262_v6, %v266_v7  ;;  %v270_v16 = vld [vmem:[#allocation5 + $0x598] sm:$0xff] }
 0x1cb   :  { %v302_v41 = vld [vmem:[#allocation5 + $0x698] sm:$0xff] }
 0x1cc   :  { %v314_v47 = vld [vmem:[#allocation5 + $0x6f8] sm:$0xff] }
 0x1cd   :  { %2877 = vmatpush1.bf16.msra.mxu1 %v4082_v17  ;;  %3837 = vmatpush1.bf16.msra.mxu0 %v4644_v39  ;;  %v274_v17 = vld [vmem:[#allocation5 + $0x5b8] sm:$0xff] }
 0x1ce   :  { %2878 = vmatprep.subr.bf16.mxu1 %v4091_v19  ;;  %3838 = vmatprep.subr.bf16.mxu0 %v4649_v23  ;;  %v4676_v39 = vld [vmem:[#allocation8 + $0x1d4] ss:$8 sps:$4 sm:$0xff]   ;;  %v4162_v19 = vcombine.low %v262_v6, %v266_v7  ;;  %v4171_v20 = vcombine.high %v270_v16, %v274_v17 }
 0x1cf   :  { %v278_v23 = vld [vmem:[#allocation5 + $0x5d8] sm:$0xff] }
 0x1d0   :  { %v326_v52 = vld [vmem:[#allocation5 + $0x758] sm:$0xff] }
 0x1d1   :  { %2879 = vmatpush1.bf16.msra.mxu1 %v4090_v26  ;;  %3839 = vmatpush1.bf16.msra.mxu0 %v4647_v27  ;;  %v282_v26 = vld [vmem:[#allocation5 + $0x5f8] sm:$0xff]  ;;  %v4679_v27 = vld [vmem:[#allocation8 + $0x1e4] ss:$8 sps:$4 sm:$0xff]  }
 0x1d2   :  { %2880 = vmatprep.subr.bf16.mxu1 %v4099_v28  ;;  %3840 = vmatprep.subr.bf16.mxu0 %v4652_v31  ;;  %v4170_v28 = vcombine.low %v270_v16, %v274_v17  ;;  %v4179_v29 = vcombine.high %v278_v23, %v282_v26  ;;  %v286_v31 = vld [vmem:[#allocation5 + $0x618] sm:$0xff] }
 0x1d3   :  { %v342_v5 = vld [vmem:[#allocation5 + $0x7d8] sm:$0xff] }
 0x1d4   :  { %v354_v61 = vld [vmem:[#allocation5 + $0x838] sm:$0xff] }
 0x1d5   :  { %2881 = vmatpush1.bf16.msra.mxu1 %v4098_v32  ;;  %3841 = vmatpush1.bf16.msra.mxu0 %v4650_v33  ;;  %v290_v32 = vld [vmem:[#allocation5 + $0x638] sm:$0xff] }
 0x1d6   :  { %2882 = vmatprep.subr.bf16.mxu1 %v4107_v34  ;;  %3842 = vmatprep.subr.bf16.mxu0 %v4655_v37  ;;  %v4682_v33 = vld [vmem:[#allocation8 + $0x1f4] ss:$8 sps:$4 sm:$0xff]   ;;  %v4178_v34 = vcombine.low %v278_v23, %v282_v26  ;;  %v4187_v35 = vcombine.high %v286_v31, %v290_v32 }
 0x1d7   :  { %v294_v37 = vld [vmem:[#allocation5 + $0x658] sm:$0xff] }
 0x1d8   :  { %v366_v7 = vld [vmem:[#allocation5 + $0x898] sm:$0xff] }
 0x1d9   :  { %2883 = vmatpush1.bf16.msra.mxu1 %v4106_v38  ;;  %3843 = vmatpush1.bf16.msra.mxu0 %v4653_v15  ;;  %v298_v38 = vld [vmem:[#allocation5 + $0x678] sm:$0xff]  ;;  %v4685_v15 = vld [vmem:[#allocation8 + $0x204] ss:$8 sps:$4 sm:$0xff]  }
 0x1da   :  { %2884 = vmatprep.subr.bf16.mxu1 %v4115_v40  ;;  %3844 = vmatprep.subr.bf16.mxu0 %v4658_v42  ;;  %v4186_v40 = vcombine.low %v286_v31, %v290_v32  ;;  %v4195_v44 = vcombine.high %v294_v37, %v298_v38  ;;  %v306_v42 = vld [vmem:[#allocation5 + $0x6b8] sm:$0xff] }
 0x1db   :  { %v4202_v3 = vcombine.low %v302_v41, %v306_v42  ;;  %v374_v17 = vld [vmem:[#allocation5 + $0x8d8] sm:$0xff] }
 0x1dc   :  { %v386_v23 = vld [vmem:[#allocation5 + $0x938] sm:$0xff] }
 0x1dd   :  { %2885 = vmatpush1.bf16.msra.mxu1 %v4114_v43  ;;  %3845 = vmatpush1.bf16.msra.mxu0 %v4656_v45  ;;  %v4194_v43 = vcombine.low %v294_v37, %v298_v38  ;;  %v4203_v45 = vcombine.high %v302_v41, %v306_v42  ;;  %v398_v32 = vld [vmem:[#allocation5 + $0x998] sm:$0xff] }
 0x1de   :  { %2897 = vmatprep.subr.bf16.mxu1 %v4123_v46  ;;  %3846 = vmatprep.subr.bf16.mxu0 %v4661_v48  ;;  %v310_v46 = vld [vmem:[#allocation5 + $0x6d8] sm:$0xff] }
 0x1df   :  { %v4211_v48 = vcombine.high %v310_v46, %v314_v47  ;;  %v406_v37 = vld [vmem:[#allocation5 + $0x9d8] sm:$0xff] }
 0x1e0   :  { %2887 = vmatmul.mubr.bf16.vlgmr.msra.gmra.mrb[8].mxu1 %v4784_v2  ;;  %v410_v38 = vld [vmem:[#allocation5 + $0x9f8] sm:$0xff] }
 0x1e1   :  { %2898 = vmatpush1.bf16.msra.mxu1 %v4122_v49  ;;  %2929 = vmatprep.mubr.bf16.mxu1 %v4785_v55  ;;  %v318_v49 = vld [vmem:[#allocation5 + $0x718] sm:$0xff] }
 0x1e2   :  { %2899 = vmatprep.subr.bf16.mxu1 %v4131_v50  ;;  %3847 = vmatpush1.bf16.msra.mxu0 %v4659_v12  ;;  %v322_v50 = vld [vmem:[#allocation5 + $0x738] sm:$0xff]  ;;  %v4210_v12 = vcombine.low %v310_v46, %v314_v47  ;;  %v4306_v46 = vcombine.low %v406_v37, %v410_v38 }
 0x1e3   :  { %3848 = vmatprep.subr.bf16.mxu0 %v4664_v53  ;;  %v4219_v51 = vcombine.high %v318_v49, %v322_v50  ;;  %v330_v53 = vld [vmem:[#allocation5 + $0x778] sm:$0xff]  ;;  %v4218_v2 = vcombine.low %v318_v49, %v322_v50 }
 0x1e4   :  { %v334_v55 = vld [vmem:[#allocation5 + $0x798] sm:$0xff] }
 0x1e5   :  { %2900 = vmatpush1.bf16.msra.mxu1 %v4130_v54  ;;  %v4227_v54 = vcombine.high %v326_v52, %v330_v53  ;;  %v414_v42 = vld [vmem:[#allocation5 + $0xa18] sm:$0xff] }
 0x1e6   :  { %2901 = vmatprep.subr.bf16.mxu1 %v4139_v56  ;;  %3849 = vmatpush1.bf16.msra.mxu0 %v4662_v57  ;;  %v338_v56 = vld [vmem:[#allocation5 + $0x7b8] sm:$0xff]  ;;  %v4226_v57 = vcombine.low %v326_v52, %v330_v53 }
 0x1e7   :  { %3850 = vmatprep.subr.bf16.mxu0 %v4667_v59  ;;  %v4235_v58 = vcombine.high %v334_v55, %v338_v56  ;;  %v346_v59 = vld [vmem:[#allocation5 + $0x7f8] sm:$0xff] }
 0x1e8   :  { %v4242_v62 = vcombine.low %v342_v5, %v346_v59  ;;  %v422_v50 = vld [vmem:[#allocation5 + $0xa58] sm:$0xff] }
 0x1e9   :  { %2902 = vmatpush1.bf16.msra.mxu1 %v4138_v9  ;;  %v4234_v9 = vcombine.low %v334_v55, %v338_v56 }
 0x1ea   :  { %2903 = vmatprep.subr.bf16.mxu1 %v4147_v11  ;;  %3851 = vmatpush1.bf16.msra.mxu0 %v4665_v60  ;;  %v4243_v11 = vcombine.high %v342_v5, %v346_v59  ;;  %v350_v60 = vld [vmem:[#allocation5 + $0x818] sm:$0xff] }
 0x1eb   :  { %3852 = vmatprep.subr.bf16.mxu0 %v4670_v63  ;;  %v4251_v63 = vcombine.high %v350_v60, %v354_v61  ;;  %v430_v59 = vld [vmem:[#allocation5 + $0xa98] sm:$0xff] }
 0x1ed   :  { %2904 = vmatpush1.bf16.msra.mxu1 %v4146_v0  ;;  %v358_v0 = vld [vmem:[#allocation5 + $0x858] sm:$0xff] }
 0x1ee   :  { %2905 = vmatprep.subr.bf16.mxu1 %v4155_v1  ;;  %3853 = vmatpush1.bf16.msra.mxu0 %v4668_v4  ;;  %v362_v1 = vld [vmem:[#allocation5 + $0x878] sm:$0xff]  ;;  %v4250_v4 = vcombine.low %v350_v60, %v354_v61 }
 0x1ef   :  { %3854 = vmatprep.subr.bf16.mxu0 %v4673_v8  ;;  %v4259_v6 = vcombine.high %v358_v0, %v362_v1  ;;  %v370_v8 = vld [vmem:[#allocation5 + $0x8b8] sm:$0xff] }
 0x1f0   :  { %v4267_v16 = vcombine.high %v366_v7, %v370_v8 }
 0x1f1   :  { %2906 = vmatpush1.bf16.msra.mxu1 %v4154_v10  ;;  %v4786_v10 = vld [vmem:[#allocation2 + $0x8] ss:$24 sps:$4 sm:$0xff]  }
 0x1f2   :  { %2907 = vmatprep.subr.bf16.mxu1 %v4163_v13  ;;  %3855 = vmatpush1.bf16.msra.mxu0 %v4671_v14  ;;  %v4258_v13 = vcombine.low %v358_v0, %v362_v1  ;;  %v4787_v14 = vld [vmem:[#allocation2 + $0x14] ss:$24 sps:$4 sm:$0xff]  }
 0x1f3   :  { %3856 = vmatprep.subr.bf16.mxu0 %v4676_v39  ;;  %v378_v39 = vld [vmem:[#allocation5 + $0x8f8] sm:$0xff] }
 0x1f4   :  { %v4274_v26 = vcombine.low %v374_v17, %v378_v39  ;;  %v438_v0 = vld [vmem:[#allocation5 + $0xad8] sm:$0xff] }
 0x1f5   :  { %2908 = vmatpush1.bf16.msra.mxu1 %v4162_v19  ;;  %v4266_v19 = vcombine.low %v366_v7, %v370_v8  ;;  %v442_v1 = vld [vmem:[#allocation5 + $0xaf8] sm:$0xff] }
 0x1f6   :  { %2909 = vmatprep.subr.bf16.mxu1 %v4171_v20  ;;  %3857 = vmatpush1.bf16.msra.mxu0 %v4674_v21  ;;  %v4275_v20 = vcombine.high %v374_v17, %v378_v39  ;;  %v382_v21 = vld [vmem:[#allocation5 + $0x918] sm:$0xff] }
 0x1f7   :  { %3858 = vmatprep.subr.bf16.mxu0 %v4679_v27  ;;  %v4283_v27 = vcombine.high %v382_v21, %v386_v23  ;;  %v446_v7 = vld [vmem:[#allocation5 + $0xb18] sm:$0xff] }
 0x1f8   :  { %v450_v8 = vld [vmem:[#allocation5 + $0xb38] sm:$0xff] }
 0x1f9   :  { %2910 = vmatpush1.bf16.msra.mxu1 %v4170_v28  ;;  %v390_v28 = vld [vmem:[#allocation5 + $0x958] sm:$0xff]  ;;  %v4346_v17 = vcombine.low %v446_v7, %v450_v8 }
 0x1fa   :  { %2911 = vmatprep.subr.bf16.mxu1 %v4179_v29  ;;  %3859 = vmatpush1.bf16.msra.mxu0 %v4677_v30  ;;  %v394_v29 = vld [vmem:[#allocation5 + $0x978] sm:$0xff]  ;;  %v4282_v30 = vcombine.low %v382_v21, %v386_v23 }
 0x1fb   :  { %3860 = vmatprep.subr.bf16.mxu0 %v4682_v33  ;;  %v4291_v31 = vcombine.high %v390_v28, %v394_v29  ;;  %v402_v33 = vld [vmem:[#allocation5 + $0x9b8] sm:$0xff] }
 0x1fd   :  { %2912 = vmatpush1.bf16.msra.mxu1 %v4178_v34  ;;  %v4290_v34 = vcombine.low %v390_v28, %v394_v29 }
 0x1fe   :  { %2913 = vmatprep.subr.bf16.mxu1 %v4187_v35  ;;  %3861 = vmatpush1.bf16.msra.mxu0 %v4680_v36  ;;  %v4299_v35 = vcombine.high %v398_v32, %v402_v33  ;;  %v495_v36 = vsub.s32 4, %v5068_v18 }
 0x1ff   :  { %3873 = vmatprep.subr.bf16.mxu0 %v4685_v15  ;;  %v499_v15 = vsub.s32 5, %v5068_v18 }
 0x200   :  { %v496_v41 = vrot.slane %v5071_v24, %v495_v36 }
 0x201   :  { %2914 = vmatpush1.bf16.msra.mxu1 %v4186_v40  ;;  %v4298_v40 = vcombine.low %v398_v32, %v402_v33  ;;  %v487_v32 = vsub.s32 2, %v5068_v18  ;;  %v491_v33 = vsub.s32 3, %v5068_v18 }
 0x202   :  { %2915 = vmatprep.subr.bf16.mxu1 %v4195_v44  ;;  %v4307_v44 = vcombine.high %v406_v37, %v410_v38 }
 0x205   :  { %2916 = vmatpush1.bf16.msra.mxu1 %v4194_v43  ;;  %v418_v43 = vld [vmem:[#allocation5 + $0xa38] sm:$0xff] }
 0x206   :  { %2917 = vmatprep.subr.bf16.mxu1 %v4203_v45  ;;  %v500_v45 = vrot.slane %v5071_v24, %v499_v15  ;;  %v4314_v55 = vcombine.low %v414_v42, %v418_v43 }
 0x209   :  { %2918 = vmatpush1.bf16.msra.mxu1 %v4202_v3  ;;  %v4315_v3 = vcombine.high %v414_v42, %v418_v43 }
 0x20a   :  { %2919 = vmatprep.subr.bf16.mxu1 %v4211_v48 }
 0x20d   :  { %2920 = vmatpush1.bf16.msra.mxu1 %v4210_v12  ;;  %v426_v12 = vld [vmem:[#allocation5 + $0xa78] sm:$0xff] }
 0x20e   :  { %2921 = vmatprep.subr.bf16.mxu1 %v4219_v51  ;;  %v4322_v61 = vcombine.low %v422_v50, %v426_v12 }
 0x211   :  { %2922 = vmatpush1.bf16.msra.mxu1 %v4218_v2 }
 0x212   :  { %2923 = vmatprep.subr.bf16.mxu1 %v4227_v54 }
 0x215   :  { %2924 = vmatpush1.bf16.msra.mxu1 %v4226_v57 }
 0x216   :  { %2925 = vmatprep.subr.bf16.mxu1 %v4235_v58  ;;  %v4323_v58 = vcombine.high %v422_v50, %v426_v12  ;;  %v4688_v50 = vld [vmem:[#allocation8 + $0x214] ss:$8 sps:$4 sm:$0xff]   ;;  %v4691_v12 = vld [vmem:[#allocation8 + $0x224] ss:$8 sps:$4 sm:$0xff]  }
 0x219   :  { %2926 = vmatpush1.bf16.msra.mxu1 %v4234_v9  ;;  %v434_v9 = vld [vmem:[#allocation5 + $0xab8] sm:$0xff] }
 0x21a   :  { %2927 = vmatprep.subr.bf16.mxu1 %v4243_v11 }
 0x21d   :  { %2928 = vmatpush1.bf16.msra.mxu1 %v4242_v62 }
 0x21e   :  { %2940 = vmatprep.subr.bf16.mxu1 %v4251_v63  ;;  %v4331_v63 = vcombine.high %v430_v59, %v434_v9 }
 0x220   :  { %2930 = vmatmul.mubr.bf16.vlgmr.msra.gmra.mrb[8].mxu1 %v4786_v10  ;;  %v4338_v10 = vcombine.low %v438_v0, %v442_v1 }
 0x221   :  { %2941 = vmatpush1.bf16.msra.mxu1 %v4250_v4  ;;  %2972 = vmatprep.mubr.bf16.mxu1 %v4787_v14  ;;  %v4330_v4 = vcombine.low %v430_v59, %v434_v9  ;;  %v454_v14 = vld [vmem:[#allocation5 + $0xb58] sm:$0xff]  ;;  %v4709_v9 = vld [vmem:[#allocation8 + $0x284] ss:$8 sps:$4 sm:$0xff]  }
 0x222   :  { %2942 = vmatprep.subr.bf16.mxu1 %v4259_v6  ;;  %v4339_v6 = vcombine.high %v438_v0, %v442_v1  ;;  %v4704_v59 = vld [vmem:[#allocation8 + $0x270] ss:$8 sps:$4 sm:$0xff]   ;;  %v4713_v0 = vld [vmem:[#allocation8 + $0x2a0] ss:$8 sps:$4 sm:$0xff]   ;;  %v4718_v1 = vld [vmem:[#allocation8 + $0x2b4] ss:$8 sps:$4 sm:$0xff]  }
 0x225   :  { %2943 = vmatpush1.bf16.msra.mxu1 %v4258_v13  ;;  %v4347_v13 = vcombine.high %v446_v7, %v450_v8  ;;  %v4719_v7 = vld [vmem:[#allocation8 + $0x2c0] ss:$8 sps:$4 sm:$0xff]   ;;  %v4724_v8 = vld [vmem:[#allocation8 + $0x2d4] ss:$8 sps:$4 sm:$0xff]  }
 0x226   :  { %2944 = vmatprep.subr.bf16.mxu1 %v4267_v16  ;;  %v458_v16 = vld [vmem:[#allocation5 + $0xb78] sm:$0xff] }
 0x227   :  { %v4355_v39 = vcombine.high %v454_v14, %v458_v16  ;;  %v4354_v21 = vcombine.low %v454_v14, %v458_v16  ;;  %v4725_v14 = vld [vmem:[#allocation8 + $0x2e0] ss:$8 sps:$4 sm:$0xff]   ;;  %v4730_v16 = vld [vmem:[#allocation8 + $0x2f4] ss:$8 sps:$4 sm:$0xff]  }
 0x229   :  { %2945 = vmatpush1.bf16.msra.mxu1 %v4266_v19  ;;  %v462_v19 = vld [vmem:[#allocation5 + $0xb98] sm:$0xff] }
 0x22a   :  { %2946 = vmatprep.subr.bf16.mxu1 %v4275_v20  ;;  %v466_v20 = vld [vmem:[#allocation5 + $0xbb8] sm:$0xff] }
 0x22b   :  { %v4363_v23 = vcombine.high %v462_v19, %v466_v20  ;;  %v4362_v28 = vcombine.low %v462_v19, %v466_v20  ;;  %v4731_v19 = vld [vmem:[#allocation8 + $0x300] ss:$8 sps:$4 sm:$0xff]   ;;  %v4736_v20 = vld [vmem:[#allocation8 + $0x314] ss:$8 sps:$4 sm:$0xff]  }
 0x22d   :  { %2947 = vmatpush1.bf16.msra.mxu1 %v4274_v26  ;;  %v470_v26 = vld [vmem:[#allocation5 + $0xbd8] sm:$0xff] }
 0x22e   :  { %2948 = vmatprep.subr.bf16.mxu1 %v4283_v27  ;;  %v474_v27 = vld [vmem:[#allocation5 + $0xbf8] sm:$0xff] }
 0x22f   :  { %v4371_v29 = vcombine.high %v470_v26, %v474_v27 }
 0x231   :  { %2949 = vmatpush1.bf16.msra.mxu1 %v4282_v30  ;;  %v4370_v30 = vcombine.low %v470_v26, %v474_v27  ;;  %v4737_v26 = vld [vmem:[#allocation8 + $0x320] ss:$8 sps:$4 sm:$0xff]   ;;  %v4742_v27 = vld [vmem:[#allocation8 + $0x334] ss:$8 sps:$4 sm:$0xff]  }
 0x232   :  { %2950 = vmatprep.subr.bf16.mxu1 %v4291_v31  ;;  %v4788_v31 = vld [vmem:[#allocation2 + $0x10] ss:$24 sps:$4 sm:$0xff]  }
 0x235   :  { %2951 = vmatpush1.bf16.msra.mxu1 %v4290_v34  ;;  %v488_v34 = vrot.slane %v5071_v24, %v487_v32  ;;  %v4746_v32 = vld [vmem:[#allocation8 + $0x350] ss:$8 sps:$4 sm:$0xff]  }
 0x236   :  { %2952 = vmatprep.subr.bf16.mxu1 %v4299_v35  ;;  %v492_v35 = vrot.slane %v5071_v24, %v491_v33  ;;  %v4686_v24 = vld [vmem:[#allocation8 + $0x210] ss:$8 sps:$4 sm:$0xff]   ;;  %v4749_v33 = vld [vmem:[#allocation8 + $0x360] ss:$8 sps:$4 sm:$0xff]  }
 0x239   :  { %2953 = vmatpush1.bf16.msra.mxu1 %v4298_v40 }
 0x23a   :  { %v2845_v47 = vpop.f32.mrb[4].mxu0  ;;  %2954 = vmatprep.subr.bf16.mxu1 %v4307_v44 }
 0x23b   :  { %v4512_v48 = vadd.f32 %v2845_v47, %v496_v41  ;;  %v2847_v49 = vpop.f32.mrb[5].mxu0 }
 0x23c   :  { %v4513_v51 = vadd.f32 %v2847_v49, %v500_v45  ;;  %v2849_v52 = vpop.f32.mrb[6].mxu0  ;;  %v4683_v49 = vld [vmem:[#allocation8 + $0x200] ss:$8 sps:$4 sm:$0xff]  }
 0x23d   :  { %v2987_v53 = vmax.f32 %v4512_v48, 0.0  ;;  %v4514_v2 = vadd.f32 %v2849_v52, %v496_v41  ;;  %v2851_v54 = vpop.f32.mrb[7].mxu0  ;;  %2955 = vmatpush1.bf16.msra.mxu1 %v4306_v46  ;;  %v4694_v52 = vld [vmem:[#allocation8 + $0x234] ss:$8 sps:$4 sm:$0xff]  }
 0x23e   :  { %v2988_v56 = vmax.f32 %v4513_v51, 0.0  ;;  %v4515_v57 = vadd.f32 %v2851_v54, %v500_v45  ;;  %2956 = vmatprep.subr.bf16.mxu1 %v4315_v3  ;;  %v4689_v51 = vld [vmem:[#allocation8 + $0x220] ss:$8 sps:$4 sm:$0xff]  }
 0x23f   :  { %v2995_v5 = vmax.f32 %v4514_v2, 0.0  ;;  %v4697_v2 = vld [vmem:[#allocation8 + $0x244] ss:$8 sps:$4 sm:$0xff]   ;;  %v4695_v54 = vld [vmem:[#allocation8 + $0x240] ss:$8 sps:$4 sm:$0xff]  }
 0x240   :  { %v2996_v11 = vmax.f32 %v4515_v57, 0.0  ;;  %v4703_v57 = vld [vmem:[#allocation8 + $0x264] ss:$8 sps:$4 sm:$0xff]  }
 0x241   :  { %v5088_v60 = vpack.c.bf16 %v2995_v5, %v2987_v53  ;;  %2957 = vmatpush1.bf16.msra.mxu1 %v4314_v55  ;;  %v4692_v53 = vld [vmem:[#allocation8 + $0x230] ss:$8 sps:$4 sm:$0xff]   ;;  %v4700_v55 = vld [vmem:[#allocation8 + $0x254] ss:$8 sps:$4 sm:$0xff]  }
 0x242   :  { %v3004_v62 = vpack.c.bf16 %v2996_v11, %v2988_v56  ;;  %2958 = vmatprep.subr.bf16.mxu1 %v4323_v58  ;;  %v4698_v56 = vld [vmem:[#allocation8 + $0x250] ss:$8 sps:$4 sm:$0xff]   ;;  %v4701_v58 = vld [vmem:[#allocation8 + $0x260] ss:$8 sps:$4 sm:$0xff]   ;;  %v4706_v5 = vld [vmem:[#allocation8 + $0x274] ss:$8 sps:$4 sm:$0xff]  }
 0x243   :  { %v4707_v11 = vld [vmem:[#allocation8 + $0x280] ss:$8 sps:$4 sm:$0xff]  }
 0x245   :  { %2959 = vmatpush1.bf16.msra.mxu1 %v4322_v61  ;;  %v4712_v61 = vld [vmem:[#allocation8 + $0x294] ss:$8 sps:$4 sm:$0xff]  }
 0x246   :  { %2960 = vmatprep.subr.bf16.mxu1 %v4331_v63  ;;  %v4715_v63 = vld [vmem:[#allocation8 + $0x2a4] ss:$8 sps:$4 sm:$0xff]  }
 0x249   :  { %2961 = vmatpush1.bf16.msra.mxu1 %v4330_v4  ;;  %v4716_v4 = vld [vmem:[#allocation8 + $0x2b0] ss:$8 sps:$4 sm:$0xff]  }
 0x24a   :  { %2962 = vmatprep.subr.bf16.mxu1 %v4339_v6  ;;  %v4721_v6 = vld [vmem:[#allocation8 + $0x2c4] ss:$8 sps:$4 sm:$0xff]  }
 0x24d   :  { %2963 = vmatpush1.bf16.msra.mxu1 %v4338_v10  ;;  %v4722_v10 = vld [vmem:[#allocation8 + $0x2d0] ss:$8 sps:$4 sm:$0xff]  }
 0x24e   :  { %2964 = vmatprep.subr.bf16.mxu1 %v4347_v13  ;;  %v4727_v13 = vld [vmem:[#allocation8 + $0x2e4] ss:$8 sps:$4 sm:$0xff]  }
 0x251   :  { %2965 = vmatpush1.bf16.msra.mxu1 %v4346_v17  ;;  %v4728_v17 = vld [vmem:[#allocation8 + $0x2f0] ss:$8 sps:$4 sm:$0xff]  }
 0x252   :  { %2966 = vmatprep.subr.bf16.mxu1 %v4355_v39  ;;  %v4733_v39 = vld [vmem:[#allocation8 + $0x304] ss:$8 sps:$4 sm:$0xff]  }
 0x255   :  { %2967 = vmatpush1.bf16.msra.mxu1 %v4354_v21  ;;  %v4734_v21 = vld [vmem:[#allocation8 + $0x310] ss:$8 sps:$4 sm:$0xff]  }
 0x256   :  { %2968 = vmatprep.subr.bf16.mxu1 %v4363_v23  ;;  %v4739_v23 = vld [vmem:[#allocation8 + $0x324] ss:$8 sps:$4 sm:$0xff]  }
 0x259   :  { %2969 = vmatpush1.bf16.msra.mxu1 %v4362_v28  ;;  %v4740_v28 = vld [vmem:[#allocation8 + $0x330] ss:$8 sps:$4 sm:$0xff]  }
 0x25a   :  { %2970 = vmatprep.subr.bf16.mxu1 %v4371_v29  ;;  %v4745_v29 = vld [vmem:[#allocation8 + $0x344] ss:$8 sps:$4 sm:$0xff]  }
 0x25d   :  { %2971 = vmatpush1.bf16.msra.mxu1 %v4370_v30  ;;  %v4743_v30 = vld [vmem:[#allocation8 + $0x340] ss:$8 sps:$4 sm:$0xff]  }
 0x260   :  { %2973 = vmatmul.mubr.bf16.vlgmr.msra.gmra.mrb[8].mxu1 %v4788_v31  ;;  %v4748_v31 = vld [vmem:[#allocation8 + $0x354] ss:$8 sps:$4 sm:$0xff]  }
 0x273   :  { %v2716_v36 = vpop.f32.mrb[4].mxu1 }
 0x274   :  { %v4508_v37 = vadd.f32 %v2716_v36, %v488_v34  ;;  %v2718_v38 = vpop.f32.mrb[5].mxu1  ;;  %v4757_v36 = vld [vmem:[#allocation8 + $0x384] ss:$8 sps:$4 sm:$0xff]  }
 0x275   :  { %v4509_v15 = vadd.f32 %v2718_v38, %v492_v35  ;;  %v2720_v40 = vpop.f32.mrb[6].mxu1  ;;  %v4760_v38 = vld [vmem:[#allocation8 + $0x394] ss:$8 sps:$4 sm:$0xff]  }
 0x276   :  { %v4510_v44 = vadd.f32 %v2720_v40, %v488_v34  ;;  %v2722_v41 = vpop.f32.mrb[7].mxu1  ;;  %v2985_v43 = vmax.f32 %v4508_v37, 0.0  ;;  %v4754_v34 = vld [vmem:[#allocation8 + $0x374] ss:$8 sps:$4 sm:$0xff]   ;;  %v4755_v37 = vld [vmem:[#allocation8 + $0x380] ss:$8 sps:$4 sm:$0xff]  }
 0x277   :  { %v4511_v42 = vadd.f32 %v2722_v41, %v492_v35  ;;  %v2986_v46 = vmax.f32 %v4509_v15, 0.0  ;;  %v4752_v35 = vld [vmem:[#allocation8 + $0x370] ss:$8 sps:$4 sm:$0xff]   ;;  %v4763_v40 = vld [vmem:[#allocation8 + $0x3a4] ss:$8 sps:$4 sm:$0xff]  }
 0x278   :  { %v2993_v45 = vmax.f32 %v4510_v44, 0.0  ;;  %v4758_v15 = vld [vmem:[#allocation8 + $0x390] ss:$8 sps:$4 sm:$0xff]   ;;  %v4761_v44 = vld [vmem:[#allocation8 + $0x3a0] ss:$8 sps:$4 sm:$0xff]  }
 0x279   :  { %v2994_v47 = vmax.f32 %v4511_v42, 0.0  ;;  %v4766_v41 = vld [vmem:[#allocation8 + $0x3b4] ss:$8 sps:$4 sm:$0xff]   ;;  %v4764_v42 = vld [vmem:[#allocation8 + $0x3b0] ss:$8 sps:$4 sm:$0xff]  }
 0x27a   :  { %v3001_v3 = vpack.c.bf16 %v2993_v45, %v2985_v43  ;;  %v4769_v43 = vld [vmem:[#allocation8 + $0x3c4] ss:$8 sps:$4 sm:$0xff]   ;;  %v4767_v45 = vld [vmem:[#allocation8 + $0x3c0] ss:$8 sps:$4 sm:$0xff]  }
 0x27b   :  { %v3002_v48 = vpack.c.bf16 %v2994_v47, %v2986_v46  ;;  %v4772_v46 = vld [vmem:[#allocation8 + $0x3d4] ss:$8 sps:$4 sm:$0xff]   ;;  %v4770_v47 = vld [vmem:[#allocation8 + $0x3d0] ss:$8 sps:$4 sm:$0xff]  }
 0x27d   :  { %3862 = vmatprep.mubr.bf16.mxu0 %v3002_v48  ;;  %v4773_v48 = vld [vmem:[#allocation8 + $0x3e0] ss:$8 sps:$4 sm:$0xff]  }
 0x27e   :  { %3863 = vmatmul.mubr.bf16.vlgmr.msra.gmra.mrb[8].mxu0 %v3001_v3  ;;  %v4775_v3 = vld [vmem:[#allocation8 + $0x3e4] ss:$8 sps:$4 sm:$0xff]  }
 0x27f   :  { %3874 = vmatpush1.bf16.msra.mxu0 %v4683_v49  ;;  %3905 = vmatprep.mubr.bf16.mxu0 %v3004_v62  ;;  %v4710_v62 = vld [vmem:[#allocation8 + $0x290] ss:$8 sps:$4 sm:$0xff]   ;;  %v4778_v49 = vld [vmem:[#allocation8 + $0x3f4] ss:$8 sps:$4 sm:$0xff]  }
 0x280   :  { %3875 = vmatprep.subr.bf16.mxu0 %v4688_v50  ;;  %v4776_v50 = vld [vmem:[#allocation8 + $0x3f0] ss:$8 sps:$4 sm:$0xff]  }
 0x283   :  { %3876 = vmatpush1.bf16.msra.mxu0 %v4686_v24  ;;  %v503_v24 = vsub.s32 6, %v5068_v18 }
 0x284   :  { %3877 = vmatprep.subr.bf16.mxu0 %v4691_v12  ;;  %v507_v12 = vsub.s32 7, %v5068_v18 }
 0x287   :  { %3878 = vmatpush1.bf16.msra.mxu0 %v4689_v51  ;;  %v4789_v51 = vld [vmem:[#allocation7] sm:$0xff] }
 0x288   :  { %3879 = vmatprep.subr.bf16.mxu0 %v4694_v52  ;;  %v504_v52 = vrot.slane %v4789_v51, %v503_v24 }
 0x28b   :  { %3880 = vmatpush1.bf16.msra.mxu0 %v4692_v53  ;;  %v508_v53 = vrot.slane %v4789_v51, %v507_v12 }
 0x28c   :  { %3881 = vmatprep.subr.bf16.mxu0 %v4697_v2 }
 0x28f   :  { %3882 = vmatpush1.bf16.msra.mxu0 %v4695_v54 }
 0x290   :  { %3883 = vmatprep.subr.bf16.mxu0 %v4700_v55 }
 0x293   :  { %3884 = vmatpush1.bf16.msra.mxu0 %v4698_v56 }
 0x294   :  { %3885 = vmatprep.subr.bf16.mxu0 %v4703_v57 }
 0x297   :  { %3886 = vmatpush1.bf16.msra.mxu0 %v4701_v58 }
 0x298   :  { %3887 = vmatprep.subr.bf16.mxu0 %v4706_v5 }
 0x29b   :  { %3888 = vmatpush1.bf16.msra.mxu0 %v4704_v59 }
 0x29c   :  { %3889 = vmatprep.subr.bf16.mxu0 %v4709_v9 }
 0x29f   :  { %3890 = vmatpush1.bf16.msra.mxu0 %v4707_v11 }
 0x2a0   :  { %3891 = vmatprep.subr.bf16.mxu0 %v4712_v61 }
 0x2a3   :  { %3892 = vmatpush1.bf16.msra.mxu0 %v4710_v62 }
 0x2a4   :  { %3893 = vmatprep.subr.bf16.mxu0 %v4715_v63 }
 0x2a7   :  { %3894 = vmatpush1.bf16.msra.mxu0 %v4713_v0 }
 0x2a8   :  { %3895 = vmatprep.subr.bf16.mxu0 %v4718_v1  ;;  %v3135_v1 = vld [vmem:[#allocation10] sm:$0x3] }
 0x2ab   :  { %3896 = vmatpush1.bf16.msra.mxu0 %v4716_v4  ;;  %v3140_v4 = vrot.slane %v3135_v1, %v479_v22 }
 0x2ac   :  { %3897 = vmatprep.subr.bf16.mxu0 %v4721_v6  ;;  %v3144_v6 = vrot.slane %v3135_v1, %v483_v25 }
 0x2af   :  { %3898 = vmatpush1.bf16.msra.mxu0 %v4719_v7 }
 0x2b0   :  { %3899 = vmatprep.subr.bf16.mxu0 %v4724_v8 }
 0x2b3   :  { %3900 = vmatpush1.bf16.msra.mxu0 %v4722_v10 }
 0x2b4   :  { %3901 = vmatprep.subr.bf16.mxu0 %v4727_v13 }
 0x2b7   :  { %3902 = vmatpush1.bf16.msra.mxu0 %v4725_v14 }
 0x2b8   :  { %3903 = vmatprep.subr.bf16.mxu0 %v4730_v16 }
 0x2bb   :  { %3904 = vmatpush1.bf16.msra.mxu0 %v4728_v17 }
 0x2bc   :  { %3916 = vmatprep.subr.bf16.mxu0 %v4733_v39 }
 0x2be   :  { %3906 = vmatmul.mubr.bf16.vlgmr.msra.gmra.mrb[8].mxu0 %v5088_v60  ;;  %v4751_v60 = vld [vmem:[#allocation8 + $0x364] ss:$8 sps:$4 sm:$0xff]  }
 0x2bf   :  { %3917 = vmatpush1.bf16.msra.mxu0 %v4731_v19 }
 0x2c0   :  { %3918 = vmatprep.subr.bf16.mxu0 %v4736_v20 }
 0x2c3   :  { %3919 = vmatpush1.bf16.msra.mxu0 %v4734_v21 }
 0x2c4   :  { %3920 = vmatprep.subr.bf16.mxu0 %v4739_v23 }
 0x2c7   :  { %3921 = vmatpush1.bf16.msra.mxu0 %v4737_v26 }
 0x2c8   :  { %3922 = vmatprep.subr.bf16.mxu0 %v4742_v27 }
 0x2cb   :  { %3923 = vmatpush1.bf16.msra.mxu0 %v4740_v28 }
 0x2cc   :  { %3924 = vmatprep.subr.bf16.mxu0 %v4745_v29 }
 0x2cf   :  { %3925 = vmatpush1.bf16.msra.mxu0 %v4743_v30 }
 0x2d0   :  { %3926 = vmatprep.subr.bf16.mxu0 %v4748_v31 }
 0x2d3   :  { %3927 = vmatpush1.bf16.msra.mxu0 %v4746_v32 }
 0x2d4   :  { %3928 = vmatprep.subr.bf16.mxu0 %v4751_v60 }
 0x2d7   :  { %3929 = vmatpush1.bf16.msra.mxu0 %v4749_v33 }
 0x2d8   :  { %3930 = vmatprep.subr.bf16.mxu0 %v4754_v34 }
 0x2db   :  { %3931 = vmatpush1.bf16.msra.mxu0 %v4752_v35 }
 0x2dc   :  { %3932 = vmatprep.subr.bf16.mxu0 %v4757_v36 }
 0x2df   :  { %3933 = vmatpush1.bf16.msra.mxu0 %v4755_v37 }
 0x2e0   :  { %3934 = vmatprep.subr.bf16.mxu0 %v4760_v38 }
 0x2e3   :  { %3935 = vmatpush1.bf16.msra.mxu0 %v4758_v15 }
 0x2e4   :  { %3936 = vmatprep.subr.bf16.mxu0 %v4763_v40 }
 0x2e7   :  { %3937 = vmatpush1.bf16.msra.mxu0 %v4761_v44 }
 0x2e8   :  { %3938 = vmatprep.subr.bf16.mxu0 %v4766_v41 }
 0x2eb   :  { %3939 = vmatpush1.bf16.msra.mxu0 %v4764_v42 }
 0x2ec   :  { %3940 = vmatprep.subr.bf16.mxu0 %v4769_v43 }
 0x2ef   :  { %3941 = vmatpush1.bf16.msra.mxu0 %v4767_v45 }
 0x2f0   :  { %3942 = vmatprep.subr.bf16.mxu0 %v4772_v46 }
 0x2f3   :  { %3943 = vmatpush1.bf16.msra.mxu0 %v4770_v47 }
 0x2f4   :  { %3944 = vmatprep.subr.bf16.mxu0 %v4775_v3 }
 0x2f7   :  { %3945 = vmatpush1.bf16.msra.mxu0 %v4773_v48 }
 0x2f8   :  { %3946 = vmatprep.subr.bf16.mxu0 %v4778_v49 }
 0x2fb   :  { %3947 = vmatpush1.bf16.msra.mxu0 %v4776_v50 }
 0x333   :  { %v2974_v2 = vpop.f32.mrb[8].mxu1 }
 0x334   :  { %v4516_v54 = vadd.f32 %v2974_v2, %v504_v52  ;;  %v2976_v55 = vpop.f32.mrb[9].mxu1 }
 0x335   :  { %v4517_v56 = vadd.f32 %v2976_v55, %v508_v53  ;;  %v2978_v57 = vpop.f32.mrb[10].mxu1 }
 0x336   :  { %v4518_v58 = vadd.f32 %v2978_v57, %v504_v52  ;;  %v2980_v5 = vpop.f32.mrb[11].mxu1  ;;  %v2989_v9 = vmax.f32 %v4516_v54, 0.0 }
 0x337   :  { %v4519_v59 = vadd.f32 %v2980_v5, %v508_v53  ;;  %v2990_v61 = vmax.f32 %v4517_v56, 0.0 }
 0x338   :  { %v2997_v11 = vmax.f32 %v4518_v58, 0.0 }
 0x339   :  { %v2998_v62 = vmax.f32 %v4519_v59, 0.0 }
 0x33a   :  { %v3005_v63 = vpack.c.bf16 %v2997_v11, %v2989_v9 }
 0x33b   :  { %v3006_v0 = vpack.c.bf16 %v2998_v62, %v2990_v61 }
 0x33d   :  { %3948 = vmatprep.mubr.bf16.mxu0 %v3006_v0 }
 0x33e   :  { %3949 = vmatmul.mubr.bf16.vlgmr.msra.gmra.mrb[8].mxu0 %v3005_v63 }
 0x411   :  { %v3950_v7 = vpop.f32.mrb[8].mxu0 }
 0x412   :  { %v4520_v8 = vadd.f32 %v3950_v7, %v3140_v4  ;;  %v3952_v10 = vpop.f32.mrb[9].mxu0 }
 0x413   :  { %v4521_v13 = vadd.f32 %v3952_v10, %v3144_v6  ;;  %v3954_v14 = vpop.f32.mrb[10].mxu0 }
 0x414   :  { %3959 = vst [vmem:[#allocation11] sm:$0xff] %v4520_v8  ;;  %v4522_v16 = vadd.f32 %v3954_v14, %v3140_v4  ;;  %v3956_v17 = vpop.f32.mrb[11].mxu0 }
 0x415   :  { %3960 = vst [vmem:[#allocation11 + $0x8] sm:$0xff] %v4521_v13  ;;  %v4523_v39 = vadd.f32 %v3956_v17, %v3144_v6 }
 0x416   :  { %3961 = vst [vmem:[#allocation11 + $0x10] sm:$0xff] %v4522_v16 }
 0x417   :  { %3962 = vst [vmem:[#allocation11 + $0x18] sm:$0xff] %v4523_v39 }
 0x418   :  { %4911 = shalt.err (!%p4908_p2)
}
 0x419   :  { %s4912_s7 = scalar_lea.hbm %s5118_s5, 512 }
 0x41a   :  { %p4913_p3 = scmp.ne.s32.totalorder %s5118_s5, %s4912_s7  ;;  %p4916_p4 = scmp.lt.u32.totalorder %s4912_s7, %s5118_s5 }
 0x41c   :  { %p4918_p5 = pnand %p4916_p4, %p4913_p3 }
 0x41e   :  { %4921 = shalt.err (!%p4918_p5)
}
 0x41f   :  { %s4942_s12 = smov 256   ;;  %s4943_s13 = smov 16  }
 0x420   :  { %3974 = dma.vmem_to_hbm [thread:$0]  %s3969_s29, 512, %s5118_s5, [#allocation4], %s4942_s12, %s4942_s12, %s4943_s13  }
 0x421   :  { %4928 = dma.done.wait [#allocation4], 512  }
 0x422   :  { %4929 = vsyncadd [#allocation4], 4294966784 }
 0x423   :  { %3978 = vsyncpa [#allocation3], 1 }
 0x424   :  { %3979 = vsyncpa [#allocation6], 1 }
 0x425   :  { %3980 = vsyncpa [#allocation9], 1 }
 0x426   :  { %3981 = vsyncpa [#allocation4], 1 }

// kernel: tpu_custom_call.1
= control target key start
LH: loop header
LB: loop body
LE: loop exit
PB: predicated region body
PF: predicated region fallthrough
CT: control target
= control target key end

     0   :  { %10 = vsyncpa [#allocation3], 0  ;;  %s5113_s0 = inlined_call_operand.hbm [shape: bf16[16,768], index: 0, kind: input, shape index: {}]   ;;  %s5114_s1 = inlined_call_operand.hbm [shape: bf16[768,1024], index: 1, kind: input, shape index: {}]   ;;  %s5115_s2 = inlined_call_operand.hbm [shape: f32[1,1024], index: 2, kind: input, shape index: {}]   ;;  %s5116_s3 = inlined_call_operand.hbm [shape: bf16[1024,256], index: 3, kind: input, shape index: {}]   ;;  %s5117_s4 = inlined_call_operand.hbm [shape: f32[1,256], index: 4, kind: input, shape index: {}]   ;;  %s5118_s5 = inlined_call_operand.hbm [shape: f32[16,256], index: 5, kind: output, shape index: {}]  }
   0x1   :  { %11 = vsyncpa [#allocation6], 0 }
   0x2   :  { %12 = vsyncpa [#allocation9], 0 }
   0x3   :  { %13 = vsyncpa [#allocation4], 0  ;;  %s4930_s18 = smov [#allocation5]   ;;  %s4790_s22 = scalar_lea.hbm %s5114_s1, 49152 }
   0x4   :  { %s31_s19 = sshll.u32 %s4930_s18, 4  ;;  %p4791_p0 = scmp.ne.s32.totalorder %s5114_s1, %s4790_s22  ;;  %s32_s19 = int_to_ptr.vmem [resolvable:$true] %s31_s19 }
   0x5   :  { %p4794_p1 = scmp.lt.u32.totalorder %s4790_s22, %s5114_s1 }
   0x7   :  { %p4796_p2 = pnand %p4794_p1, %p4791_p0 }
   0x9   :  { %4799 = shalt.err (!%p4796_p2)
}
   0xa   :  { %s4800_s27 = scalar_lea.vmem %s32_s19, 49152  ;;  %p4805_p4 = scmp.lt.s32.totalorder %s32_s19, %s32_s19 }
   0xb   :  { %p4801_p3 = scmp.ne.s32.totalorder %s32_s19, %s4800_s27  ;;  %p4806_p5 = scmp.lt.s32.totalorder %s4800_s27, %s4800_s27 }
   0xd   :  { %p4807_p6 = por %p4806_p5, %p4805_p4 }
   0xf   :  { %p4808_p7 = pnand %p4807_p6, %p4801_p3 }
  0x11   :  { %4811 = shalt.err (!%p4808_p7)
}
  0x12   :  { %s4931_s28 = smov 512   ;;  %s4932_s29 = smov 32  }
  0x13   :  { %37 = dma.hbm_to_vmem [thread:$0]  %s5114_s1, 49152, %s32_s19, [#allocation6], %s4931_s28, %s4931_s28, %s4932_s29  }
  0x14   :  { %s4933_s7 = smov [#allocation8]   ;;  %s4812_s11 = scalar_lea.hbm %s5116_s3, 16384 }
  0x15   :  { %s53_s8 = sshll.u32 %s4933_s7, 4  ;;  %p4813_p8 = scmp.ne.s32.totalorder %s5116_s3, %s4812_s11  ;;  %s54_s8 = int_to_ptr.vmem [resolvable:$true] %s53_s8 }
  0x16   :  { %p4816_p9 = scmp.lt.u32.totalorder %s4812_s11, %s5116_s3 }
  0x18   :  { %p4818_p10 = pnand %p4816_p9, %p4813_p8 }
  0x1a   :  { %4821 = shalt.err (!%p4818_p10)
}
  0x1b   :  { %s4822_s16 = scalar_lea.vmem %s54_s8, 16384  ;;  %p4827_p12 = scmp.lt.s32.totalorder %s54_s8, %s54_s8 }
  0x1c   :  { %p4823_p11 = scmp.ne.s32.totalorder %s54_s8, %s4822_s16  ;;  %p4828_p13 = scmp.lt.s32.totalorder %s4822_s16, %s4822_s16 }
  0x1e   :  { %p4829_p0 = por %p4828_p13, %p4827_p12 }
  0x20   :  { %p4830_p1 = pnand %p4829_p0, %p4823_p11 }
  0x22   :  { %4833 = shalt.err (!%p4830_p1)
}
  0x23   :  { %s4934_s1 = smov 128   ;;  %s4935_s17 = smov 8  }
  0x24   :  { %59 = dma.hbm_to_vmem [thread:$0]  %s5116_s3, 16384, %s54_s8, [#allocation9], %s4934_s1, %s4934_s1, %s4935_s17  }
  0x25   :  { %s4936_s20 = smov [#allocation2]   ;;  %s4834_s24 = scalar_lea.hbm %s5113_s0, 768 }
  0x26   :  { %s19_s21 = sshll.u32 %s4936_s20, 4  ;;  %p4835_p2 = scmp.ne.s32.totalorder %s5113_s0, %s4834_s24  ;;  %s20_s21 = int_to_ptr.vmem [resolvable:$true] %s19_s21 }
  0x27   :  { %p4838_p3 = scmp.lt.u32.totalorder %s4834_s24, %s5113_s0 }
  0x29   :  { %p4840_p4 = pnand %p4838_p3, %p4835_p2 }
  0x2b   :  { %4843 = shalt.err (!%p4840_p4)
}
  0x2c   :  { %s4844_s29 = scalar_lea.vmem %s20_s21, 768  ;;  %p4849_p6 = scmp.lt.s32.totalorder %s20_s21, %s20_s21 }
  0x2d   :  { %p4845_p5 = scmp.ne.s32.totalorder %s20_s21, %s4844_s29  ;;  %p4850_p7 = scmp.lt.s32.totalorder %s4844_s29, %s4844_s29 }
  0x2f   :  { %p4851_p8 = por %p4850_p7, %p4849_p6 }
  0x31   :  { %p4852_p9 = pnand %p4851_p8, %p4845_p5 }
  0x33   :  { %4855 = shalt.err (!%p4852_p9)
}
  0x34   :  { %s4937_s3 = smov 384   ;;  %s4938_s30 = smov 24  }
  0x35   :  { %25 = dma.hbm_to_vmem [thread:$0]  %s5113_s0, 768, %s20_s21, [#allocation3], %s4937_s3, %s4937_s3, %s4938_s30  }
  0x36   :  { %s4939_s8 = smov [#allocation7]   ;;  %s4940_s10 = smov [#allocation10]  }
  0x37   :  { %s44_s9 = sshll.u32 %s4939_s8, 4  ;;  %s66_s11 = sshll.u32 %s4940_s10, 4  ;;  %s45_s9 = int_to_ptr.vmem [resolvable:$true] %s44_s9  ;;  %s67_s11 = int_to_ptr.vmem [resolvable:$true] %s66_s11 }
  0x38   :  { %s4856_s14 = scalar_lea.hbm %s5115_s2, 128 }
  0x39   :  { %p4857_p10 = scmp.ne.s32.totalorder %s5115_s2, %s4856_s14  ;;  %p4860_p11 = scmp.lt.u32.totalorder %s4856_s14, %s5115_s2 }
  0x3b   :  { %p4862_p12 = pnand %p4860_p11, %p4857_p10 }
  0x3d   :  { %4865 = shalt.err (!%p4862_p12)
}
  0x3e   :  { %s4866_s0 = scalar_lea.vmem %s45_s9, 128  ;;  %p4871_p0 = scmp.lt.s32.totalorder %s45_s9, %s45_s9 }
  0x3f   :  { %p4867_p13 = scmp.ne.s32.totalorder %s45_s9, %s4866_s0  ;;  %p4872_p1 = scmp.lt.s32.totalorder %s4866_s0, %s4866_s0 }
  0x41   :  { %p4873_p2 = por %p4872_p1, %p4871_p0 }
  0x43   :  { %p4874_p3 = pnand %p4873_p2, %p4867_p13 }
  0x45   :  { %4877 = shalt.err (!%p4874_p3)
}
  0x46   :  { %47 = dma.hbm_to_vmem [thread:$0]  %s5115_s2, 128, %s45_s9, [#allocation6]  }
  0x47   :  { %s4878_s22 = scalar_lea.hbm %s5117_s4, 32 }
  0x48   :  { %p4879_p4 = scmp.ne.s32.totalorder %s5117_s4, %s4878_s22  ;;  %p4882_p5 = scmp.lt.u32.totalorder %s4878_s22, %s5117_s4 }
  0x4a   :  { %p4884_p6 = pnand %p4882_p5, %p4879_p4 }
  0x4c   :  { %4887 = shalt.err (!%p4884_p6)
}
  0x4d   :  { %s4888_s27 = scalar_lea.vmem %s67_s11, 32  ;;  %p4893_p8 = scmp.lt.s32.totalorder %s67_s11, %s67_s11 }
  0x4e   :  { %p4889_p7 = scmp.ne.s32.totalorder %s67_s11, %s4888_s27  ;;  %p4894_p9 = scmp.lt.s32.totalorder %s4888_s27, %s4888_s27 }
  0x50   :  { %p4895_p10 = por %p4894_p9, %p4893_p8 }
  0x52   :  { %p4896_p11 = pnand %p4895_p10, %p4889_p7 }
  0x54   :  { %4899 = shalt.err (!%p4896_p11)
}
  0x55   :  { %69 = dma.hbm_to_vmem [thread:$0]  %s5117_s4, 32, %s67_s11, [#allocation9]  }
  0x56   :  { %4922 = dma.done.wait [#allocation3], 768  }
  0x57   :  { %4923 = vsyncadd [#allocation3], 4294966528 }
  0x58   :  { %4924 = dma.done.wait [#allocation6], 49280  }
  0x59   :  { %4925 = vsyncadd [#allocation6], 4294918016 }
  0x5a   :  { %4926 = dma.done.wait [#allocation9], 16416  }
  0x5b   :  { %4927 = vsyncadd [#allocation9], 4294950880  ;;  %v91_v0 = vld [vmem:[#allocation5] sm:$0xff]  ;;  %v5034_v39 = vld [vmem:[#allocation2 + $0x4] ss:$24 sps:$4 sm:$0xff]   ;;  %s4941_s4 = smov [#allocation11]  }
  0x5c   :  { %v95_v1 = vld [vmem:[#allocation5 + $0x20] sm:$0xff]  ;;  %2499 = vmatprep.mubr.bf16.mxu1 %v5034_v39  ;;  %s3968_s29 = sshll.u32 %s4941_s4, 4  ;;  %s3969_s29 = int_to_ptr.vmem [resolvable:$true] %s3968_s29 }
  0x5d   :  { %v99_v2 = vld [vmem:[#allocation5 + $0x40] sm:$0xff]  ;;  %v3989_v3 = vcombine.high %v91_v0, %v95_v1  ;;  %v3988_v4 = vcombine.low %v91_v0, %v95_v1  ;;  %s4900_s3 = scalar_lea.vmem %s3969_s29, 512  ;;  %p4905_p13 = scmp.lt.s32.totalorder %s3969_s29, %s3969_s29 }
  0x5e   :  { %v103_v5 = vld [vmem:[#allocation5 + $0x60] sm:$0xff]  ;;  %p4901_p12 = scmp.ne.s32.totalorder %s3969_s29, %s4900_s3  ;;  %p4906_p0 = scmp.lt.s32.totalorder %s4900_s3, %s4900_s3 }
  0x5f   :  { %v3997_v6 = vcombine.high %v99_v2, %v103_v5  ;;  %v107_v7 = vld [vmem:[#allocation5 + $0x80] sm:$0xff]  ;;  %2467 = vmatprep.subr.bf16.mxu1 %v3989_v3  ;;  %v3996_v9 = vcombine.low %v99_v2, %v103_v5 }
  0x60   :  { %v111_v8 = vld [vmem:[#allocation5 + $0xa0] sm:$0xff]  ;;  %2468 = vmatpush1.bf16.msra.mxu1 %v3988_v4  ;;  %p4907_p1 = por %p4906_p0, %p4905_p13 }
  0x61   :  { %2469 = vmatprep.subr.bf16.mxu1 %v3997_v6  ;;  %v4005_v10 = vcombine.high %v107_v7, %v111_v8  ;;  %v115_v11 = vld [vmem:[#allocation5 + $0xc0] sm:$0xff]  ;;  %v4004_v19 = vcombine.low %v107_v7, %v111_v8 }
  0x62   :  { %v119_v12 = vld [vmem:[#allocation5 + $0xe0] sm:$0xff]  ;;  %p4908_p2 = pnand %p4907_p1, %p4901_p12 }
  0x63   :  { %v347_v13 = vld [vmem:[#allocation5 + $0x800] sm:$0xff]  ;;  %v4013_v22 = vcombine.high %v115_v11, %v119_v12  ;;  %v4012_v28 = vcombine.low %v115_v11, %v119_v12 }
  0x64   :  { %v351_v14 = vld [vmem:[#allocation5 + $0x820] sm:$0xff]  ;;  %2470 = vmatpush1.bf16.msra.mxu1 %v3996_v9 }
  0x65   :  { %v4245_v15 = vcombine.high %v347_v13, %v351_v14  ;;  %v4244_v16 = vcombine.low %v347_v13, %v351_v14  ;;  %v355_v17 = vld [vmem:[#allocation5 + $0x840] sm:$0xff]  ;;  %2471 = vmatprep.subr.bf16.mxu1 %v4005_v10 }
  0x66   :  { %v359_v18 = vld [vmem:[#allocation5 + $0x860] sm:$0xff] }
  0x67   :  { %v4253_v20 = vcombine.high %v355_v17, %v359_v18  ;;  %v363_v21 = vld [vmem:[#allocation5 + $0x880] sm:$0xff]  ;;  %2553 = vmatprep.subr.bf16.mxu0 %v4245_v15  ;;  %v4252_v26 = vcombine.low %v355_v17, %v359_v18 }
  0x68   :  { %v367_v23 = vld [vmem:[#allocation5 + $0x8a0] sm:$0xff]  ;;  %2554 = vmatpush1.bf16.msra.mxu0 %v4244_v16  ;;  %2472 = vmatpush1.bf16.msra.mxu1 %v4004_v19 }
  0x69   :  { %v123_v24 = vld [vmem:[#allocation5 + $0x100] sm:$0xff]  ;;  %2555 = vmatprep.subr.bf16.mxu0 %v4253_v20  ;;  %v4261_v27 = vcombine.high %v363_v21, %v367_v23  ;;  %2473 = vmatprep.subr.bf16.mxu1 %v4013_v22  ;;  %v4260_v34 = vcombine.low %v363_v21, %v367_v23 }
  0x6a   :  { %v127_v25 = vld [vmem:[#allocation5 + $0x120] sm:$0xff] }
  0x6b   :  { %v371_v29 = vld [vmem:[#allocation5 + $0x8c0] sm:$0xff]  ;;  %v4021_v31 = vcombine.high %v123_v24, %v127_v25  ;;  %v4020_v38 = vcombine.low %v123_v24, %v127_v25 }
  0x6c   :  { %v375_v30 = vld [vmem:[#allocation5 + $0x8e0] sm:$0xff]  ;;  %2556 = vmatpush1.bf16.msra.mxu0 %v4252_v26  ;;  %2474 = vmatpush1.bf16.msra.mxu1 %v4012_v28 }
  0x6d   :  { %v131_v32 = vld [vmem:[#allocation5 + $0x140] sm:$0xff]  ;;  %2557 = vmatprep.subr.bf16.mxu0 %v4261_v27  ;;  %v4269_v35 = vcombine.high %v371_v29, %v375_v30  ;;  %2475 = vmatprep.subr.bf16.mxu1 %v4021_v31  ;;  %v4268_v43 = vcombine.low %v371_v29, %v375_v30 }
  0x6e   :  { %v135_v33 = vld [vmem:[#allocation5 + $0x160] sm:$0xff] }
  0x6f   :  { %v379_v36 = vld [vmem:[#allocation5 + $0x900] sm:$0xff]  ;;  %v4029_v40 = vcombine.high %v131_v32, %v135_v33  ;;  %v4028_v45 = vcombine.low %v131_v32, %v135_v33 }
  0x70   :  { %v383_v37 = vld [vmem:[#allocation5 + $0x920] sm:$0xff]  ;;  %2558 = vmatpush1.bf16.msra.mxu0 %v4260_v34  ;;  %2476 = vmatpush1.bf16.msra.mxu1 %v4020_v38 }
  0x71   :  { %v139_v41 = vld [vmem:[#allocation5 + $0x180] sm:$0xff]  ;;  %2559 = vmatprep.subr.bf16.mxu0 %v4269_v35  ;;  %v4277_v44 = vcombine.high %v379_v36, %v383_v37  ;;  %2477 = vmatprep.subr.bf16.mxu1 %v4029_v40  ;;  %v4276_v51 = vcombine.low %v379_v36, %v383_v37 }
  0x72   :  { %v143_v42 = vld [vmem:[#allocation5 + $0x1a0] sm:$0xff] }
  0x73   :  { %v387_v46 = vld [vmem:[#allocation5 + $0x940] sm:$0xff]  ;;  %v4037_v48 = vcombine.high %v139_v41, %v143_v42  ;;  %v4036_v53 = vcombine.low %v139_v41, %v143_v42 }
  0x74   :  { %v391_v47 = vld [vmem:[#allocation5 + $0x960] sm:$0xff]  ;;  %2560 = vmatpush1.bf16.msra.mxu0 %v4268_v43  ;;  %2478 = vmatpush1.bf16.msra.mxu1 %v4028_v45 }
  0x75   :  { %v147_v49 = vld [vmem:[#allocation5 + $0x1c0] sm:$0xff]  ;;  %2561 = vmatprep.subr.bf16.mxu0 %v4277_v44  ;;  %v4285_v52 = vcombine.high %v387_v46, %v391_v47  ;;  %2479 = vmatprep.subr.bf16.mxu1 %v4037_v48  ;;  %v4284_v59 = vcombine.low %v387_v46, %v391_v47 }
  0x76   :  { %v151_v50 = vld [vmem:[#allocation5 + $0x1e0] sm:$0xff] }
  0x77   :  { %v395_v54 = vld [vmem:[#allocation5 + $0x980] sm:$0xff]  ;;  %v4045_v56 = vcombine.high %v147_v49, %v151_v50  ;;  %v4044_v61 = vcombine.low %v147_v49, %v151_v50 }
  0x78   :  { %v399_v55 = vld [vmem:[#allocation5 + $0x9a0] sm:$0xff]  ;;  %2562 = vmatpush1.bf16.msra.mxu0 %v4276_v51  ;;  %2480 = vmatpush1.bf16.msra.mxu1 %v4036_v53 }
  0x79   :  { %v155_v57 = vld [vmem:[#allocation5 + $0x200] sm:$0xff]  ;;  %2563 = vmatprep.subr.bf16.mxu0 %v4285_v52  ;;  %v4293_v60 = vcombine.high %v395_v54, %v399_v55  ;;  %2481 = vmatprep.subr.bf16.mxu1 %v4045_v56  ;;  %v4292_v4 = vcombine.low %v395_v54, %v399_v55 }
  0x7a   :  { %v159_v58 = vld [vmem:[#allocation5 + $0x220] sm:$0xff] }
  0x7b   :  { %v403_v62 = vld [vmem:[#allocation5 + $0x9c0] sm:$0xff]  ;;  %v4053_v0 = vcombine.high %v155_v57, %v159_v58  ;;  %v4052_v6 = vcombine.low %v155_v57, %v159_v58 }
  0x7c   :  { %v407_v63 = vld [vmem:[#allocation5 + $0x9e0] sm:$0xff]  ;;  %2564 = vmatpush1.bf16.msra.mxu0 %v4284_v59  ;;  %2482 = vmatpush1.bf16.msra.mxu1 %v4044_v61 }
  0x7d   :  { %v4581_v1 = vld [vmem:[#allocation2 + $0x14] ss:$24 sps:$4 sm:$0xff]   ;;  %2565 = vmatprep.subr.bf16.mxu0 %v4293_v60  ;;  %v4301_v5 = vcombine.high %v403_v62, %v407_v63  ;;  %2483 = vmatprep.subr.bf16.mxu1 %v4053_v0  ;;  %v4300_v12 = vcombine.low %v403_v62, %v407_v63 }
  0x7e   :  { %v163_v2 = vld [vmem:[#allocation5 + $0x240] sm:$0xff]  ;;  %2585 = vmatprep.mubr.bf16.mxu0 %v4581_v1 }
  0x7f   :  { %v167_v3 = vld [vmem:[#allocation5 + $0x260] sm:$0xff] }
  0x80   :  { %v411_v7 = vld [vmem:[#allocation5 + $0xa00] sm:$0xff]  ;;  %v4061_v9 = vcombine.high %v163_v2, %v167_v3  ;;  %2566 = vmatpush1.bf16.msra.mxu0 %v4292_v4  ;;  %2484 = vmatpush1.bf16.msra.mxu1 %v4052_v6  ;;  %v4060_v14 = vcombine.low %v163_v2, %v167_v3  ;;  %v5037_v3 = vld [vmem:[#allocation2] ss:$24 sps:$4 sm:$0xff]  }
  0x81   :  { %v415_v8 = vld [vmem:[#allocation5 + $0xa20] sm:$0xff]  ;;  %2567 = vmatprep.subr.bf16.mxu0 %v4301_v5 }
  0x82   :  { %v171_v10 = vld [vmem:[#allocation5 + $0x280] sm:$0xff]  ;;  %v4309_v13 = vcombine.high %v411_v7, %v415_v8  ;;  %2485 = vmatprep.subr.bf16.mxu1 %v4061_v9  ;;  %v4308_v20 = vcombine.low %v411_v7, %v415_v8 }
  0x83   :  { %v175_v11 = vld [vmem:[#allocation5 + $0x2a0] sm:$0xff] }
  0x84   :  { %v419_v15 = vld [vmem:[#allocation5 + $0xa40] sm:$0xff]  ;;  %v4069_v17 = vcombine.high %v171_v10, %v175_v11  ;;  %2568 = vmatpush1.bf16.msra.mxu0 %v4300_v12  ;;  %2486 = vmatpush1.bf16.msra.mxu1 %v4060_v14  ;;  %v4068_v23 = vcombine.low %v171_v10, %v175_v11  ;;  %v93_v10 = vld [vmem:[#allocation5 + $0x10] sm:$0xff] }
  0x85   :  { %v423_v16 = vld [vmem:[#allocation5 + $0xa60] sm:$0xff]  ;;  %2569 = vmatprep.subr.bf16.mxu0 %v4309_v13  ;;  %v97_v11 = vld [vmem:[#allocation5 + $0x30] sm:$0xff] }
  0x86   :  { %v179_v18 = vld [vmem:[#allocation5 + $0x2c0] sm:$0xff]  ;;  %v4317_v21 = vcombine.high %v419_v15, %v423_v16  ;;  %2487 = vmatprep.subr.bf16.mxu1 %v4069_v17  ;;  %v4316_v28 = vcombine.low %v419_v15, %v423_v16  ;;  %v5039_v12 = vld [vmem:[#allocation2 + $0xc] ss:$24 sps:$4 sm:$0xff]   ;;  %v3993_v16 = vcombine.high %v93_v10, %v97_v11 }
  0x87   :  { %v183_v19 = vld [vmem:[#allocation5 + $0x2e0] sm:$0xff] }
  0x88   :  { %v427_v22 = vld [vmem:[#allocation5 + $0xa80] sm:$0xff]  ;;  %v4077_v25 = vcombine.high %v179_v18, %v183_v19  ;;  %2570 = vmatpush1.bf16.msra.mxu0 %v4308_v20  ;;  %2488 = vmatpush1.bf16.msra.mxu1 %v4068_v23  ;;  %v4076_v30 = vcombine.low %v179_v18, %v183_v19  ;;  %v101_v20 = vld [vmem:[#allocation5 + $0x50] sm:$0xff] }
  0x89   :  { %v431_v24 = vld [vmem:[#allocation5 + $0xaa0] sm:$0xff]  ;;  %2571 = vmatprep.subr.bf16.mxu0 %v4317_v21  ;;  %v105_v21 = vld [vmem:[#allocation5 + $0x70] sm:$0xff] }
  0x8a   :  { %v187_v26 = vld [vmem:[#allocation5 + $0x300] sm:$0xff]  ;;  %v4325_v29 = vcombine.high %v427_v22, %v431_v24  ;;  %2489 = vmatprep.subr.bf16.mxu1 %v4077_v25  ;;  %v4324_v36 = vcombine.low %v427_v22, %v431_v24  ;;  %v3992_v24 = vcombine.low %v93_v10, %v97_v11  ;;  %v4001_v25 = vcombine.high %v101_v20, %v105_v21 }
  0x8b   :  { %v191_v27 = vld [vmem:[#allocation5 + $0x320] sm:$0xff] }
  0x8c   :  { %v435_v31 = vld [vmem:[#allocation5 + $0xac0] sm:$0xff]  ;;  %v4085_v33 = vcombine.high %v187_v26, %v191_v27  ;;  %2572 = vmatpush1.bf16.msra.mxu0 %v4316_v28  ;;  %2490 = vmatpush1.bf16.msra.mxu1 %v4076_v30  ;;  %v4084_v38 = vcombine.low %v187_v26, %v191_v27  ;;  %v109_v28 = vld [vmem:[#allocation5 + $0x90] sm:$0xff] }
  0x8d   :  { %v439_v32 = vld [vmem:[#allocation5 + $0xae0] sm:$0xff]  ;;  %2573 = vmatprep.subr.bf16.mxu0 %v4325_v29  ;;  %v113_v29 = vld [vmem:[#allocation5 + $0xb0] sm:$0xff] }
  0x8e   :  { %v195_v34 = vld [vmem:[#allocation5 + $0x340] sm:$0xff]  ;;  %v4333_v37 = vcombine.high %v435_v31, %v439_v32  ;;  %2491 = vmatprep.subr.bf16.mxu1 %v4085_v33  ;;  %v4332_v45 = vcombine.low %v435_v31, %v439_v32  ;;  %v4000_v32 = vcombine.low %v101_v20, %v105_v21  ;;  %v4009_v33 = vcombine.high %v109_v28, %v113_v29 }
  0x8f   :  { %v199_v35 = vld [vmem:[#allocation5 + $0x360] sm:$0xff] }
  0x90   :  { %v443_v40 = vld [vmem:[#allocation5 + $0xb00] sm:$0xff]  ;;  %v4093_v42 = vcombine.high %v195_v34, %v199_v35  ;;  %2574 = vmatpush1.bf16.msra.mxu0 %v4324_v36  ;;  %2492 = vmatpush1.bf16.msra.mxu1 %v4084_v38  ;;  %v4092_v47 = vcombine.low %v195_v34, %v199_v35  ;;  %v117_v36 = vld [vmem:[#allocation5 + $0xd0] sm:$0xff] }
  0x91   :  { %v447_v41 = vld [vmem:[#allocation5 + $0xb20] sm:$0xff]  ;;  %2575 = vmatprep.subr.bf16.mxu0 %v4333_v37  ;;  %v121_v37 = vld [vmem:[#allocation5 + $0xf0] sm:$0xff] }
  0x92   :  { %v203_v43 = vld [vmem:[#allocation5 + $0x380] sm:$0xff]  ;;  %v4341_v46 = vcombine.high %v443_v40, %v447_v41  ;;  %2493 = vmatprep.subr.bf16.mxu1 %v4093_v42  ;;  %v4340_v53 = vcombine.low %v443_v40, %v447_v41  ;;  %v4008_v41 = vcombine.low %v109_v28, %v113_v29  ;;  %v4017_v42 = vcombine.high %v117_v36, %v121_v37 }
  0x93   :  { %v207_v44 = vld [vmem:[#allocation5 + $0x3a0] sm:$0xff] }
  0x94   :  { %v451_v48 = vld [vmem:[#allocation5 + $0xb40] sm:$0xff]  ;;  %v4101_v50 = vcombine.high %v203_v43, %v207_v44  ;;  %2576 = vmatpush1.bf16.msra.mxu0 %v4332_v45  ;;  %2494 = vmatpush1.bf16.msra.mxu1 %v4092_v47  ;;  %v4100_v55 = vcombine.low %v203_v43, %v207_v44  ;;  %v125_v45 = vld [vmem:[#allocation5 + $0x110] sm:$0xff] }
  0x95   :  { %v455_v49 = vld [vmem:[#allocation5 + $0xb60] sm:$0xff]  ;;  %2577 = vmatprep.subr.bf16.mxu0 %v4341_v46  ;;  %v129_v46 = vld [vmem:[#allocation5 + $0x130] sm:$0xff] }
  0x96   :  { %v211_v51 = vld [vmem:[#allocation5 + $0x3c0] sm:$0xff]  ;;  %v4349_v54 = vcombine.high %v451_v48, %v455_v49  ;;  %2495 = vmatprep.subr.bf16.mxu1 %v4101_v50  ;;  %v4348_v61 = vcombine.low %v451_v48, %v455_v49  ;;  %v4016_v49 = vcombine.low %v117_v36, %v121_v37  ;;  %v4025_v50 = vcombine.high %v125_v45, %v129_v46 }
  0x97   :  { %v215_v52 = vld [vmem:[#allocation5 + $0x3e0] sm:$0xff] }
  0x98   :  { %v459_v56 = vld [vmem:[#allocation5 + $0xb80] sm:$0xff]  ;;  %v4109_v58 = vcombine.high %v211_v51, %v215_v52  ;;  %2578 = vmatpush1.bf16.msra.mxu0 %v4340_v53  ;;  %2496 = vmatpush1.bf16.msra.mxu1 %v4100_v55  ;;  %v4108_v63 = vcombine.low %v211_v51, %v215_v52  ;;  %v133_v53 = vld [vmem:[#allocation5 + $0x150] sm:$0xff] }
  0x99   :  { %v463_v57 = vld [vmem:[#allocation5 + $0xba0] sm:$0xff]  ;;  %2579 = vmatprep.subr.bf16.mxu0 %v4349_v54  ;;  %v137_v54 = vld [vmem:[#allocation5 + $0x170] sm:$0xff] }
  0x9a   :  { %v219_v59 = vld [vmem:[#allocation5 + $0x400] sm:$0xff]  ;;  %v4357_v62 = vcombine.high %v459_v56, %v463_v57  ;;  %2497 = vmatprep.subr.bf16.mxu1 %v4109_v58  ;;  %v4356_v6 = vcombine.low %v459_v56, %v463_v57  ;;  %v4024_v57 = vcombine.low %v125_v45, %v129_v46  ;;  %v4033_v58 = vcombine.high %v133_v53, %v137_v54 }
  0x9b   :  { %v223_v60 = vld [vmem:[#allocation5 + $0x420] sm:$0xff] }
  0x9c   :  { %v467_v0 = vld [vmem:[#allocation5 + $0xbc0] sm:$0xff]  ;;  %v4117_v2 = vcombine.high %v219_v59, %v223_v60  ;;  %2580 = vmatpush1.bf16.msra.mxu0 %v4348_v61  ;;  %2498 = vmatpush1.bf16.msra.mxu1 %v4108_v63  ;;  %v4116_v8 = vcombine.low %v219_v59, %v223_v60  ;;  %v141_v61 = vld [vmem:[#allocation5 + $0x190] sm:$0xff] }
  0x9d   :  { %v471_v1 = vld [vmem:[#allocation5 + $0xbe0] sm:$0xff]  ;;  %2581 = vmatprep.subr.bf16.mxu0 %v4357_v62  ;;  %v145_v62 = vld [vmem:[#allocation5 + $0x1b0] sm:$0xff] }
  0x9e   :  { %v227_v4 = vld [vmem:[#allocation5 + $0x440] sm:$0xff]  ;;  %v4365_v7 = vcombine.high %v467_v0, %v471_v1  ;;  %2510 = vmatprep.subr.bf16.mxu1 %v4117_v2  ;;  %v4364_v15 = vcombine.low %v467_v0, %v471_v1  ;;  %v4032_v1 = vcombine.low %v133_v53, %v137_v54  ;;  %v4041_v2 = vcombine.high %v141_v61, %v145_v62 }
  0x9f   :  { %v231_v5 = vld [vmem:[#allocation5 + $0x460] sm:$0xff]  ;;  %2500 = vmatmul.mubr.bf16.vlgmr.msra.gmra.mrb[0].mxu1 %v5037_v3  ;;  %v4040_v10 = vcombine.low %v141_v61, %v145_v62 }
  0xa0   :  { %v235_v9 = vld [vmem:[#allocation5 + $0x480] sm:$0xff]  ;;  %v4125_v13 = vcombine.high %v227_v4, %v231_v5  ;;  %2582 = vmatpush1.bf16.msra.mxu0 %v4356_v6  ;;  %2511 = vmatpush1.bf16.msra.mxu1 %v4116_v8  ;;  %v4124_v17 = vcombine.low %v227_v4, %v231_v5  ;;  %v149_v6 = vld [vmem:[#allocation5 + $0x1d0] sm:$0xff] }
  0xa1   :  { %v239_v14 = vld [vmem:[#allocation5 + $0x4a0] sm:$0xff]  ;;  %2583 = vmatprep.subr.bf16.mxu0 %v4365_v7  ;;  %2542 = vmatprep.mubr.bf16.mxu1 %v5039_v12  ;;  %v153_v7 = vld [vmem:[#allocation5 + $0x1f0] sm:$0xff] }
  0xa2   :  { %v243_v18 = vld [vmem:[#allocation5 + $0x4c0] sm:$0xff]  ;;  %2512 = vmatprep.subr.bf16.mxu1 %v4125_v13  ;;  %v4133_v22 = vcombine.high %v235_v9, %v239_v14  ;;  %v4132_v26 = vcombine.low %v235_v9, %v239_v14  ;;  %v4049_v11 = vcombine.high %v149_v6, %v153_v7 }
  0xa3   :  { %v247_v19 = vld [vmem:[#allocation5 + $0x4e0] sm:$0xff] }
  0xa4   :  { %v4583_v23 = vld [vmem:[#allocation2 + $0x10] ss:$24 sps:$4 sm:$0xff]   ;;  %2584 = vmatpush1.bf16.msra.mxu0 %v4364_v15  ;;  %2513 = vmatpush1.bf16.msra.mxu1 %v4124_v17  ;;  %v4141_v30 = vcombine.high %v243_v18, %v247_v19  ;;  %v4140_v34 = vcombine.low %v243_v18, %v247_v19  ;;  %v157_v15 = vld [vmem:[#allocation5 + $0x210] sm:$0xff]  ;;  %v4048_v19 = vcombine.low %v149_v6, %v153_v7 }
  0xa5   :  { %2725 = vmatprep.subr.bf16.mxu0 %v3993_v16  ;;  %v251_v27 = vld [vmem:[#allocation5 + $0x500] sm:$0xff]  ;;  %2514 = vmatprep.subr.bf16.mxu1 %v4133_v22  ;;  %v161_v16 = vld [vmem:[#allocation5 + $0x230] sm:$0xff] }
  0xa6   :  { %v255_v31 = vld [vmem:[#allocation5 + $0x520] sm:$0xff]  ;;  %v4057_v20 = vcombine.high %v157_v15, %v161_v16 }
  0xa7   :  { %2586 = vmatmul.mubr.bf16.vlgmr.msra.gmra.mrb[0].mxu0 %v4583_v23  ;;  %v259_v35 = vld [vmem:[#allocation5 + $0x540] sm:$0xff]  ;;  %v4149_v38 = vcombine.high %v251_v27, %v255_v31  ;;  %v4148_v43 = vcombine.low %v251_v27, %v255_v31  ;;  %v165_v23 = vld [vmem:[#allocation5 + $0x250] sm:$0xff]  ;;  %v4056_v27 = vcombine.low %v157_v15, %v161_v16 }
  0xa8   :  { %2726 = vmatpush1.bf16.msra.mxu0 %v3992_v24  ;;  %2757 = vmatprep.mubr.bf16.mxu0 %v5034_v39  ;;  %v263_v40 = vld [vmem:[#allocation5 + $0x560] sm:$0xff]  ;;  %v169_v24 = vld [vmem:[#allocation5 + $0x270] sm:$0xff] }
  0xa9   :  { %2727 = vmatprep.subr.bf16.mxu0 %v4001_v25  ;;  %2515 = vmatpush1.bf16.msra.mxu1 %v4132_v26  ;;  %v267_v44 = vld [vmem:[#allocation5 + $0x580] sm:$0xff]  ;;  %v4157_v47 = vcombine.high %v259_v35, %v263_v40  ;;  %v4156_v51 = vcombine.low %v259_v35, %v263_v40  ;;  %v4065_v28 = vcombine.high %v165_v23, %v169_v24  ;;  %v173_v31 = vld [vmem:[#allocation5 + $0x290] sm:$0xff] }
  0xaa   :  { %2516 = vmatprep.subr.bf16.mxu1 %v4141_v30  ;;  %v271_v48 = vld [vmem:[#allocation5 + $0x5a0] sm:$0xff]  ;;  %v4064_v35 = vcombine.low %v165_v23, %v169_v24  ;;  %v181_v40 = vld [vmem:[#allocation5 + $0x2d0] sm:$0xff] }
  0xab   :  { %v275_v52 = vld [vmem:[#allocation5 + $0x5c0] sm:$0xff]  ;;  %v4165_v55 = vcombine.high %v267_v44, %v271_v48  ;;  %v4164_v59 = vcombine.low %v267_v44, %v271_v48  ;;  %v189_v48 = vld [vmem:[#allocation5 + $0x310] sm:$0xff] }
  0xac   :  { %2728 = vmatpush1.bf16.msra.mxu0 %v4000_v32  ;;  %v279_v56 = vld [vmem:[#allocation5 + $0x5e0] sm:$0xff]  ;;  %v177_v32 = vld [vmem:[#allocation5 + $0x2b0] sm:$0xff] }
  0xad   :  { %2729 = vmatprep.subr.bf16.mxu0 %v4009_v33  ;;  %2517 = vmatpush1.bf16.msra.mxu1 %v4140_v34  ;;  %v283_v60 = vld [vmem:[#allocation5 + $0x600] sm:$0xff]  ;;  %v4173_v63 = vcombine.high %v275_v52, %v279_v56  ;;  %v4172_v4 = vcombine.low %v275_v52, %v279_v56  ;;  %v4073_v36 = vcombine.high %v173_v31, %v177_v32  ;;  %v197_v56 = vld [vmem:[#allocation5 + $0x350] sm:$0xff] }
  0xae   :  { %2518 = vmatprep.subr.bf16.mxu1 %v4149_v38  ;;  %v287_v0 = vld [vmem:[#allocation5 + $0x620] sm:$0xff]  ;;  %v4072_v44 = vcombine.low %v173_v31, %v177_v32  ;;  %v5044_v15 = vld [vmem:[#allocation2 + $0x8] ss:$24 sps:$4 sm:$0xff]  }
  0xaf   :  { %v291_v5 = vld [vmem:[#allocation5 + $0x640] sm:$0xff]  ;;  %v4181_v8 = vcombine.high %v283_v60, %v287_v0  ;;  %v4180_v13 = vcombine.low %v283_v60, %v287_v0  ;;  %v205_v0 = vld [vmem:[#allocation5 + $0x390] sm:$0xff] }
  0xb0   :  { %2730 = vmatpush1.bf16.msra.mxu0 %v4008_v41  ;;  %v295_v9 = vld [vmem:[#allocation5 + $0x660] sm:$0xff]  ;;  %v185_v41 = vld [vmem:[#allocation5 + $0x2f0] sm:$0xff] }
  0xb1   :  { %2731 = vmatprep.subr.bf16.mxu0 %v4017_v42  ;;  %2519 = vmatpush1.bf16.msra.mxu1 %v4148_v43  ;;  %v299_v14 = vld [vmem:[#allocation5 + $0x680] sm:$0xff]  ;;  %v4189_v17 = vcombine.high %v291_v5, %v295_v9  ;;  %v4188_v21 = vcombine.low %v291_v5, %v295_v9  ;;  %v4081_v45 = vcombine.high %v181_v40, %v185_v41  ;;  %v217_v9 = vld [vmem:[#allocation5 + $0x3f0] sm:$0xff] }
  0xb2   :  { %2520 = vmatprep.subr.bf16.mxu1 %v4157_v47  ;;  %v303_v18 = vld [vmem:[#allocation5 + $0x6a0] sm:$0xff]  ;;  %v4080_v52 = vcombine.low %v181_v40, %v185_v41 }
  0xb3   :  { %v307_v22 = vld [vmem:[#allocation5 + $0x6c0] sm:$0xff]  ;;  %v4197_v25 = vcombine.high %v299_v14, %v303_v18  ;;  %v4196_v29 = vcombine.low %v299_v14, %v303_v18  ;;  %v221_v18 = vld [vmem:[#allocation5 + $0x410] sm:$0xff] }
  0xb4   :  { %2732 = vmatpush1.bf16.msra.mxu0 %v4016_v49  ;;  %v311_v26 = vld [vmem:[#allocation5 + $0x6e0] sm:$0xff]  ;;  %v193_v49 = vld [vmem:[#allocation5 + $0x330] sm:$0xff] }
  0xb5   :  { %2733 = vmatprep.subr.bf16.mxu0 %v4025_v50  ;;  %2521 = vmatpush1.bf16.msra.mxu1 %v4156_v51  ;;  %v315_v30 = vld [vmem:[#allocation5 + $0x700] sm:$0xff]  ;;  %v4205_v33 = vcombine.high %v307_v22, %v311_v26  ;;  %v4204_v37 = vcombine.low %v307_v22, %v311_v26  ;;  %v4089_v53 = vcombine.high %v189_v48, %v193_v49  ;;  %v112_v22 = vld [vmem:[#allocation5 + $0xa8] sm:$0xff]  ;;  %v229_v26 = vld [vmem:[#allocation5 + $0x450] sm:$0xff] }
  0xb6   :  { %2522 = vmatprep.subr.bf16.mxu1 %v4165_v55  ;;  %v319_v34 = vld [vmem:[#allocation5 + $0x720] sm:$0xff]  ;;  %v4088_v60 = vcombine.low %v189_v48, %v193_v49  ;;  %v253_v49 = vld [vmem:[#allocation5 + $0x510] sm:$0xff] }
  0xb7   :  { %v323_v38 = vld [vmem:[#allocation5 + $0x740] sm:$0xff]  ;;  %v4213_v42 = vcombine.high %v315_v30, %v319_v34  ;;  %v4212_v46 = vcombine.low %v315_v30, %v319_v34  ;;  %v120_v30 = vld [vmem:[#allocation5 + $0xe8] sm:$0xff]  ;;  %v237_v34 = vld [vmem:[#allocation5 + $0x490] sm:$0xff] }
  0xb8   :  { %2734 = vmatpush1.bf16.msra.mxu0 %v4024_v57  ;;  %v327_v43 = vld [vmem:[#allocation5 + $0x760] sm:$0xff]  ;;  %v201_v57 = vld [vmem:[#allocation5 + $0x370] sm:$0xff] }
  0xb9   :  { %2735 = vmatprep.subr.bf16.mxu0 %v4033_v58  ;;  %2523 = vmatpush1.bf16.msra.mxu1 %v4164_v59  ;;  %v331_v47 = vld [vmem:[#allocation5 + $0x780] sm:$0xff]  ;;  %v4221_v50 = vcombine.high %v323_v38, %v327_v43  ;;  %v4220_v54 = vcombine.low %v323_v38, %v327_v43  ;;  %v4097_v61 = vcombine.high %v197_v56, %v201_v57  ;;  %v128_v38 = vld [vmem:[#allocation5 + $0x128] sm:$0xff]  ;;  %v249_v43 = vld [vmem:[#allocation5 + $0x4f0] sm:$0xff] }
  0xba   :  { %2524 = vmatprep.subr.bf16.mxu1 %v4173_v63  ;;  %v335_v51 = vld [vmem:[#allocation5 + $0x7a0] sm:$0xff]  ;;  %v92_v63 = vld [vmem:[#allocation5 + $0x8] sm:$0xff]  ;;  %v4096_v5 = vcombine.low %v197_v56, %v201_v57  ;;  %v261_v56 = vld [vmem:[#allocation5 + $0x550] sm:$0xff] }
  0xbb   :  { %v339_v55 = vld [vmem:[#allocation5 + $0x7c0] sm:$0xff]  ;;  %v4229_v58 = vcombine.high %v331_v47, %v335_v51  ;;  %v4228_v62 = vcombine.low %v331_v47, %v335_v51  ;;  %v140_v51 = vld [vmem:[#allocation5 + $0x188] sm:$0xff]  ;;  %v265_v57 = vld [vmem:[#allocation5 + $0x570] sm:$0xff] }
  0xbc   :  { %2736 = vmatpush1.bf16.msra.mxu0 %v4032_v1  ;;  %v343_v59 = vld [vmem:[#allocation5 + $0x7e0] sm:$0xff]  ;;  %v209_v1 = vld [vmem:[#allocation5 + $0x3b0] sm:$0xff] }
  0xbd   :  { %2737 = vmatprep.subr.bf16.mxu0 %v4041_v2  ;;  %2525 = vmatpush1.bf16.msra.mxu1 %v4172_v4  ;;  %v4237_v2 = vcombine.high %v339_v55, %v343_v59  ;;  %v96_v4 = vld [vmem:[#allocation5 + $0x28] sm:$0xff]  ;;  %v4105_v6 = vcombine.high %v205_v0, %v209_v1  ;;  %v4236_v7 = vcombine.low %v339_v55, %v343_v59 }
  0xbe   :  { %2526 = vmatprep.subr.bf16.mxu1 %v4181_v8  ;;  %v213_v8 = vld [vmem:[#allocation5 + $0x3d0] sm:$0xff]  ;;  %v4104_v14 = vcombine.low %v205_v0, %v209_v1  ;;  %v148_v59 = vld [vmem:[#allocation5 + $0x1c8] sm:$0xff] }
  0xbf   :  { %v4113_v16 = vcombine.high %v213_v8, %v217_v9  ;;  %v4112_v23 = vcombine.low %v213_v8, %v217_v9  ;;  %v269_v0 = vld [vmem:[#allocation5 + $0x590] sm:$0xff] }
  0xc0   :  { %2738 = vmatpush1.bf16.msra.mxu0 %v4040_v10  ;;  %v3991_v10 = vcombine.high %v92_v63, %v96_v4  ;;  %v273_v1 = vld [vmem:[#allocation5 + $0x5b0] sm:$0xff] }
  0xc1   :  { %2739 = vmatprep.subr.bf16.mxu0 %v4049_v11  ;;  %2527 = vmatpush1.bf16.msra.mxu1 %v4180_v13  ;;  %v100_v11 = vld [vmem:[#allocation5 + $0x48] sm:$0xff]  ;;  %v277_v9 = vld [vmem:[#allocation5 + $0x5d0] sm:$0xff] }
  0xc2   :  { %2528 = vmatprep.subr.bf16.mxu1 %v4189_v17  ;;  %v104_v13 = vld [vmem:[#allocation5 + $0x68] sm:$0xff]  ;;  %v3990_v17 = vcombine.low %v92_v63, %v96_v4 }
  0xc3   :  { %v156_v4 = vld [vmem:[#allocation5 + $0x208] sm:$0xff] }
  0xc4   :  { %2740 = vmatpush1.bf16.msra.mxu0 %v4048_v19  ;;  %v225_v19 = vld [vmem:[#allocation5 + $0x430] sm:$0xff] }
  0xc5   :  { %2741 = vmatprep.subr.bf16.mxu0 %v4057_v20  ;;  %2529 = vmatpush1.bf16.msra.mxu1 %v4188_v21  ;;  %v3999_v20 = vcombine.high %v100_v11, %v104_v13  ;;  %v108_v21 = vld [vmem:[#allocation5 + $0x88] sm:$0xff]  ;;  %v4121_v24 = vcombine.high %v221_v18, %v225_v19  ;;  %v4120_v31 = vcombine.low %v221_v18, %v225_v19  ;;  %v285_v19 = vld [vmem:[#allocation5 + $0x610] sm:$0xff] }
  0xc6   :  { %2530 = vmatprep.subr.bf16.mxu1 %v4197_v25  ;;  %v3998_v25 = vcombine.low %v100_v11, %v104_v13  ;;  %v164_v13 = vld [vmem:[#allocation5 + $0x248] sm:$0xff] }
  0xc8   :  { %2742 = vmatpush1.bf16.msra.mxu0 %v4056_v27  ;;  %v233_v27 = vld [vmem:[#allocation5 + $0x470] sm:$0xff] }
  0xc9   :  { %2743 = vmatprep.subr.bf16.mxu0 %v4065_v28  ;;  %2531 = vmatpush1.bf16.msra.mxu1 %v4196_v29  ;;  %v4007_v28 = vcombine.high %v108_v21, %v112_v22  ;;  %v116_v29 = vld [vmem:[#allocation5 + $0xc8] sm:$0xff]  ;;  %v4129_v32 = vcombine.high %v229_v26, %v233_v27 }
  0xca   :  { %2532 = vmatprep.subr.bf16.mxu1 %v4205_v33  ;;  %v4006_v33 = vcombine.low %v108_v21, %v112_v22  ;;  %v4014_v41 = vcombine.low %v116_v29, %v120_v30  ;;  %v172_v22 = vld [vmem:[#allocation5 + $0x288] sm:$0xff] }
  0xcc   :  { %2744 = vmatpush1.bf16.msra.mxu0 %v4064_v35  ;;  %v241_v35 = vld [vmem:[#allocation5 + $0x4b0] sm:$0xff] }
  0xcd   :  { %2745 = vmatprep.subr.bf16.mxu0 %v4073_v36  ;;  %2533 = vmatpush1.bf16.msra.mxu1 %v4204_v37  ;;  %v4015_v36 = vcombine.high %v116_v29, %v120_v30  ;;  %v124_v37 = vld [vmem:[#allocation5 + $0x108] sm:$0xff]  ;;  %v4137_v40 = vcombine.high %v237_v34, %v241_v35  ;;  %v4136_v47 = vcombine.low %v237_v34, %v241_v35  ;;  %v301_v35 = vld [vmem:[#allocation5 + $0x690] sm:$0xff] }
  0xce   :  { %2534 = vmatprep.subr.bf16.mxu1 %v4213_v42  ;;  %v245_v42 = vld [vmem:[#allocation5 + $0x4d0] sm:$0xff]  ;;  %v4022_v48 = vcombine.low %v124_v37, %v128_v38  ;;  %v180_v30 = vld [vmem:[#allocation5 + $0x2c8] sm:$0xff] }
  0xd0   :  { %2746 = vmatpush1.bf16.msra.mxu0 %v4072_v44  ;;  %v4023_v44 = vcombine.high %v124_v37, %v128_v38  ;;  %v188_v38 = vld [vmem:[#allocation5 + $0x308] sm:$0xff] }
  0xd1   :  { %2747 = vmatprep.subr.bf16.mxu0 %v4081_v45  ;;  %2535 = vmatpush1.bf16.msra.mxu1 %v4212_v46  ;;  %v132_v45 = vld [vmem:[#allocation5 + $0x148] sm:$0xff] }
  0xd2   :  { %2536 = vmatprep.subr.bf16.mxu1 %v4221_v50  ;;  %v136_v46 = vld [vmem:[#allocation5 + $0x168] sm:$0xff]  ;;  %v257_v50 = vld [vmem:[#allocation5 + $0x530] sm:$0xff] }
  0xd3   :  { %v4030_v55 = vcombine.low %v132_v45, %v136_v46 }
  0xd4   :  { %2748 = vmatpush1.bf16.msra.mxu0 %v4080_v52  ;;  %v144_v52 = vld [vmem:[#allocation5 + $0x1a8] sm:$0xff] }
  0xd5   :  { %2749 = vmatprep.subr.bf16.mxu0 %v4089_v53  ;;  %2537 = vmatpush1.bf16.msra.mxu1 %v4220_v54  ;;  %v4144_v53 = vcombine.low %v245_v42, %v249_v43  ;;  %v4153_v54 = vcombine.high %v253_v49, %v257_v50  ;;  %v4038_v63 = vcombine.low %v140_v51, %v144_v52 }
  0xd6   :  { %2538 = vmatprep.subr.bf16.mxu1 %v4229_v58  ;;  %v4039_v58 = vcombine.high %v140_v51, %v144_v52  ;;  %v204_v52 = vld [vmem:[#allocation5 + $0x388] sm:$0xff] }
  0xd8   :  { %2750 = vmatpush1.bf16.msra.mxu0 %v4088_v60  ;;  %v152_v60 = vld [vmem:[#allocation5 + $0x1e8] sm:$0xff] }
  0xd9   :  { %2751 = vmatprep.subr.bf16.mxu0 %v4097_v61  ;;  %2539 = vmatpush1.bf16.msra.mxu1 %v4228_v62  ;;  %v4152_v61 = vcombine.low %v253_v49, %v257_v50  ;;  %v4161_v62 = vcombine.high %v261_v56, %v265_v57  ;;  %v4046_v8 = vcombine.low %v148_v59, %v152_v60  ;;  %v317_v50 = vld [vmem:[#allocation5 + $0x710] sm:$0xff] }
  0xda   :  { %2540 = vmatprep.subr.bf16.mxu1 %v4237_v2  ;;  %v4047_v2 = vcombine.high %v148_v59, %v152_v60  ;;  %v212_v60 = vld [vmem:[#allocation5 + $0x3c8] sm:$0xff] }
  0xdc   :  { %2752 = vmatpush1.bf16.msra.mxu0 %v4096_v5  ;;  %v160_v5 = vld [vmem:[#allocation5 + $0x228] sm:$0xff] }
  0xdd   :  { %2753 = vmatprep.subr.bf16.mxu0 %v4105_v6  ;;  %2541 = vmatpush1.bf16.msra.mxu1 %v4236_v7  ;;  %v4160_v6 = vcombine.low %v261_v56, %v265_v57  ;;  %v4169_v7 = vcombine.high %v269_v0, %v273_v1  ;;  %v4055_v11 = vcombine.high %v156_v4, %v160_v5  ;;  %v325_v57 = vld [vmem:[#allocation5 + $0x750] sm:$0xff] }
  0xde   :  { %2596 = vmatprep.subr.bf16.mxu1 %v3991_v10  ;;  %v281_v10 = vld [vmem:[#allocation5 + $0x5f0] sm:$0xff]  ;;  %v4054_v18 = vcombine.low %v156_v4, %v160_v5  ;;  %v220_v5 = vld [vmem:[#allocation5 + $0x408] sm:$0xff] }
  0xe0   :  { %2754 = vmatpush1.bf16.msra.mxu0 %v4104_v14  ;;  %2543 = vmatmul.mubr.bf16.vlgmr.msra.gmra.mrb[0].mxu1 %v5044_v15  ;;  %v168_v14 = vld [vmem:[#allocation5 + $0x268] sm:$0xff] }
  0xe1   :  { %2755 = vmatprep.subr.bf16.mxu0 %v4113_v16  ;;  %2597 = vmatpush1.bf16.msra.mxu1 %v3990_v17  ;;  %v4168_v16 = vcombine.low %v269_v0, %v273_v1  ;;  %v4177_v17 = vcombine.high %v277_v9, %v281_v10  ;;  %v4063_v21 = vcombine.high %v164_v13, %v168_v14  ;;  %v333_v1 = vld [vmem:[#allocation5 + $0x790] sm:$0xff] }
  0xe2   :  { %2628 = vmatprep.mubr.bf16.mxu1 %v5034_v39  ;;  %2598 = vmatprep.subr.bf16.mxu1 %v3999_v20  ;;  %v4128_v39 = vcombine.low %v229_v26, %v233_v27  ;;  %v289_v20 = vld [vmem:[#allocation5 + $0x630] sm:$0xff]  ;;  %v4062_v26 = vcombine.low %v164_v13, %v168_v14  ;;  %v228_v14 = vld [vmem:[#allocation5 + $0x448] sm:$0xff] }
  0xe3   :  { %v293_v27 = vld [vmem:[#allocation5 + $0x650] sm:$0xff] }
  0xe4   :  { %2756 = vmatpush1.bf16.msra.mxu0 %v4112_v23  ;;  %v176_v23 = vld [vmem:[#allocation5 + $0x2a8] sm:$0xff] }
  0xe5   :  { %2768 = vmatprep.subr.bf16.mxu0 %v4121_v24  ;;  %2599 = vmatpush1.bf16.msra.mxu1 %v3998_v25  ;;  %v4176_v24 = vcombine.low %v277_v9, %v281_v10  ;;  %v4185_v25 = vcombine.high %v285_v19, %v289_v20  ;;  %v4071_v29 = vcombine.high %v172_v22, %v176_v23  ;;  %v341_v10 = vld [vmem:[#allocation5 + $0x7d0] sm:$0xff] }
  0xe6   :  { %2600 = vmatprep.subr.bf16.mxu1 %v4007_v28  ;;  %v297_v28 = vld [vmem:[#allocation5 + $0x670] sm:$0xff]  ;;  %v4070_v34 = vcombine.low %v172_v22, %v176_v23  ;;  %v236_v23 = vld [vmem:[#allocation5 + $0x488] sm:$0xff] }
  0xe7   :  { %2758 = vmatmul.mubr.bf16.vlgmr.msra.gmra.mrb[4].mxu0 %v5037_v3  ;;  %v4145_v3 = vcombine.high %v245_v42, %v249_v43  ;;  %v309_v43 = vld [vmem:[#allocation5 + $0x6d0] sm:$0xff] }
  0xe8   :  { %2769 = vmatpush1.bf16.msra.mxu0 %v4120_v31  ;;  %2800 = vmatprep.mubr.bf16.mxu0 %v5039_v12  ;;  %v4031_v12 = vcombine.high %v132_v45, %v136_v46  ;;  %v184_v31 = vld [vmem:[#allocation5 + $0x2e8] sm:$0xff] }
  0xe9   :  { %2770 = vmatprep.subr.bf16.mxu0 %v4129_v32  ;;  %2601 = vmatpush1.bf16.msra.mxu1 %v4006_v33  ;;  %v4184_v32 = vcombine.low %v285_v19, %v289_v20  ;;  %v4193_v33 = vcombine.high %v293_v27, %v297_v28  ;;  %v4079_v37 = vcombine.high %v180_v30, %v184_v31  ;;  %v196_v46 = vld [vmem:[#allocation5 + $0x348] sm:$0xff]  ;;  %v349_v20 = vld [vmem:[#allocation5 + $0x810] sm:$0xff] }
  0xea   :  { %2602 = vmatprep.subr.bf16.mxu1 %v4015_v36  ;;  %v305_v36 = vld [vmem:[#allocation5 + $0x6b0] sm:$0xff]  ;;  %v4078_v42 = vcombine.low %v180_v30, %v184_v31 }
  0xeb   :  { %v361_v30 = vld [vmem:[#allocation5 + $0x870] sm:$0xff] }
  0xec   :  { %2771 = vmatpush1.bf16.msra.mxu0 %v4128_v39  ;;  %v192_v39 = vld [vmem:[#allocation5 + $0x328] sm:$0xff]  ;;  %v4780_v31 = vld [vmem:[#allocation2 + $0xc] ss:$24 sps:$4 sm:$0xff]  }
  0xed   :  { %2772 = vmatprep.subr.bf16.mxu0 %v4137_v40  ;;  %2603 = vmatpush1.bf16.msra.mxu1 %v4014_v41  ;;  %v4192_v40 = vcombine.low %v293_v27, %v297_v28  ;;  %v4201_v41 = vcombine.high %v301_v35, %v305_v36  ;;  %v4087_v45 = vcombine.high %v188_v38, %v192_v39 }
  0xee   :  { %2604 = vmatprep.subr.bf16.mxu1 %v4023_v44  ;;  %v313_v44 = vld [vmem:[#allocation5 + $0x6f0] sm:$0xff]  ;;  %v4086_v49 = vcombine.low %v188_v38, %v192_v39 }
  0xef   :  { %v365_v38 = vld [vmem:[#allocation5 + $0x890] sm:$0xff] }
  0xf0   :  { %2773 = vmatpush1.bf16.msra.mxu0 %v4136_v47  ;;  %v200_v47 = vld [vmem:[#allocation5 + $0x368] sm:$0xff]  ;;  %v369_v39 = vld [vmem:[#allocation5 + $0x8b0] sm:$0xff] }
  0xf1   :  { %2774 = vmatprep.subr.bf16.mxu0 %v4145_v3  ;;  %2605 = vmatpush1.bf16.msra.mxu1 %v4022_v48  ;;  %v4200_v3 = vcombine.low %v301_v35, %v305_v36  ;;  %v4209_v48 = vcombine.high %v309_v43, %v313_v44  ;;  %v4095_v51 = vcombine.high %v196_v46, %v200_v47 }
  0xf2   :  { %2606 = vmatprep.subr.bf16.mxu1 %v4031_v12  ;;  %v321_v12 = vld [vmem:[#allocation5 + $0x730] sm:$0xff]  ;;  %v4094_v56 = vcombine.low %v196_v46, %v200_v47 }
  0xf3   :  { %v373_v47 = vld [vmem:[#allocation5 + $0x8d0] sm:$0xff] }
  0xf4   :  { %2775 = vmatpush1.bf16.msra.mxu0 %v4144_v53  ;;  %v208_v53 = vld [vmem:[#allocation5 + $0x3a8] sm:$0xff] }
  0xf5   :  { %2776 = vmatprep.subr.bf16.mxu0 %v4153_v54  ;;  %2607 = vmatpush1.bf16.msra.mxu1 %v4030_v55  ;;  %v4208_v54 = vcombine.low %v309_v43, %v313_v44  ;;  %v4217_v55 = vcombine.high %v317_v50, %v321_v12  ;;  %v4103_v59 = vcombine.high %v204_v52, %v208_v53  ;;  %v5051_v44 = vld [vmem:[#allocation2 + $0x14] ss:$24 sps:$4 sm:$0xff]  }
  0xf6   :  { %2608 = vmatprep.subr.bf16.mxu1 %v4039_v58  ;;  %v329_v58 = vld [vmem:[#allocation5 + $0x770] sm:$0xff]  ;;  %v4102_v0 = vcombine.low %v204_v52, %v208_v53 }
  0xf7   :  { %v381_v53 = vld [vmem:[#allocation5 + $0x910] sm:$0xff] }
  0xf8   :  { %2777 = vmatpush1.bf16.msra.mxu0 %v4152_v61  ;;  %v216_v61 = vld [vmem:[#allocation5 + $0x3e8] sm:$0xff] }
  0xf9   :  { %2778 = vmatprep.subr.bf16.mxu0 %v4161_v62  ;;  %2609 = vmatpush1.bf16.msra.mxu1 %v4038_v63  ;;  %v4216_v62 = vcombine.low %v317_v50, %v321_v12  ;;  %v4225_v63 = vcombine.high %v325_v57, %v329_v58  ;;  %v4111_v4 = vcombine.high %v212_v60, %v216_v61  ;;  %v264_v50 = vld [vmem:[#allocation5 + $0x568] sm:$0xff] }
  0xfa   :  { %2610 = vmatprep.subr.bf16.mxu1 %v4047_v2  ;;  %v337_v2 = vld [vmem:[#allocation5 + $0x7b0] sm:$0xff]  ;;  %v4110_v9 = vcombine.low %v212_v60, %v216_v61  ;;  %v4264_v12 = vcombine.low %v365_v38, %v369_v39 }
  0xfb   :  { %v389_v61 = vld [vmem:[#allocation5 + $0x950] sm:$0xff] }
  0xfc   :  { %2779 = vmatpush1.bf16.msra.mxu0 %v4160_v6  ;;  %v224_v6 = vld [vmem:[#allocation5 + $0x428] sm:$0xff] }
  0xfd   :  { %2780 = vmatprep.subr.bf16.mxu0 %v4169_v7  ;;  %2611 = vmatpush1.bf16.msra.mxu1 %v4046_v8  ;;  %v4224_v7 = vcombine.low %v325_v57, %v329_v58  ;;  %v4233_v8 = vcombine.high %v333_v1, %v337_v2  ;;  %v4119_v13 = vcombine.high %v220_v5, %v224_v6  ;;  %v272_v57 = vld [vmem:[#allocation5 + $0x5a8] sm:$0xff] }
  0xfe   :  { %2612 = vmatprep.subr.bf16.mxu1 %v4055_v11  ;;  %v345_v11 = vld [vmem:[#allocation5 + $0x7f0] sm:$0xff]  ;;  %v4118_v19 = vcombine.low %v220_v5, %v224_v6 }
  0xff   :  { %v397_v6 = vld [vmem:[#allocation5 + $0x990] sm:$0xff] }
 0x100   :  { %2781 = vmatpush1.bf16.msra.mxu0 %v4168_v16  ;;  %v232_v16 = vld [vmem:[#allocation5 + $0x468] sm:$0xff] }
 0x101   :  { %2782 = vmatprep.subr.bf16.mxu0 %v4177_v17  ;;  %2613 = vmatpush1.bf16.msra.mxu1 %v4054_v18  ;;  %v4232_v17 = vcombine.low %v333_v1, %v337_v2  ;;  %v4241_v18 = vcombine.high %v341_v10, %v345_v11  ;;  %v4127_v22 = vcombine.high %v228_v14, %v232_v16  ;;  %v280_v1 = vld [vmem:[#allocation5 + $0x5e8] sm:$0xff] }
 0x102   :  { %2614 = vmatprep.subr.bf16.mxu1 %v4063_v21  ;;  %v353_v21 = vld [vmem:[#allocation5 + $0x830] sm:$0xff]  ;;  %v4126_v28 = vcombine.low %v228_v14, %v232_v16 }
 0x103   :  { %v4249_v27 = vcombine.high %v349_v20, %v353_v21  ;;  %v4248_v35 = vcombine.low %v349_v20, %v353_v21  ;;  %v405_v16 = vld [vmem:[#allocation5 + $0x9d0] sm:$0xff]  ;;  %v296_v20 = vld [vmem:[#allocation5 + $0x668] sm:$0xff] }
 0x104   :  { %2783 = vmatpush1.bf16.msra.mxu0 %v4176_v24  ;;  %v240_v24 = vld [vmem:[#allocation5 + $0x4a8] sm:$0xff] }
 0x105   :  { %2784 = vmatprep.subr.bf16.mxu0 %v4185_v25  ;;  %2615 = vmatpush1.bf16.msra.mxu1 %v4062_v26  ;;  %v4240_v25 = vcombine.low %v341_v10, %v345_v11  ;;  %v4779_v26 = vld [vmem:[#allocation2] ss:$24 sps:$4 sm:$0xff]  }
 0x106   :  { %2616 = vmatprep.subr.bf16.mxu1 %v4071_v29  ;;  %v357_v29 = vld [vmem:[#allocation5 + $0x850] sm:$0xff]  ;;  %v288_v10 = vld [vmem:[#allocation5 + $0x628] sm:$0xff] }
 0x107   :  { %v4257_v36 = vcombine.high %v357_v29, %v361_v30  ;;  %v4256_v43 = vcombine.low %v357_v29, %v361_v30 }
 0x108   :  { %2785 = vmatpush1.bf16.msra.mxu0 %v4184_v32  ;;  %v4135_v32 = vcombine.high %v236_v23, %v240_v24 }
 0x109   :  { %2786 = vmatprep.subr.bf16.mxu0 %v4193_v33  ;;  %2617 = vmatpush1.bf16.msra.mxu1 %v4070_v34  ;;  %v244_v33 = vld [vmem:[#allocation5 + $0x4c8] sm:$0xff] }
 0x10a   :  { %2618 = vmatprep.subr.bf16.mxu1 %v4079_v37  ;;  %v248_v34 = vld [vmem:[#allocation5 + $0x4e8] sm:$0xff]  ;;  %v4134_v37 = vcombine.low %v236_v23, %v240_v24  ;;  %v413_v24 = vld [vmem:[#allocation5 + $0xa10] sm:$0xff] }
 0x10b   :  { %v4142_v46 = vcombine.low %v244_v33, %v248_v34 }
 0x10c   :  { %2787 = vmatpush1.bf16.msra.mxu0 %v4192_v40  ;;  %v4143_v40 = vcombine.high %v244_v33, %v248_v34  ;;  %v425_v33 = vld [vmem:[#allocation5 + $0xa70] sm:$0xff] }
 0x10d   :  { %2788 = vmatprep.subr.bf16.mxu0 %v4201_v41  ;;  %2619 = vmatpush1.bf16.msra.mxu1 %v4078_v42  ;;  %v252_v41 = vld [vmem:[#allocation5 + $0x508] sm:$0xff] }
 0x10e   :  { %2620 = vmatprep.subr.bf16.mxu1 %v4087_v45  ;;  %v256_v42 = vld [vmem:[#allocation5 + $0x528] sm:$0xff]  ;;  %v4265_v45 = vcombine.high %v365_v38, %v369_v39 }
 0x10f   :  { %v4150_v52 = vcombine.low %v252_v41, %v256_v42 }
 0x110   :  { %2789 = vmatpush1.bf16.msra.mxu0 %v4200_v3  ;;  %v377_v3 = vld [vmem:[#allocation5 + $0x8f0] sm:$0xff] }
 0x111   :  { %2790 = vmatprep.subr.bf16.mxu0 %v4209_v48  ;;  %2621 = vmatpush1.bf16.msra.mxu1 %v4086_v49  ;;  %v4151_v48 = vcombine.high %v252_v41, %v256_v42  ;;  %v260_v49 = vld [vmem:[#allocation5 + $0x548] sm:$0xff]  ;;  %v4272_v58 = vcombine.low %v373_v47, %v377_v3  ;;  %v433_v41 = vld [vmem:[#allocation5 + $0xab0] sm:$0xff] }
 0x112   :  { %2622 = vmatprep.subr.bf16.mxu1 %v4095_v51  ;;  %v4273_v51 = vcombine.high %v373_v47, %v377_v3  ;;  %v4158_v60 = vcombine.low %v260_v49, %v264_v50 }
 0x114   :  { %2791 = vmatpush1.bf16.msra.mxu0 %v4208_v54  ;;  %v385_v54 = vld [vmem:[#allocation5 + $0x930] sm:$0xff] }
 0x115   :  { %2792 = vmatprep.subr.bf16.mxu0 %v4217_v55  ;;  %2623 = vmatpush1.bf16.msra.mxu1 %v4094_v56  ;;  %v4159_v55 = vcombine.high %v260_v49, %v264_v50  ;;  %v268_v56 = vld [vmem:[#allocation5 + $0x588] sm:$0xff]  ;;  %v4280_v2 = vcombine.low %v381_v53, %v385_v54  ;;  %v441_v49 = vld [vmem:[#allocation5 + $0xaf0] sm:$0xff] }
 0x116   :  { %2624 = vmatprep.subr.bf16.mxu1 %v4103_v59  ;;  %v4281_v59 = vcombine.high %v381_v53, %v385_v54  ;;  %v4166_v5 = vcombine.low %v268_v56, %v272_v57 }
 0x118   :  { %2793 = vmatpush1.bf16.msra.mxu0 %v4216_v62  ;;  %v393_v62 = vld [vmem:[#allocation5 + $0x970] sm:$0xff] }
 0x119   :  { %2794 = vmatprep.subr.bf16.mxu0 %v4225_v63  ;;  %2625 = vmatpush1.bf16.msra.mxu1 %v4102_v0  ;;  %v4167_v63 = vcombine.high %v268_v56, %v272_v57  ;;  %v276_v0 = vld [vmem:[#allocation5 + $0x5c8] sm:$0xff]  ;;  %v4288_v11 = vcombine.low %v389_v61, %v393_v62  ;;  %v449_v56 = vld [vmem:[#allocation5 + $0xb30] sm:$0xff] }
 0x11a   :  { %2626 = vmatprep.subr.bf16.mxu1 %v4111_v4  ;;  %v4289_v4 = vcombine.high %v389_v61, %v393_v62  ;;  %v4174_v14 = vcombine.low %v276_v0, %v280_v1 }
 0x11c   :  { %2795 = vmatpush1.bf16.msra.mxu0 %v4224_v7  ;;  %v401_v7 = vld [vmem:[#allocation5 + $0x9b0] sm:$0xff] }
 0x11d   :  { %2796 = vmatprep.subr.bf16.mxu0 %v4233_v8  ;;  %2627 = vmatpush1.bf16.msra.mxu1 %v4110_v9  ;;  %v4175_v8 = vcombine.high %v276_v0, %v280_v1  ;;  %v284_v9 = vld [vmem:[#allocation5 + $0x608] sm:$0xff]  ;;  %v4296_v21 = vcombine.low %v397_v6, %v401_v7  ;;  %v457_v0 = vld [vmem:[#allocation5 + $0xb70] sm:$0xff] }
 0x11e   :  { %2639 = vmatprep.subr.bf16.mxu1 %v4119_v13  ;;  %v4297_v13 = vcombine.high %v397_v6, %v401_v7  ;;  %v4182_v23 = vcombine.low %v284_v9, %v288_v10 }
 0x120   :  { %2797 = vmatpush1.bf16.msra.mxu0 %v4232_v17  ;;  %2629 = vmatmul.mubr.bf16.vlgmr.msra.gmra.mrb[4].mxu1 %v4779_v26  ;;  %v409_v17 = vld [vmem:[#allocation5 + $0x9f0] sm:$0xff] }
 0x121   :  { %2798 = vmatprep.subr.bf16.mxu0 %v4241_v18  ;;  %2640 = vmatpush1.bf16.msra.mxu1 %v4118_v19  ;;  %v4183_v18 = vcombine.high %v284_v9, %v288_v10  ;;  %v292_v19 = vld [vmem:[#allocation5 + $0x648] sm:$0xff]  ;;  %v4304_v29 = vcombine.low %v405_v16, %v409_v17  ;;  %v465_v9 = vld [vmem:[#allocation5 + $0xbb0] sm:$0xff] }
 0x122   :  { %2671 = vmatprep.mubr.bf16.mxu1 %v4780_v31  ;;  %2641 = vmatprep.subr.bf16.mxu1 %v4127_v22  ;;  %v4305_v22 = vcombine.high %v405_v16, %v409_v17  ;;  %v4191_v26 = vcombine.high %v292_v19, %v296_v20  ;;  %v4190_v31 = vcombine.low %v292_v19, %v296_v20  ;;  %v473_v19 = vld [vmem:[#allocation5 + $0xbf0] sm:$0xff] }
 0x124   :  { %2799 = vmatpush1.bf16.msra.mxu0 %v4240_v25  ;;  %v417_v25 = vld [vmem:[#allocation5 + $0xa30] sm:$0xff] }
 0x125   :  { %2811 = vmatprep.subr.bf16.mxu0 %v4249_v27  ;;  %2642 = vmatpush1.bf16.msra.mxu1 %v4126_v28  ;;  %v300_v27 = vld [vmem:[#allocation5 + $0x688] sm:$0xff]  ;;  %v4313_v30 = vcombine.high %v413_v24, %v417_v25 }
 0x126   :  { %2643 = vmatprep.subr.bf16.mxu1 %v4135_v32  ;;  %v304_v28 = vld [vmem:[#allocation5 + $0x6a8] sm:$0xff]  ;;  %v421_v32 = vld [vmem:[#allocation5 + $0xa50] sm:$0xff] }
 0x127   :  { %2801 = vmatmul.mubr.bf16.vlgmr.msra.gmra.mrb[4].mxu0 %v5044_v15  ;;  %v4199_v34 = vcombine.high %v300_v27, %v304_v28  ;;  %v4321_v38 = vcombine.high %v421_v32, %v425_v33  ;;  %v4198_v39 = vcombine.low %v300_v27, %v304_v28  ;;  %v364_v27 = vld [vmem:[#allocation5 + $0x888] sm:$0xff] }
 0x128   :  { %2812 = vmatpush1.bf16.msra.mxu0 %v4248_v35  ;;  %2843 = vmatprep.mubr.bf16.mxu0 %v5051_v44  ;;  %v308_v35 = vld [vmem:[#allocation5 + $0x6c8] sm:$0xff] }
 0x129   :  { %2813 = vmatprep.subr.bf16.mxu0 %v4257_v36  ;;  %2644 = vmatpush1.bf16.msra.mxu1 %v4134_v37  ;;  %v312_v36 = vld [vmem:[#allocation5 + $0x6e8] sm:$0xff]  ;;  %v4312_v37 = vcombine.low %v413_v24, %v417_v25 }
 0x12a   :  { %2645 = vmatprep.subr.bf16.mxu1 %v4143_v40  ;;  %v429_v40 = vld [vmem:[#allocation5 + $0xa90] sm:$0xff]  ;;  %v4207_v42 = vcombine.high %v308_v35, %v312_v36  ;;  %v4206_v3 = vcombine.low %v308_v35, %v312_v36  ;;  %v368_v28 = vld [vmem:[#allocation5 + $0x8a8] sm:$0xff]  ;;  %v4592_v36 = vld [vmem:[#allocation8 + $0x14] ss:$8 sps:$4 sm:$0xff]  }
 0x12b   :  { %v4329_v47 = vcombine.high %v429_v40, %v433_v41  ;;  %v4587_v35 = vld [vmem:[#allocation8] ss:$8 sps:$4 sm:$0xff]  }
 0x12c   :  { %2814 = vmatpush1.bf16.msra.mxu0 %v4256_v43  ;;  %v316_v43 = vld [vmem:[#allocation5 + $0x708] sm:$0xff] }
 0x12d   :  { %2815 = vmatprep.subr.bf16.mxu0 %v4265_v45  ;;  %2646 = vmatpush1.bf16.msra.mxu1 %v4142_v46  ;;  %v320_v45 = vld [vmem:[#allocation5 + $0x728] sm:$0xff]  ;;  %v4320_v46 = vcombine.low %v421_v32, %v425_v33  ;;  %v4263_v32 = vcombine.high %v364_v27, %v368_v28 }
 0x12e   :  { %2647 = vmatprep.subr.bf16.mxu1 %v4151_v48  ;;  %v437_v48 = vld [vmem:[#allocation5 + $0xad0] sm:$0xff]  ;;  %v4215_v50 = vcombine.high %v316_v43, %v320_v45  ;;  %v4214_v54 = vcombine.low %v316_v43, %v320_v45  ;;  %v372_v33 = vld [vmem:[#allocation5 + $0x8c8] sm:$0xff] }
 0x12f   :  { %v4337_v53 = vcombine.high %v437_v48, %v441_v49  ;;  %v388_v45 = vld [vmem:[#allocation5 + $0x948] sm:$0xff] }
 0x130   :  { %2816 = vmatpush1.bf16.msra.mxu0 %v4264_v12  ;;  %v324_v12 = vld [vmem:[#allocation5 + $0x748] sm:$0xff] }
 0x131   :  { %2817 = vmatprep.subr.bf16.mxu0 %v4273_v51  ;;  %2648 = vmatpush1.bf16.msra.mxu1 %v4150_v52  ;;  %v328_v51 = vld [vmem:[#allocation5 + $0x768] sm:$0xff]  ;;  %v4328_v52 = vcombine.low %v429_v40, %v433_v41 }
 0x132   :  { %2649 = vmatprep.subr.bf16.mxu1 %v4159_v55  ;;  %v445_v55 = vld [vmem:[#allocation5 + $0xb10] sm:$0xff]  ;;  %v4223_v57 = vcombine.high %v324_v12, %v328_v51  ;;  %v4222_v62 = vcombine.low %v324_v12, %v328_v51  ;;  %v384_v40 = vld [vmem:[#allocation5 + $0x928] sm:$0xff]  ;;  %v4596_v51 = vld [vmem:[#allocation8 + $0x30] ss:$8 sps:$4 sm:$0xff]  }
 0x133   :  { %v4345_v61 = vcombine.high %v445_v55, %v449_v56  ;;  %v4595_v41 = vld [vmem:[#allocation8 + $0x24] ss:$8 sps:$4 sm:$0xff]  }
 0x134   :  { %2818 = vmatpush1.bf16.msra.mxu0 %v4272_v58  ;;  %v332_v58 = vld [vmem:[#allocation5 + $0x788] sm:$0xff] }
 0x135   :  { %2819 = vmatprep.subr.bf16.mxu0 %v4281_v59  ;;  %2650 = vmatpush1.bf16.msra.mxu1 %v4158_v60  ;;  %v336_v59 = vld [vmem:[#allocation5 + $0x7a8] sm:$0xff]  ;;  %v4336_v60 = vcombine.low %v437_v48, %v441_v49 }
 0x136   :  { %2651 = vmatprep.subr.bf16.mxu1 %v4167_v63  ;;  %v453_v63 = vld [vmem:[#allocation5 + $0xb50] sm:$0xff]  ;;  %v4231_v1 = vcombine.high %v332_v58, %v336_v59  ;;  %v4230_v7 = vcombine.low %v332_v58, %v336_v59  ;;  %v400_v12 = vld [vmem:[#allocation5 + $0x9a8] sm:$0xff]  ;;  %v4604_v58 = vld [vmem:[#allocation8 + $0x54] ss:$8 sps:$4 sm:$0xff]  }
 0x137   :  { %v4353_v6 = vcombine.high %v453_v63, %v457_v0 }
 0x138   :  { %2820 = vmatpush1.bf16.msra.mxu0 %v4280_v2  ;;  %v340_v2 = vld [vmem:[#allocation5 + $0x7c8] sm:$0xff] }
 0x139   :  { %2821 = vmatprep.subr.bf16.mxu0 %v4289_v4  ;;  %2652 = vmatpush1.bf16.msra.mxu1 %v4166_v5  ;;  %v344_v4 = vld [vmem:[#allocation5 + $0x7e8] sm:$0xff]  ;;  %v4344_v5 = vcombine.low %v445_v55, %v449_v56 }
 0x13a   :  { %2653 = vmatprep.subr.bf16.mxu1 %v4175_v8  ;;  %v461_v8 = vld [vmem:[#allocation5 + $0xb90] sm:$0xff]  ;;  %v4239_v10 = vcombine.high %v340_v2, %v344_v4  ;;  %v4238_v17 = vcombine.low %v340_v2, %v344_v4  ;;  %v404_v55 = vld [vmem:[#allocation5 + $0x9c8] sm:$0xff] }
 0x13b   :  { %v4361_v16 = vcombine.high %v461_v8, %v465_v9  ;;  %v408_v56 = vld [vmem:[#allocation5 + $0x9e8] sm:$0xff] }
 0x13c   :  { %2822 = vmatpush1.bf16.msra.mxu0 %v4288_v11  ;;  %v348_v11 = vld [vmem:[#allocation5 + $0x808] sm:$0xff] }
 0x13d   :  { %2823 = vmatprep.subr.bf16.mxu0 %v4297_v13  ;;  %2654 = vmatpush1.bf16.msra.mxu1 %v4174_v14  ;;  %v352_v13 = vld [vmem:[#allocation5 + $0x828] sm:$0xff]  ;;  %v4352_v14 = vcombine.low %v453_v63, %v457_v0  ;;  %v4602_v63 = vld [vmem:[#allocation8 + $0x50] ss:$8 sps:$4 sm:$0xff]  }
 0x13e   :  { %2655 = vmatprep.subr.bf16.mxu1 %v4183_v18  ;;  %v469_v18 = vld [vmem:[#allocation5 + $0xbd0] sm:$0xff]  ;;  %v4247_v20 = vcombine.high %v348_v11, %v352_v13  ;;  %v4246_v25 = vcombine.low %v348_v11, %v352_v13 }
 0x13f   :  { %v4369_v24 = vcombine.high %v469_v18, %v473_v19  ;;  %v4607_v0 = vld [vmem:[#allocation8 + $0x64] ss:$8 sps:$4 sm:$0xff]  }
 0x140   :  { %2824 = vmatpush1.bf16.msra.mxu0 %v4296_v21  ;;  %v356_v21 = vld [vmem:[#allocation5 + $0x848] sm:$0xff] }
 0x141   :  { %2825 = vmatprep.subr.bf16.mxu0 %v4305_v22  ;;  %2656 = vmatpush1.bf16.msra.mxu1 %v4182_v23  ;;  %v360_v22 = vld [vmem:[#allocation5 + $0x868] sm:$0xff]  ;;  %v4360_v23 = vcombine.low %v461_v8, %v465_v9 }
 0x142   :  { %2657 = vmatprep.subr.bf16.mxu1 %v4191_v26  ;;  %v4255_v26 = vcombine.high %v356_v21, %v360_v22  ;;  %v4605_v8 = vld [vmem:[#allocation8 + $0x60] ss:$8 sps:$4 sm:$0xff]  }
 0x144   :  { %2826 = vmatpush1.bf16.msra.mxu0 %v4304_v29  ;;  %v4368_v29 = vcombine.low %v469_v18, %v473_v19  ;;  %v4608_v18 = vld [vmem:[#allocation8 + $0x70] ss:$8 sps:$4 sm:$0xff]   ;;  %v4613_v19 = vld [vmem:[#allocation8 + $0x84] ss:$8 sps:$4 sm:$0xff]  }
 0x145   :  { %2827 = vmatprep.subr.bf16.mxu0 %v4313_v30  ;;  %2658 = vmatpush1.bf16.msra.mxu1 %v4190_v31  ;;  %v4589_v30 = vld [vmem:[#allocation8 + $0x4] ss:$8 sps:$4 sm:$0xff]   ;;  %v4254_v31 = vcombine.low %v356_v21, %v360_v22 }
 0x146   :  { %2659 = vmatprep.subr.bf16.mxu1 %v4199_v34  ;;  %v376_v34 = vld [vmem:[#allocation5 + $0x8e8] sm:$0xff] }
 0x147   :  { %v436_v22 = vld [vmem:[#allocation5 + $0xac8] sm:$0xff] }
 0x148   :  { %2828 = vmatpush1.bf16.msra.mxu0 %v4312_v37  ;;  %v4262_v37 = vcombine.low %v364_v27, %v368_v28  ;;  %v444_v28 = vld [vmem:[#allocation5 + $0xb08] sm:$0xff] }
 0x149   :  { %2829 = vmatprep.subr.bf16.mxu0 %v4321_v38  ;;  %2660 = vmatpush1.bf16.msra.mxu1 %v4198_v39  ;;  %v4271_v38 = vcombine.high %v372_v33, %v376_v34  ;;  %v5056_v39 = vld [vmem:[#allocation2 + $0x10] ss:$24 sps:$4 sm:$0xff]  }
 0x14a   :  { %2661 = vmatprep.subr.bf16.mxu1 %v4207_v42  ;;  %v4270_v42 = vcombine.low %v372_v33, %v376_v34  ;;  %v452_v34 = vld [vmem:[#allocation5 + $0xb48] sm:$0xff] }
 0x14c   :  { %2830 = vmatpush1.bf16.msra.mxu0 %v4320_v46  ;;  %v392_v46 = vld [vmem:[#allocation5 + $0x968] sm:$0xff] }
 0x14d   :  { %2831 = vmatprep.subr.bf16.mxu0 %v4329_v47  ;;  %2662 = vmatpush1.bf16.msra.mxu1 %v4206_v3  ;;  %v4593_v47 = vld [vmem:[#allocation8 + $0x20] ss:$8 sps:$4 sm:$0xff]   ;;  %v4598_v3 = vld [vmem:[#allocation8 + $0x34] ss:$8 sps:$4 sm:$0xff]   ;;  %v4287_v49 = vcombine.high %v388_v45, %v392_v46 }
 0x14e   :  { %2663 = vmatprep.subr.bf16.mxu1 %v4215_v50  ;;  %v396_v50 = vld [vmem:[#allocation5 + $0x988] sm:$0xff] }
 0x14f   :  { %v4294_v59 = vcombine.low %v396_v50, %v400_v12 }
 0x150   :  { %2832 = vmatpush1.bf16.msra.mxu0 %v4328_v52  ;;  %v4601_v52 = vld [vmem:[#allocation8 + $0x44] ss:$8 sps:$4 sm:$0xff]  }
 0x151   :  { %2833 = vmatprep.subr.bf16.mxu0 %v4337_v53  ;;  %2664 = vmatpush1.bf16.msra.mxu1 %v4214_v54  ;;  %v4286_v53 = vcombine.low %v388_v45, %v392_v46  ;;  %v4295_v54 = vcombine.high %v396_v50, %v400_v12  ;;  %v468_v46 = vld [vmem:[#allocation5 + $0xbc8] sm:$0xff]  ;;  %v94_v12 = vld [vmem:[#allocation5 + $0x18] sm:$0xff] }
 0x152   :  { %2665 = vmatprep.subr.bf16.mxu1 %v4223_v57  ;;  %v4599_v57 = vld [vmem:[#allocation8 + $0x40] ss:$8 sps:$4 sm:$0xff]  }
 0x154   :  { %2834 = vmatpush1.bf16.msra.mxu0 %v4336_v60  ;;  %v4303_v60 = vcombine.high %v404_v55, %v408_v56 }
 0x155   :  { %2835 = vmatprep.subr.bf16.mxu0 %v4345_v61  ;;  %2666 = vmatpush1.bf16.msra.mxu1 %v4222_v62  ;;  %v412_v61 = vld [vmem:[#allocation5 + $0xa08] sm:$0xff] }
 0x156   :  { %2667 = vmatprep.subr.bf16.mxu1 %v4231_v1  ;;  %v416_v62 = vld [vmem:[#allocation5 + $0xa28] sm:$0xff]  ;;  %v4302_v1 = vcombine.low %v404_v55, %v408_v56  ;;  %v102_v56 = vld [vmem:[#allocation5 + $0x58] sm:$0xff] }
 0x157   :  { %v4311_v4 = vcombine.high %v412_v61, %v416_v62  ;;  %v4310_v13 = vcombine.low %v412_v61, %v416_v62  ;;  %v110_v62 = vld [vmem:[#allocation5 + $0x98] sm:$0xff] }
 0x158   :  { %2836 = vmatpush1.bf16.msra.mxu0 %v4344_v5 }
 0x159   :  { %2837 = vmatprep.subr.bf16.mxu0 %v4353_v6  ;;  %2668 = vmatpush1.bf16.msra.mxu1 %v4230_v7  ;;  %v420_v6 = vld [vmem:[#allocation5 + $0xa48] sm:$0xff] }
 0x15a   :  { %2669 = vmatprep.subr.bf16.mxu1 %v4239_v10  ;;  %v424_v7 = vld [vmem:[#allocation5 + $0xa68] sm:$0xff]  ;;  %v4610_v10 = vld [vmem:[#allocation8 + $0x74] ss:$8 sps:$4 sm:$0xff]  }
 0x15c   :  { %2838 = vmatpush1.bf16.msra.mxu0 %v4352_v14  ;;  %v4319_v14 = vcombine.high %v420_v6, %v424_v7 }
 0x15d   :  { %2839 = vmatprep.subr.bf16.mxu0 %v4361_v16  ;;  %2670 = vmatpush1.bf16.msra.mxu1 %v4238_v17  ;;  %v428_v16 = vld [vmem:[#allocation5 + $0xa88] sm:$0xff] }
 0x15e   :  { %2682 = vmatprep.subr.bf16.mxu1 %v4247_v20  ;;  %v432_v17 = vld [vmem:[#allocation5 + $0xaa8] sm:$0xff]  ;;  %v4318_v20 = vcombine.low %v420_v6, %v424_v7  ;;  %v118_v7 = vld [vmem:[#allocation5 + $0xd8] sm:$0xff] }
 0x15f   :  { %v4327_v21 = vcombine.high %v428_v16, %v432_v17 }
 0x160   :  { %2840 = vmatpush1.bf16.msra.mxu0 %v4360_v23  ;;  %2672 = vmatmul.mubr.bf16.vlgmr.msra.gmra.mrb[4].mxu1 %v5044_v15  ;;  %v380_v15 = vld [vmem:[#allocation5 + $0x908] sm:$0xff] }
 0x161   :  { %2841 = vmatprep.subr.bf16.mxu0 %v4369_v24  ;;  %2683 = vmatpush1.bf16.msra.mxu1 %v4246_v25  ;;  %v4279_v43 = vcombine.high %v380_v15, %v384_v40  ;;  %v4278_v48 = vcombine.low %v380_v15, %v384_v40  ;;  %v440_v23 = vld [vmem:[#allocation5 + $0xae8] sm:$0xff]  ;;  %v4616_v25 = vld [vmem:[#allocation8 + $0x94] ss:$8 sps:$4 sm:$0xff]  }
 0x162   :  { %2714 = vmatprep.mubr.bf16.mxu1 %v5051_v44  ;;  %2684 = vmatprep.subr.bf16.mxu1 %v4255_v26  ;;  %v4590_v44 = vld [vmem:[#allocation8 + $0x10] ss:$8 sps:$4 sm:$0xff]   ;;  %v4611_v24 = vld [vmem:[#allocation8 + $0x80] ss:$8 sps:$4 sm:$0xff]   ;;  %v4326_v26 = vcombine.low %v428_v16, %v432_v17  ;;  %v4335_v27 = vcombine.high %v436_v22, %v440_v23 }
 0x163   :  { %v460_v40 = vld [vmem:[#allocation5 + $0xb88] sm:$0xff]  ;;  %v126_v16 = vld [vmem:[#allocation5 + $0x118] sm:$0xff] }
 0x164   :  { %2842 = vmatpush1.bf16.msra.mxu0 %v4368_v29  ;;  %v448_v29 = vld [vmem:[#allocation5 + $0xb28] sm:$0xff]  ;;  %v130_v17 = vld [vmem:[#allocation5 + $0x138] sm:$0xff] }
 0x165   :  { %3787 = vmatprep.subr.bf16.mxu0 %v4589_v30  ;;  %2685 = vmatpush1.bf16.msra.mxu1 %v4254_v31  ;;  %v4614_v30 = vld [vmem:[#allocation8 + $0x90] ss:$8 sps:$4 sm:$0xff]   ;;  %v4619_v31 = vld [vmem:[#allocation8 + $0xa4] ss:$8 sps:$4 sm:$0xff]   ;;  %v4343_v33 = vcombine.high %v444_v28, %v448_v29 }
 0x166   :  { %2686 = vmatprep.subr.bf16.mxu1 %v4263_v32  ;;  %v4334_v32 = vcombine.low %v436_v22, %v440_v23  ;;  %v4026_v23 = vcombine.low %v126_v16, %v130_v17 }
 0x167   :  { %2844 = vmatmul.mubr.bf16.vlgmr.msra.gmra.mrb[4].mxu0 %v5056_v39 }
 0x168   :  { %3788 = vmatpush1.bf16.msra.mxu0 %v4587_v35  ;;  %v456_v35 = vld [vmem:[#allocation5 + $0xb68] sm:$0xff] }
 0x169   :  { %3789 = vmatprep.subr.bf16.mxu0 %v4592_v36  ;;  %2687 = vmatpush1.bf16.msra.mxu1 %v4262_v37  ;;  %v4617_v36 = vld [vmem:[#allocation8 + $0xa0] ss:$8 sps:$4 sm:$0xff]   ;;  %v4622_v37 = vld [vmem:[#allocation8 + $0xb4] ss:$8 sps:$4 sm:$0xff]   ;;  %v4351_v15 = vcombine.high %v452_v34, %v456_v35 }
 0x16a   :  { %2688 = vmatprep.subr.bf16.mxu1 %v4271_v38  ;;  %v4342_v38 = vcombine.low %v444_v28, %v448_v29  ;;  %v146_v28 = vld [vmem:[#allocation5 + $0x1b8] sm:$0xff] }
 0x16c   :  { %3790 = vmatpush1.bf16.msra.mxu0 %v4590_v44  ;;  %v464_v44 = vld [vmem:[#allocation5 + $0xba8] sm:$0xff] }
 0x16d   :  { %3791 = vmatprep.subr.bf16.mxu0 %v4595_v41  ;;  %2689 = vmatpush1.bf16.msra.mxu1 %v4270_v42  ;;  %v4620_v41 = vld [vmem:[#allocation8 + $0xb0] ss:$8 sps:$4 sm:$0xff]   ;;  %v4625_v42 = vld [vmem:[#allocation8 + $0xc4] ss:$8 sps:$4 sm:$0xff]   ;;  %v4359_v45 = vcombine.high %v460_v40, %v464_v44 }
 0x16e   :  { %2690 = vmatprep.subr.bf16.mxu1 %v4279_v43  ;;  %v4350_v43 = vcombine.low %v452_v34, %v456_v35  ;;  %v150_v34 = vld [vmem:[#allocation5 + $0x1d8] sm:$0xff] }
 0x16f   :  { %v154_v35 = vld [vmem:[#allocation5 + $0x1f8] sm:$0xff] }
 0x170   :  { %3792 = vmatpush1.bf16.msra.mxu0 %v4593_v47  ;;  %v472_v47 = vld [vmem:[#allocation5 + $0xbe8] sm:$0xff] }
 0x171   :  { %3793 = vmatprep.subr.bf16.mxu0 %v4598_v3  ;;  %2691 = vmatpush1.bf16.msra.mxu1 %v4278_v48  ;;  %v4623_v3 = vld [vmem:[#allocation8 + $0xc0] ss:$8 sps:$4 sm:$0xff]   ;;  %v4628_v48 = vld [vmem:[#allocation8 + $0xd4] ss:$8 sps:$4 sm:$0xff]   ;;  %v4367_v50 = vcombine.high %v468_v46, %v472_v47 }
 0x172   :  { %2692 = vmatprep.subr.bf16.mxu1 %v4287_v49  ;;  %v4358_v49 = vcombine.low %v460_v40, %v464_v44 }
 0x174   :  { %3794 = vmatpush1.bf16.msra.mxu0 %v4596_v51  ;;  %v98_v51 = vld [vmem:[#allocation5 + $0x38] sm:$0xff] }
 0x175   :  { %3795 = vmatprep.subr.bf16.mxu0 %v4601_v52  ;;  %2693 = vmatpush1.bf16.msra.mxu1 %v4286_v53  ;;  %v4626_v52 = vld [vmem:[#allocation8 + $0xd0] ss:$8 sps:$4 sm:$0xff]   ;;  %v4631_v53 = vld [vmem:[#allocation8 + $0xe4] ss:$8 sps:$4 sm:$0xff]   ;;  %v3995_v55 = vcombine.high %v94_v12, %v98_v51 }
 0x176   :  { %2694 = vmatprep.subr.bf16.mxu1 %v4295_v54  ;;  %v4366_v54 = vcombine.low %v468_v46, %v472_v47  ;;  %v158_v47 = vld [vmem:[#allocation5 + $0x218] sm:$0xff] }
 0x178   :  { %3796 = vmatpush1.bf16.msra.mxu0 %v4599_v57  ;;  %v106_v57 = vld [vmem:[#allocation5 + $0x78] sm:$0xff] }
 0x179   :  { %3797 = vmatprep.subr.bf16.mxu0 %v4604_v58  ;;  %2695 = vmatpush1.bf16.msra.mxu1 %v4294_v59  ;;  %v4629_v58 = vld [vmem:[#allocation8 + $0xe0] ss:$8 sps:$4 sm:$0xff]   ;;  %v4634_v59 = vld [vmem:[#allocation8 + $0xf4] ss:$8 sps:$4 sm:$0xff]   ;;  %v4003_v61 = vcombine.high %v102_v56, %v106_v57 }
 0x17a   :  { %v5059_v2 = vpop.f32.mrb[0].mxu0  ;;  %2696 = vmatprep.subr.bf16.mxu1 %v4303_v60  ;;  %v3994_v60 = vcombine.low %v94_v12, %v98_v51 }
 0x17b   :  { %v5061_v5 = vpop.f32.mrb[1].mxu0 }
 0x17c   :  { %3798 = vmatpush1.bf16.msra.mxu0 %v4602_v63  ;;  %v5063_v9 = vpop.f32.mrb[2].mxu0  ;;  %v114_v63 = vld [vmem:[#allocation5 + $0xb8] sm:$0xff] }
 0x17d   :  { %3799 = vmatprep.subr.bf16.mxu0 %v4607_v0  ;;  %v5065_v11 = vpop.f32.mrb[3].mxu0  ;;  %2697 = vmatpush1.bf16.msra.mxu1 %v4302_v1  ;;  %v4632_v0 = vld [vmem:[#allocation8 + $0xf0] ss:$8 sps:$4 sm:$0xff]   ;;  %v4002_v1 = vcombine.low %v102_v56, %v106_v57  ;;  %v4011_v6 = vcombine.high %v110_v62, %v114_v63  ;;  %v4637_v56 = vld [vmem:[#allocation8 + $0x104] ss:$8 sps:$4 sm:$0xff]  }
 0x17e   :  { %2698 = vmatprep.subr.bf16.mxu1 %v4311_v4  ;;  %v4783_v4 = vld [vmem:[#allocation2 + $0x4] ss:$24 sps:$4 sm:$0xff]  }
 0x180   :  { %3800 = vmatpush1.bf16.msra.mxu0 %v4605_v8  ;;  %v122_v8 = vld [vmem:[#allocation5 + $0xf8] sm:$0xff] }
 0x181   :  { %3801 = vmatprep.subr.bf16.mxu0 %v4610_v10  ;;  %2699 = vmatpush1.bf16.msra.mxu1 %v4310_v13  ;;  %v477_v10 = vlaneseq  ;;  %v4010_v13 = vcombine.low %v110_v62, %v114_v63  ;;  %v4638_v63 = vld [vmem:[#allocation8 + $0x110] ss:$8 sps:$4 sm:$0xff]  }
 0x182   :  { %2700 = vmatprep.subr.bf16.mxu1 %v4319_v14  ;;  %v4019_v14 = vcombine.high %v118_v7, %v122_v8 }
 0x184   :  { %3802 = vmatpush1.bf16.msra.mxu0 %v4608_v18  ;;  %v5068_v18 = vshrl.u32 %v477_v10, 7 }
 0x185   :  { %3803 = vmatprep.subr.bf16.mxu0 %v4613_v19  ;;  %2701 = vmatpush1.bf16.msra.mxu1 %v4318_v20  ;;  %v4027_v19 = vcombine.high %v126_v16, %v130_v17  ;;  %v134_v20 = vld [vmem:[#allocation5 + $0x158] sm:$0xff] }
 0x186   :  { %2702 = vmatprep.subr.bf16.mxu1 %v4327_v21  ;;  %v138_v21 = vld [vmem:[#allocation5 + $0x178] sm:$0xff]  ;;  %v479_v22 = vsub.s32 0, %v5068_v18 }
 0x187   :  { %v4646_v16 = vld [vmem:[#allocation8 + $0x134] ss:$8 sps:$4 sm:$0xff]  }
 0x188   :  { %3804 = vmatpush1.bf16.msra.mxu0 %v4611_v24  ;;  %v5071_v24 = vld [vmem:[#allocation7] sm:$0xff] }
 0x189   :  { %3805 = vmatprep.subr.bf16.mxu0 %v4616_v25  ;;  %2703 = vmatpush1.bf16.msra.mxu1 %v4326_v26  ;;  %v483_v25 = vsub.s32 1, %v5068_v18  ;;  %v4035_v26 = vcombine.high %v134_v20, %v138_v21  ;;  %v480_v29 = vrot.slane %v5071_v24, %v479_v22 }
 0x18a   :  { %2704 = vmatprep.subr.bf16.mxu1 %v4335_v27  ;;  %v142_v27 = vld [vmem:[#allocation5 + $0x198] sm:$0xff] }
 0x18b   :  { %v4042_v40 = vcombine.low %v142_v27, %v146_v28 }
 0x18c   :  { %3806 = vmatpush1.bf16.msra.mxu0 %v4614_v30  ;;  %v484_v30 = vrot.slane %v5071_v24, %v483_v25 }
 0x18d   :  { %3807 = vmatprep.subr.bf16.mxu0 %v4619_v31  ;;  %2705 = vmatpush1.bf16.msra.mxu1 %v4334_v32  ;;  %v4034_v31 = vcombine.low %v134_v20, %v138_v21  ;;  %v4043_v32 = vcombine.high %v142_v27, %v146_v28  ;;  %v198_v20 = vld [vmem:[#allocation5 + $0x358] sm:$0xff]  ;;  %v4647_v27 = vld [vmem:[#allocation8 + $0x140] ss:$8 sps:$4 sm:$0xff]  }
 0x18e   :  { %2706 = vmatprep.subr.bf16.mxu1 %v4343_v33  ;;  %v202_v21 = vld [vmem:[#allocation5 + $0x378] sm:$0xff] }
 0x18f   :  { %v4099_v28 = vcombine.high %v198_v20, %v202_v21 }
 0x190   :  { %3808 = vmatpush1.bf16.msra.mxu0 %v4617_v36 }
 0x191   :  { %3809 = vmatprep.subr.bf16.mxu0 %v4622_v37  ;;  %2707 = vmatpush1.bf16.msra.mxu1 %v4342_v38 }
 0x192   :  { %2708 = vmatprep.subr.bf16.mxu1 %v4351_v15 }
 0x194   :  { %3810 = vmatpush1.bf16.msra.mxu0 %v4620_v41 }
 0x195   :  { %3811 = vmatprep.subr.bf16.mxu0 %v4625_v42  ;;  %2709 = vmatpush1.bf16.msra.mxu1 %v4350_v43  ;;  %v4051_v43 = vcombine.high %v150_v34, %v154_v35 }
 0x196   :  { %2710 = vmatprep.subr.bf16.mxu1 %v4359_v45 }
 0x198   :  { %3812 = vmatpush1.bf16.msra.mxu0 %v4623_v3  ;;  %v162_v3 = vld [vmem:[#allocation5 + $0x238] sm:$0xff] }
 0x199   :  { %3813 = vmatprep.subr.bf16.mxu0 %v4628_v48  ;;  %2711 = vmatpush1.bf16.msra.mxu1 %v4358_v49 }
 0x19a   :  { %2712 = vmatprep.subr.bf16.mxu1 %v4367_v50  ;;  %v4050_v50 = vcombine.low %v150_v34, %v154_v35  ;;  %v214_v35 = vld [vmem:[#allocation5 + $0x3d8] sm:$0xff] }
 0x19c   :  { %3814 = vmatpush1.bf16.msra.mxu0 %v4626_v52  ;;  %v4059_v52 = vcombine.high %v158_v47, %v162_v3 }
 0x19d   :  { %3815 = vmatprep.subr.bf16.mxu0 %v4631_v53  ;;  %2713 = vmatpush1.bf16.msra.mxu1 %v4366_v54  ;;  %v166_v54 = vld [vmem:[#allocation5 + $0x258] sm:$0xff] }
 0x19e   :  { %2854 = vmatprep.subr.bf16.mxu1 %v3995_v55  ;;  %v170_v55 = vld [vmem:[#allocation5 + $0x278] sm:$0xff] }
 0x19f   :  { %v4066_v62 = vcombine.low %v166_v54, %v170_v55 }
 0x1a0   :  { %3816 = vmatpush1.bf16.msra.mxu0 %v4629_v58  ;;  %2715 = vmatmul.mubr.bf16.vlgmr.msra.gmra.mrb[4].mxu1 %v5056_v39  ;;  %v4018_v39 = vcombine.low %v118_v7, %v122_v8  ;;  %v4641_v8 = vld [vmem:[#allocation8 + $0x120] ss:$8 sps:$4 sm:$0xff]  }
 0x1a1   :  { %3817 = vmatprep.subr.bf16.mxu0 %v4634_v59  ;;  %2855 = vmatpush1.bf16.msra.mxu1 %v3994_v60  ;;  %v4635_v59 = vld [vmem:[#allocation8 + $0x100] ss:$8 sps:$4 sm:$0xff]   ;;  %v178_v60 = vld [vmem:[#allocation5 + $0x2b8] sm:$0xff] }
 0x1a2   :  { %2886 = vmatprep.mubr.bf16.mxu1 %v4783_v4  ;;  %2856 = vmatprep.subr.bf16.mxu1 %v4003_v61  ;;  %v4640_v61 = vld [vmem:[#allocation8 + $0x114] ss:$8 sps:$4 sm:$0xff]  }
 0x1a3   :  { %v186_v4 = vld [vmem:[#allocation5 + $0x2f8] sm:$0xff] }
 0x1a4   :  { %3818 = vmatpush1.bf16.msra.mxu0 %v4632_v0 }
 0x1a5   :  { %2857 = vmatpush1.bf16.msra.mxu1 %v4002_v1  ;;  %3830 = vmatprep.subr.bf16.mxu0 %v4637_v56  ;;  %v182_v1 = vld [vmem:[#allocation5 + $0x2d8] sm:$0xff] }
 0x1a6   :  { %2858 = vmatprep.subr.bf16.mxu1 %v4011_v6  ;;  %v4643_v6 = vld [vmem:[#allocation8 + $0x124] ss:$8 sps:$4 sm:$0xff]   ;;  %v4083_v10 = vcombine.high %v182_v1, %v186_v4  ;;  %v4082_v17 = vcombine.low %v182_v1, %v186_v4  ;;  %v4668_v4 = vld [vmem:[#allocation8 + $0x1b0] ss:$8 sps:$4 sm:$0xff]  }
 0x1a9   :  { %2859 = vmatpush1.bf16.msra.mxu1 %v4010_v13  ;;  %v190_v13 = vld [vmem:[#allocation5 + $0x318] sm:$0xff] }
 0x1aa   :  { %2860 = vmatprep.subr.bf16.mxu1 %v4019_v14  ;;  %v194_v14 = vld [vmem:[#allocation5 + $0x338] sm:$0xff] }
 0x1ad   :  { %2861 = vmatpush1.bf16.msra.mxu1 %v4018_v39  ;;  %v4644_v39 = vld [vmem:[#allocation8 + $0x130] ss:$8 sps:$4 sm:$0xff]  }
 0x1ae   :  { %2862 = vmatprep.subr.bf16.mxu1 %v4027_v19  ;;  %v4091_v19 = vcombine.high %v190_v13, %v194_v14 }
 0x1b1   :  { %2863 = vmatpush1.bf16.msra.mxu1 %v4026_v23  ;;  %v4649_v23 = vld [vmem:[#allocation8 + $0x144] ss:$8 sps:$4 sm:$0xff]  }
 0x1b2   :  { %2864 = vmatprep.subr.bf16.mxu1 %v4035_v26  ;;  %v4090_v26 = vcombine.low %v190_v13, %v194_v14  ;;  %v4671_v14 = vld [vmem:[#allocation8 + $0x1c0] ss:$8 sps:$4 sm:$0xff]  }
 0x1b3   :  { %v2544_v33 = vpop.f32.mrb[0].mxu1 }
 0x1b4   :  { %v4500_v36 = vadd.f32 %v2544_v33, %v480_v29  ;;  %v2546_v37 = vpop.f32.mrb[1].mxu1  ;;  %v4650_v33 = vld [vmem:[#allocation8 + $0x150] ss:$8 sps:$4 sm:$0xff]  }
 0x1b5   :  { %v4502_v38 = vadd.f32 %v2546_v37, %v484_v30  ;;  %v2548_v15 = vpop.f32.mrb[2].mxu1  ;;  %2865 = vmatpush1.bf16.msra.mxu1 %v4034_v31  ;;  %v4652_v31 = vld [vmem:[#allocation8 + $0x154] ss:$8 sps:$4 sm:$0xff]   ;;  %v4655_v37 = vld [vmem:[#allocation8 + $0x164] ss:$8 sps:$4 sm:$0xff]  }
 0x1b6   :  { %v4504_v44 = vadd.f32 %v2548_v15, %v480_v29  ;;  %v4501_v41 = vadd.f32 %v4500_v36, %v5059_v2  ;;  %v2550_v42 = vpop.f32.mrb[3].mxu1  ;;  %2866 = vmatprep.subr.bf16.mxu1 %v4043_v32  ;;  %v206_v29 = vld [vmem:[#allocation5 + $0x398] sm:$0xff]  ;;  %v4098_v32 = vcombine.low %v198_v20, %v202_v21  ;;  %v4653_v15 = vld [vmem:[#allocation8 + $0x160] ss:$8 sps:$4 sm:$0xff]  }
 0x1b7   :  { %v4506_v45 = vadd.f32 %v2550_v42, %v484_v30  ;;  %v4503_v46 = vadd.f32 %v4502_v38, %v5061_v5  ;;  %v4058_v5 = vcombine.low %v158_v47, %v162_v3  ;;  %v210_v30 = vld [vmem:[#allocation5 + $0x3b8] sm:$0xff] }
 0x1b8   :  { %v4505_v48 = vadd.f32 %v4504_v44, %v5063_v9  ;;  %v2983_v12 = vmax.f32 %v4501_v41, 0.0  ;;  %v4067_v9 = vcombine.high %v166_v54, %v170_v55  ;;  %v4107_v34 = vcombine.high %v206_v29, %v210_v30  ;;  %v218_v36 = vld [vmem:[#allocation5 + $0x3f8] sm:$0xff] }
 0x1b9   :  { %v4507_v49 = vadd.f32 %v4506_v45, %v5065_v11  ;;  %2867 = vmatpush1.bf16.msra.mxu1 %v4042_v40  ;;  %v2984_v53 = vmax.f32 %v4503_v46, 0.0  ;;  %v174_v11 = vld [vmem:[#allocation5 + $0x298] sm:$0xff]  ;;  %v4106_v38 = vcombine.low %v206_v29, %v210_v30  ;;  %v4115_v40 = vcombine.high %v214_v35, %v218_v36  ;;  %v4677_v30 = vld [vmem:[#allocation8 + $0x1e0] ss:$8 sps:$4 sm:$0xff]  }
 0x1ba   :  { %v2991_v51 = vmax.f32 %v4505_v48, 0.0  ;;  %2868 = vmatprep.subr.bf16.mxu1 %v4051_v43  ;;  %v4075_v0 = vcombine.high %v174_v11, %v178_v60  ;;  %v4074_v7 = vcombine.low %v174_v11, %v178_v60  ;;  %v222_v44 = vld [vmem:[#allocation5 + $0x418] sm:$0xff]  ;;  %v4114_v43 = vcombine.low %v214_v35, %v218_v36  ;;  %v4661_v48 = vld [vmem:[#allocation8 + $0x184] ss:$8 sps:$4 sm:$0xff]   ;;  %v4665_v60 = vld [vmem:[#allocation8 + $0x1a0] ss:$8 sps:$4 sm:$0xff]  }
 0x1bb   :  { %v2992_v2 = vmax.f32 %v4507_v49, 0.0  ;;  %v226_v41 = vld [vmem:[#allocation5 + $0x438] sm:$0xff] }
 0x1bc   :  { %v2999_v57 = vpack.c.bf16 %v2991_v51, %v2983_v12  ;;  %v4658_v42 = vld [vmem:[#allocation8 + $0x174] ss:$8 sps:$4 sm:$0xff]   ;;  %v4656_v45 = vld [vmem:[#allocation8 + $0x170] ss:$8 sps:$4 sm:$0xff]   ;;  %v4123_v46 = vcombine.high %v222_v44, %v226_v41  ;;  %v4122_v49 = vcombine.low %v222_v44, %v226_v41  ;;  %v4659_v12 = vld [vmem:[#allocation8 + $0x180] ss:$8 sps:$4 sm:$0xff]  }
 0x1bd   :  { %v3000_v58 = vpack.c.bf16 %v2992_v2, %v2984_v53  ;;  %2869 = vmatpush1.bf16.msra.mxu1 %v4050_v50  ;;  %v230_v47 = vld [vmem:[#allocation5 + $0x458] sm:$0xff]  ;;  %v4784_v2 = vld [vmem:[#allocation2] ss:$24 sps:$4 sm:$0xff]  }
 0x1be   :  { %2870 = vmatprep.subr.bf16.mxu1 %v4059_v52  ;;  %v234_v3 = vld [vmem:[#allocation5 + $0x478] sm:$0xff] }
 0x1bf   :  { %3819 = vmatprep.mubr.bf16.mxu0 %v3000_v58  ;;  %v4131_v50 = vcombine.high %v230_v47, %v234_v3  ;;  %v238_v51 = vld [vmem:[#allocation5 + $0x498] sm:$0xff]  ;;  %v4130_v54 = vcombine.low %v230_v47, %v234_v3 }
 0x1c0   :  { %3820 = vmatmul.mubr.bf16.vlgmr.msra.gmra.mrb[8].mxu0 %v2999_v57  ;;  %v242_v52 = vld [vmem:[#allocation5 + $0x4b8] sm:$0xff] }
 0x1c1   :  { %2871 = vmatpush1.bf16.msra.mxu1 %v4058_v5  ;;  %3831 = vmatpush1.bf16.msra.mxu0 %v4635_v59  ;;  %v4664_v53 = vld [vmem:[#allocation8 + $0x194] ss:$8 sps:$4 sm:$0xff]   ;;  %v4139_v56 = vcombine.high %v238_v51, %v242_v52  ;;  %v4662_v57 = vld [vmem:[#allocation8 + $0x190] ss:$8 sps:$4 sm:$0xff]   ;;  %v4667_v59 = vld [vmem:[#allocation8 + $0x1a4] ss:$8 sps:$4 sm:$0xff]  }
 0x1c2   :  { %2872 = vmatprep.subr.bf16.mxu1 %v4067_v9  ;;  %3832 = vmatprep.subr.bf16.mxu0 %v4640_v61  ;;  %v4785_v55 = vld [vmem:[#allocation2 + $0xc] ss:$24 sps:$4 sm:$0xff]   ;;  %v4138_v9 = vcombine.low %v238_v51, %v242_v52  ;;  %v4674_v21 = vld [vmem:[#allocation8 + $0x1d0] ss:$8 sps:$4 sm:$0xff]  }
 0x1c3   :  { %v246_v58 = vld [vmem:[#allocation5 + $0x4d8] sm:$0xff] }
 0x1c4   :  { %v250_v5 = vld [vmem:[#allocation5 + $0x4f8] sm:$0xff] }
 0x1c5   :  { %2873 = vmatpush1.bf16.msra.mxu1 %v4066_v62  ;;  %3833 = vmatpush1.bf16.msra.mxu0 %v4638_v63  ;;  %v4147_v11 = vcombine.high %v246_v58, %v250_v5  ;;  %v254_v61 = vld [vmem:[#allocation5 + $0x518] sm:$0xff] }
 0x1c6   :  { %2874 = vmatprep.subr.bf16.mxu1 %v4075_v0  ;;  %3834 = vmatprep.subr.bf16.mxu0 %v4643_v6  ;;  %v258_v62 = vld [vmem:[#allocation5 + $0x538] sm:$0xff]  ;;  %v4146_v0 = vcombine.low %v246_v58, %v250_v5 }
 0x1c7   :  { %v4670_v63 = vld [vmem:[#allocation8 + $0x1b4] ss:$8 sps:$4 sm:$0xff]   ;;  %v4155_v1 = vcombine.high %v254_v61, %v258_v62  ;;  %v4680_v36 = vld [vmem:[#allocation8 + $0x1f0] ss:$8 sps:$4 sm:$0xff]  }
 0x1c8   :  { %v262_v6 = vld [vmem:[#allocation5 + $0x558] sm:$0xff] }
 0x1c9   :  { %2875 = vmatpush1.bf16.msra.mxu1 %v4074_v7  ;;  %3835 = vmatpush1.bf16.msra.mxu0 %v4641_v8  ;;  %v266_v7 = vld [vmem:[#allocation5 + $0x578] sm:$0xff]  ;;  %v4673_v8 = vld [vmem:[#allocation8 + $0x1c4] ss:$8 sps:$4 sm:$0xff]  }
 0x1ca   :  { %2876 = vmatprep.subr.bf16.mxu1 %v4083_v10  ;;  %3836 = vmatprep.subr.bf16.mxu0 %v4646_v16  ;;  %v4154_v10 = vcombine.low %v254_v61, %v258_v62  ;;  %v4163_v13 = vcombine.high %v262_v6, %v266_v7  ;;  %v270_v16 = vld [vmem:[#allocation5 + $0x598] sm:$0xff] }
 0x1cb   :  { %v302_v41 = vld [vmem:[#allocation5 + $0x698] sm:$0xff] }
 0x1cc   :  { %v314_v47 = vld [vmem:[#allocation5 + $0x6f8] sm:$0xff] }
 0x1cd   :  { %2877 = vmatpush1.bf16.msra.mxu1 %v4082_v17  ;;  %3837 = vmatpush1.bf16.msra.mxu0 %v4644_v39  ;;  %v274_v17 = vld [vmem:[#allocation5 + $0x5b8] sm:$0xff] }
 0x1ce   :  { %2878 = vmatprep.subr.bf16.mxu1 %v4091_v19  ;;  %3838 = vmatprep.subr.bf16.mxu0 %v4649_v23  ;;  %v4676_v39 = vld [vmem:[#allocation8 + $0x1d4] ss:$8 sps:$4 sm:$0xff]   ;;  %v4162_v19 = vcombine.low %v262_v6, %v266_v7  ;;  %v4171_v20 = vcombine.high %v270_v16, %v274_v17 }
 0x1cf   :  { %v278_v23 = vld [vmem:[#allocation5 + $0x5d8] sm:$0xff] }
 0x1d0   :  { %v326_v52 = vld [vmem:[#allocation5 + $0x758] sm:$0xff] }
 0x1d1   :  { %2879 = vmatpush1.bf16.msra.mxu1 %v4090_v26  ;;  %3839 = vmatpush1.bf16.msra.mxu0 %v4647_v27  ;;  %v282_v26 = vld [vmem:[#allocation5 + $0x5f8] sm:$0xff]  ;;  %v4679_v27 = vld [vmem:[#allocation8 + $0x1e4] ss:$8 sps:$4 sm:$0xff]  }
 0x1d2   :  { %2880 = vmatprep.subr.bf16.mxu1 %v4099_v28  ;;  %3840 = vmatprep.subr.bf16.mxu0 %v4652_v31  ;;  %v4170_v28 = vcombine.low %v270_v16, %v274_v17  ;;  %v4179_v29 = vcombine.high %v278_v23, %v282_v26  ;;  %v286_v31 = vld [vmem:[#allocation5 + $0x618] sm:$0xff] }
 0x1d3   :  { %v342_v5 = vld [vmem:[#allocation5 + $0x7d8] sm:$0xff] }
 0x1d4   :  { %v354_v61 = vld [vmem:[#allocation5 + $0x838] sm:$0xff] }
 0x1d5   :  { %2881 = vmatpush1.bf16.msra.mxu1 %v4098_v32  ;;  %3841 = vmatpush1.bf16.msra.mxu0 %v4650_v33  ;;  %v290_v32 = vld [vmem:[#allocation5 + $0x638] sm:$0xff] }
 0x1d6   :  { %2882 = vmatprep.subr.bf16.mxu1 %v4107_v34  ;;  %3842 = vmatprep.subr.bf16.mxu0 %v4655_v37  ;;  %v4682_v33 = vld [vmem:[#allocation8 + $0x1f4] ss:$8 sps:$4 sm:$0xff]   ;;  %v4178_v34 = vcombine.low %v278_v23, %v282_v26  ;;  %v4187_v35 = vcombine.high %v286_v31, %v290_v32 }
 0x1d7   :  { %v294_v37 = vld [vmem:[#allocation5 + $0x658] sm:$0xff] }
 0x1d8   :  { %v366_v7 = vld [vmem:[#allocation5 + $0x898] sm:$0xff] }
 0x1d9   :  { %2883 = vmatpush1.bf16.msra.mxu1 %v4106_v38  ;;  %3843 = vmatpush1.bf16.msra.mxu0 %v4653_v15  ;;  %v298_v38 = vld [vmem:[#allocation5 + $0x678] sm:$0xff]  ;;  %v4685_v15 = vld [vmem:[#allocation8 + $0x204] ss:$8 sps:$4 sm:$0xff]  }
 0x1da   :  { %2884 = vmatprep.subr.bf16.mxu1 %v4115_v40  ;;  %3844 = vmatprep.subr.bf16.mxu0 %v4658_v42  ;;  %v4186_v40 = vcombine.low %v286_v31, %v290_v32  ;;  %v4195_v44 = vcombine.high %v294_v37, %v298_v38  ;;  %v306_v42 = vld [vmem:[#allocation5 + $0x6b8] sm:$0xff] }
 0x1db   :  { %v4202_v3 = vcombine.low %v302_v41, %v306_v42  ;;  %v374_v17 = vld [vmem:[#allocation5 + $0x8d8] sm:$0xff] }
 0x1dc   :  { %v386_v23 = vld [vmem:[#allocation5 + $0x938] sm:$0xff] }
 0x1dd   :  { %2885 = vmatpush1.bf16.msra.mxu1 %v4114_v43  ;;  %3845 = vmatpush1.bf16.msra.mxu0 %v4656_v45  ;;  %v4194_v43 = vcombine.low %v294_v37, %v298_v38  ;;  %v4203_v45 = vcombine.high %v302_v41, %v306_v42  ;;  %v398_v32 = vld [vmem:[#allocation5 + $0x998] sm:$0xff] }
 0x1de   :  { %2897 = vmatprep.subr.bf16.mxu1 %v4123_v46  ;;  %3846 = vmatprep.subr.bf16.mxu0 %v4661_v48  ;;  %v310_v46 = vld [vmem:[#allocation5 + $0x6d8] sm:$0xff] }
 0x1df   :  { %v4211_v48 = vcombine.high %v310_v46, %v314_v47  ;;  %v406_v37 = vld [vmem:[#allocation5 + $0x9d8] sm:$0xff] }
 0x1e0   :  { %2887 = vmatmul.mubr.bf16.vlgmr.msra.gmra.mrb[8].mxu1 %v4784_v2  ;;  %v410_v38 = vld [vmem:[#allocation5 + $0x9f8] sm:$0xff] }
 0x1e1   :  { %2898 = vmatpush1.bf16.msra.mxu1 %v4122_v49  ;;  %2929 = vmatprep.mubr.bf16.mxu1 %v4785_v55  ;;  %v318_v49 = vld [vmem:[#allocation5 + $0x718] sm:$0xff] }
 0x1e2   :  { %2899 = vmatprep.subr.bf16.mxu1 %v4131_v50  ;;  %3847 = vmatpush1.bf16.msra.mxu0 %v4659_v12  ;;  %v322_v50 = vld [vmem:[#allocation5 + $0x738] sm:$0xff]  ;;  %v4210_v12 = vcombine.low %v310_v46, %v314_v47  ;;  %v4306_v46 = vcombine.low %v406_v37, %v410_v38 }
 0x1e3   :  { %3848 = vmatprep.subr.bf16.mxu0 %v4664_v53  ;;  %v4219_v51 = vcombine.high %v318_v49, %v322_v50  ;;  %v330_v53 = vld [vmem:[#allocation5 + $0x778] sm:$0xff]  ;;  %v4218_v2 = vcombine.low %v318_v49, %v322_v50 }
 0x1e4   :  { %v334_v55 = vld [vmem:[#allocation5 + $0x798] sm:$0xff] }
 0x1e5   :  { %2900 = vmatpush1.bf16.msra.mxu1 %v4130_v54  ;;  %v4227_v54 = vcombine.high %v326_v52, %v330_v53  ;;  %v414_v42 = vld [vmem:[#allocation5 + $0xa18] sm:$0xff] }
 0x1e6   :  { %2901 = vmatprep.subr.bf16.mxu1 %v4139_v56  ;;  %3849 = vmatpush1.bf16.msra.mxu0 %v4662_v57  ;;  %v338_v56 = vld [vmem:[#allocation5 + $0x7b8] sm:$0xff]  ;;  %v4226_v57 = vcombine.low %v326_v52, %v330_v53 }
 0x1e7   :  { %3850 = vmatprep.subr.bf16.mxu0 %v4667_v59  ;;  %v4235_v58 = vcombine.high %v334_v55, %v338_v56  ;;  %v346_v59 = vld [vmem:[#allocation5 + $0x7f8] sm:$0xff] }
 0x1e8   :  { %v4242_v62 = vcombine.low %v342_v5, %v346_v59  ;;  %v422_v50 = vld [vmem:[#allocation5 + $0xa58] sm:$0xff] }
 0x1e9   :  { %2902 = vmatpush1.bf16.msra.mxu1 %v4138_v9  ;;  %v4234_v9 = vcombine.low %v334_v55, %v338_v56 }
 0x1ea   :  { %2903 = vmatprep.subr.bf16.mxu1 %v4147_v11  ;;  %3851 = vmatpush1.bf16.msra.mxu0 %v4665_v60  ;;  %v4243_v11 = vcombine.high %v342_v5, %v346_v59  ;;  %v350_v60 = vld [vmem:[#allocation5 + $0x818] sm:$0xff] }
 0x1eb   :  { %3852 = vmatprep.subr.bf16.mxu0 %v4670_v63  ;;  %v4251_v63 = vcombine.high %v350_v60, %v354_v61  ;;  %v430_v59 = vld [vmem:[#allocation5 + $0xa98] sm:$0xff] }
 0x1ed   :  { %2904 = vmatpush1.bf16.msra.mxu1 %v4146_v0  ;;  %v358_v0 = vld [vmem:[#allocation5 + $0x858] sm:$0xff] }
 0x1ee   :  { %2905 = vmatprep.subr.bf16.mxu1 %v4155_v1  ;;  %3853 = vmatpush1.bf16.msra.mxu0 %v4668_v4  ;;  %v362_v1 = vld [vmem:[#allocation5 + $0x878] sm:$0xff]  ;;  %v4250_v4 = vcombine.low %v350_v60, %v354_v61 }
 0x1ef   :  { %3854 = vmatprep.subr.bf16.mxu0 %v4673_v8  ;;  %v4259_v6 = vcombine.high %v358_v0, %v362_v1  ;;  %v370_v8 = vld [vmem:[#allocation5 + $0x8b8] sm:$0xff] }
 0x1f0   :  { %v4267_v16 = vcombine.high %v366_v7, %v370_v8 }
 0x1f1   :  { %2906 = vmatpush1.bf16.msra.mxu1 %v4154_v10  ;;  %v4786_v10 = vld [vmem:[#allocation2 + $0x8] ss:$24 sps:$4 sm:$0xff]  }
 0x1f2   :  { %2907 = vmatprep.subr.bf16.mxu1 %v4163_v13  ;;  %3855 = vmatpush1.bf16.msra.mxu0 %v4671_v14  ;;  %v4258_v13 = vcombine.low %v358_v0, %v362_v1  ;;  %v4787_v14 = vld [vmem:[#allocation2 + $0x14] ss:$24 sps:$4 sm:$0xff]  }
 0x1f3   :  { %3856 = vmatprep.subr.bf16.mxu0 %v4676_v39  ;;  %v378_v39 = vld [vmem:[#allocation5 + $0x8f8] sm:$0xff] }
 0x1f4   :  { %v4274_v26 = vcombine.low %v374_v17, %v378_v39  ;;  %v438_v0 = vld [vmem:[#allocation5 + $0xad8] sm:$0xff] }
 0x1f5   :  { %2908 = vmatpush1.bf16.msra.mxu1 %v4162_v19  ;;  %v4266_v19 = vcombine.low %v366_v7, %v370_v8  ;;  %v442_v1 = vld [vmem:[#allocation5 + $0xaf8] sm:$0xff] }
 0x1f6   :  { %2909 = vmatprep.subr.bf16.mxu1 %v4171_v20  ;;  %3857 = vmatpush1.bf16.msra.mxu0 %v4674_v21  ;;  %v4275_v20 = vcombine.high %v374_v17, %v378_v39  ;;  %v382_v21 = vld [vmem:[#allocation5 + $0x918] sm:$0xff] }
 0x1f7   :  { %3858 = vmatprep.subr.bf16.mxu0 %v4679_v27  ;;  %v4283_v27 = vcombine.high %v382_v21, %v386_v23  ;;  %v446_v7 = vld [vmem:[#allocation5 + $0xb18] sm:$0xff] }
 0x1f8   :  { %v450_v8 = vld [vmem:[#allocation5 + $0xb38] sm:$0xff] }
 0x1f9   :  { %2910 = vmatpush1.bf16.msra.mxu1 %v4170_v28  ;;  %v390_v28 = vld [vmem:[#allocation5 + $0x958] sm:$0xff]  ;;  %v4346_v17 = vcombine.low %v446_v7, %v450_v8 }
 0x1fa   :  { %2911 = vmatprep.subr.bf16.mxu1 %v4179_v29  ;;  %3859 = vmatpush1.bf16.msra.mxu0 %v4677_v30  ;;  %v394_v29 = vld [vmem:[#allocation5 + $0x978] sm:$0xff]  ;;  %v4282_v30 = vcombine.low %v382_v21, %v386_v23 }
 0x1fb   :  { %3860 = vmatprep.subr.bf16.mxu0 %v4682_v33  ;;  %v4291_v31 = vcombine.high %v390_v28, %v394_v29  ;;  %v402_v33 = vld [vmem:[#allocation5 + $0x9b8] sm:$0xff] }
 0x1fd   :  { %2912 = vmatpush1.bf16.msra.mxu1 %v4178_v34  ;;  %v4290_v34 = vcombine.low %v390_v28, %v394_v29 }
 0x1fe   :  { %2913 = vmatprep.subr.bf16.mxu1 %v4187_v35  ;;  %3861 = vmatpush1.bf16.msra.mxu0 %v4680_v36  ;;  %v4299_v35 = vcombine.high %v398_v32, %v402_v33  ;;  %v495_v36 = vsub.s32 4, %v5068_v18 }
 0x1ff   :  { %3873 = vmatprep.subr.bf16.mxu0 %v4685_v15  ;;  %v499_v15 = vsub.s32 5, %v5068_v18 }
 0x200   :  { %v496_v41 = vrot.slane %v5071_v24, %v495_v36 }
 0x201   :  { %2914 = vmatpush1.bf16.msra.mxu1 %v4186_v40  ;;  %v4298_v40 = vcombine.low %v398_v32, %v402_v33  ;;  %v487_v32 = vsub.s32 2, %v5068_v18  ;;  %v491_v33 = vsub.s32 3, %v5068_v18 }
 0x202   :  { %2915 = vmatprep.subr.bf16.mxu1 %v4195_v44  ;;  %v4307_v44 = vcombine.high %v406_v37, %v410_v38 }
 0x205   :  { %2916 = vmatpush1.bf16.msra.mxu1 %v4194_v43  ;;  %v418_v43 = vld [vmem:[#allocation5 + $0xa38] sm:$0xff] }
 0x206   :  { %2917 = vmatprep.subr.bf16.mxu1 %v4203_v45  ;;  %v500_v45 = vrot.slane %v5071_v24, %v499_v15  ;;  %v4314_v55 = vcombine.low %v414_v42, %v418_v43 }
 0x209   :  { %2918 = vmatpush1.bf16.msra.mxu1 %v4202_v3  ;;  %v4315_v3 = vcombine.high %v414_v42, %v418_v43 }
 0x20a   :  { %2919 = vmatprep.subr.bf16.mxu1 %v4211_v48 }
 0x20d   :  { %2920 = vmatpush1.bf16.msra.mxu1 %v4210_v12  ;;  %v426_v12 = vld [vmem:[#allocation5 + $0xa78] sm:$0xff] }
 0x20e   :  { %2921 = vmatprep.subr.bf16.mxu1 %v4219_v51  ;;  %v4322_v61 = vcombine.low %v422_v50, %v426_v12 }
 0x211   :  { %2922 = vmatpush1.bf16.msra.mxu1 %v4218_v2 }
 0x212   :  { %2923 = vmatprep.subr.bf16.mxu1 %v4227_v54 }
 0x215   :  { %2924 = vmatpush1.bf16.msra.mxu1 %v4226_v57 }
 0x216   :  { %2925 = vmatprep.subr.bf16.mxu1 %v4235_v58  ;;  %v4323_v58 = vcombine.high %v422_v50, %v426_v12  ;;  %v4688_v50 = vld [vmem:[#allocation8 + $0x214] ss:$8 sps:$4 sm:$0xff]   ;;  %v4691_v12 = vld [vmem:[#allocation8 + $0x224] ss:$8 sps:$4 sm:$0xff]  }
 0x219   :  { %2926 = vmatpush1.bf16.msra.mxu1 %v4234_v9  ;;  %v434_v9 = vld [vmem:[#allocation5 + $0xab8] sm:$0xff] }
 0x21a   :  { %2927 = vmatprep.subr.bf16.mxu1 %v4243_v11 }
 0x21d   :  { %2928 = vmatpush1.bf16.msra.mxu1 %v4242_v62 }
 0x21e   :  { %2940 = vmatprep.subr.bf16.mxu1 %v4251_v63  ;;  %v4331_v63 = vcombine.high %v430_v59, %v434_v9 }
 0x220   :  { %2930 = vmatmul.mubr.bf16.vlgmr.msra.gmra.mrb[8].mxu1 %v4786_v10  ;;  %v4338_v10 = vcombine.low %v438_v0, %v442_v1 }
 0x221   :  { %2941 = vmatpush1.bf16.msra.mxu1 %v4250_v4  ;;  %2972 = vmatprep.mubr.bf16.mxu1 %v4787_v14  ;;  %v4330_v4 = vcombine.low %v430_v59, %v434_v9  ;;  %v454_v14 = vld [vmem:[#allocation5 + $0xb58] sm:$0xff]  ;;  %v4709_v9 = vld [vmem:[#allocation8 + $0x284] ss:$8 sps:$4 sm:$0xff]  }
 0x222   :  { %2942 = vmatprep.subr.bf16.mxu1 %v4259_v6  ;;  %v4339_v6 = vcombine.high %v438_v0, %v442_v1  ;;  %v4704_v59 = vld [vmem:[#allocation8 + $0x270] ss:$8 sps:$4 sm:$0xff]   ;;  %v4713_v0 = vld [vmem:[#allocation8 + $0x2a0] ss:$8 sps:$4 sm:$0xff]   ;;  %v4718_v1 = vld [vmem:[#allocation8 + $0x2b4] ss:$8 sps:$4 sm:$0xff]  }
 0x225   :  { %2943 = vmatpush1.bf16.msra.mxu1 %v4258_v13  ;;  %v4347_v13 = vcombine.high %v446_v7, %v450_v8  ;;  %v4719_v7 = vld [vmem:[#allocation8 + $0x2c0] ss:$8 sps:$4 sm:$0xff]   ;;  %v4724_v8 = vld [vmem:[#allocation8 + $0x2d4] ss:$8 sps:$4 sm:$0xff]  }
 0x226   :  { %2944 = vmatprep.subr.bf16.mxu1 %v4267_v16  ;;  %v458_v16 = vld [vmem:[#allocation5 + $0xb78] sm:$0xff] }
 0x227   :  { %v4355_v39 = vcombine.high %v454_v14, %v458_v16  ;;  %v4354_v21 = vcombine.low %v454_v14, %v458_v16  ;;  %v4725_v14 = vld [vmem:[#allocation8 + $0x2e0] ss:$8 sps:$4 sm:$0xff]   ;;  %v4730_v16 = vld [vmem:[#allocation8 + $0x2f4] ss:$8 sps:$4 sm:$0xff]  }
 0x229   :  { %2945 = vmatpush1.bf16.msra.mxu1 %v4266_v19  ;;  %v462_v19 = vld [vmem:[#allocation5 + $0xb98] sm:$0xff] }
 0x22a   :  { %2946 = vmatprep.subr.bf16.mxu1 %v4275_v20  ;;  %v466_v20 = vld [vmem:[#allocation5 + $0xbb8] sm:$0xff] }
 0x22b   :  { %v4363_v23 = vcombine.high %v462_v19, %v466_v20  ;;  %v4362_v28 = vcombine.low %v462_v19, %v466_v20  ;;  %v4731_v19 = vld [vmem:[#allocation8 + $0x300] ss:$8 sps:$4 sm:$0xff]   ;;  %v4736_v20 = vld [vmem:[#allocation8 + $0x314] ss:$8 sps:$4 sm:$0xff]  }
 0x22d   :  { %2947 = vmatpush1.bf16.msra.mxu1 %v4274_v26  ;;  %v470_v26 = vld [vmem:[#allocation5 + $0xbd8] sm:$0xff] }
 0x22e   :  { %2948 = vmatprep.subr.bf16.mxu1 %v4283_v27  ;;  %v474_v27 = vld [vmem:[#allocation5 + $0xbf8] sm:$0xff] }
 0x22f   :  { %v4371_v29 = vcombine.high %v470_v26, %v474_v27 }
 0x231   :  { %2949 = vmatpush1.bf16.msra.mxu1 %v4282_v30  ;;  %v4370_v30 = vcombine.low %v470_v26, %v474_v27  ;;  %v4737_v26 = vld [vmem:[#allocation8 + $0x320] ss:$8 sps:$4 sm:$0xff]   ;;  %v4742_v27 = vld [vmem:[#allocation8 + $0x334] ss:$8 sps:$4 sm:$0xff]  }
 0x232   :  { %2950 = vmatprep.subr.bf16.mxu1 %v4291_v31  ;;  %v4788_v31 = vld [vmem:[#allocation2 + $0x10] ss:$24 sps:$4 sm:$0xff]  }
 0x235   :  { %2951 = vmatpush1.bf16.msra.mxu1 %v4290_v34  ;;  %v488_v34 = vrot.slane %v5071_v24, %v487_v32  ;;  %v4746_v32 = vld [vmem:[#allocation8 + $0x350] ss:$8 sps:$4 sm:$0xff]  }
 0x236   :  { %2952 = vmatprep.subr.bf16.mxu1 %v4299_v35  ;;  %v492_v35 = vrot.slane %v5071_v24, %v491_v33  ;;  %v4686_v24 = vld [vmem:[#allocation8 + $0x210] ss:$8 sps:$4 sm:$0xff]   ;;  %v4749_v33 = vld [vmem:[#allocation8 + $0x360] ss:$8 sps:$4 sm:$0xff]  }
 0x239   :  { %2953 = vmatpush1.bf16.msra.mxu1 %v4298_v40 }
 0x23a   :  { %v2845_v47 = vpop.f32.mrb[4].mxu0  ;;  %2954 = vmatprep.subr.bf16.mxu1 %v4307_v44 }
 0x23b   :  { %v4512_v48 = vadd.f32 %v2845_v47, %v496_v41  ;;  %v2847_v49 = vpop.f32.mrb[5].mxu0 }
 0x23c   :  { %v4513_v51 = vadd.f32 %v2847_v49, %v500_v45  ;;  %v2849_v52 = vpop.f32.mrb[6].mxu0  ;;  %v4683_v49 = vld [vmem:[#allocation8 + $0x200] ss:$8 sps:$4 sm:$0xff]  }
 0x23d   :  { %v2987_v53 = vmax.f32 %v4512_v48, 0.0  ;;  %v4514_v2 = vadd.f32 %v2849_v52, %v496_v41  ;;  %v2851_v54 = vpop.f32.mrb[7].mxu0  ;;  %2955 = vmatpush1.bf16.msra.mxu1 %v4306_v46  ;;  %v4694_v52 = vld [vmem:[#allocation8 + $0x234] ss:$8 sps:$4 sm:$0xff]  }
 0x23e   :  { %v2988_v56 = vmax.f32 %v4513_v51, 0.0  ;;  %v4515_v57 = vadd.f32 %v2851_v54, %v500_v45  ;;  %2956 = vmatprep.subr.bf16.mxu1 %v4315_v3  ;;  %v4689_v51 = vld [vmem:[#allocation8 + $0x220] ss:$8 sps:$4 sm:$0xff]  }
 0x23f   :  { %v2995_v5 = vmax.f32 %v4514_v2, 0.0  ;;  %v4697_v2 = vld [vmem:[#allocation8 + $0x244] ss:$8 sps:$4 sm:$0xff]   ;;  %v4695_v54 = vld [vmem:[#allocation8 + $0x240] ss:$8 sps:$4 sm:$0xff]  }
 0x240   :  { %v2996_v11 = vmax.f32 %v4515_v57, 0.0  ;;  %v4703_v57 = vld [vmem:[#allocation8 + $0x264] ss:$8 sps:$4 sm:$0xff]  }
 0x241   :  { %v5088_v60 = vpack.c.bf16 %v2995_v5, %v2987_v53  ;;  %2957 = vmatpush1.bf16.msra.mxu1 %v4314_v55  ;;  %v4692_v53 = vld [vmem:[#allocation8 + $0x230] ss:$8 sps:$4 sm:$0xff]   ;;  %v4700_v55 = vld [vmem:[#allocation8 + $0x254] ss:$8 sps:$4 sm:$0xff]  }
 0x242   :  { %v3004_v62 = vpack.c.bf16 %v2996_v11, %v2988_v56  ;;  %2958 = vmatprep.subr.bf16.mxu1 %v4323_v58  ;;  %v4698_v56 = vld [vmem:[#allocation8 + $0x250] ss:$8 sps:$4 sm:$0xff]   ;;  %v4701_v58 = vld [vmem:[#allocation8 + $0x260] ss:$8 sps:$4 sm:$0xff]   ;;  %v4706_v5 = vld [vmem:[#allocation8 + $0x274] ss:$8 sps:$4 sm:$0xff]  }
 0x243   :  { %v4707_v11 = vld [vmem:[#allocation8 + $0x280] ss:$8 sps:$4 sm:$0xff]  }
 0x245   :  { %2959 = vmatpush1.bf16.msra.mxu1 %v4322_v61  ;;  %v4712_v61 = vld [vmem:[#allocation8 + $0x294] ss:$8 sps:$4 sm:$0xff]  }
 0x246   :  { %2960 = vmatprep.subr.bf16.mxu1 %v4331_v63  ;;  %v4715_v63 = vld [vmem:[#allocation8 + $0x2a4] ss:$8 sps:$4 sm:$0xff]  }
 0x249   :  { %2961 = vmatpush1.bf16.msra.mxu1 %v4330_v4  ;;  %v4716_v4 = vld [vmem:[#allocation8 + $0x2b0] ss:$8 sps:$4 sm:$0xff]  }
 0x24a   :  { %2962 = vmatprep.subr.bf16.mxu1 %v4339_v6  ;;  %v4721_v6 = vld [vmem:[#allocation8 + $0x2c4] ss:$8 sps:$4 sm:$0xff]  }
 0x24d   :  { %2963 = vmatpush1.bf16.msra.mxu1 %v4338_v10  ;;  %v4722_v10 = vld [vmem:[#allocation8 + $0x2d0] ss:$8 sps:$4 sm:$0xff]  }
 0x24e   :  { %2964 = vmatprep.subr.bf16.mxu1 %v4347_v13  ;;  %v4727_v13 = vld [vmem:[#allocation8 + $0x2e4] ss:$8 sps:$4 sm:$0xff]  }
 0x251   :  { %2965 = vmatpush1.bf16.msra.mxu1 %v4346_v17  ;;  %v4728_v17 = vld [vmem:[#allocation8 + $0x2f0] ss:$8 sps:$4 sm:$0xff]  }
 0x252   :  { %2966 = vmatprep.subr.bf16.mxu1 %v4355_v39  ;;  %v4733_v39 = vld [vmem:[#allocation8 + $0x304] ss:$8 sps:$4 sm:$0xff]  }
 0x255   :  { %2967 = vmatpush1.bf16.msra.mxu1 %v4354_v21  ;;  %v4734_v21 = vld [vmem:[#allocation8 + $0x310] ss:$8 sps:$4 sm:$0xff]  }
 0x256   :  { %2968 = vmatprep.subr.bf16.mxu1 %v4363_v23  ;;  %v4739_v23 = vld [vmem:[#allocation8 + $0x324] ss:$8 sps:$4 sm:$0xff]  }
 0x259   :  { %2969 = vmatpush1.bf16.msra.mxu1 %v4362_v28  ;;  %v4740_v28 = vld [vmem:[#allocation8 + $0x330] ss:$8 sps:$4 sm:$0xff]  }
 0x25a   :  { %2970 = vmatprep.subr.bf16.mxu1 %v4371_v29  ;;  %v4745_v29 = vld [vmem:[#allocation8 + $0x344] ss:$8 sps:$4 sm:$0xff]  }
 0x25d   :  { %2971 = vmatpush1.bf16.msra.mxu1 %v4370_v30  ;;  %v4743_v30 = vld [vmem:[#allocation8 + $0x340] ss:$8 sps:$4 sm:$0xff]  }
 0x260   :  { %2973 = vmatmul.mubr.bf16.vlgmr.msra.gmra.mrb[8].mxu1 %v4788_v31  ;;  %v4748_v31 = vld [vmem:[#allocation8 + $0x354] ss:$8 sps:$4 sm:$0xff]  }
 0x273   :  { %v2716_v36 = vpop.f32.mrb[4].mxu1 }
 0x274   :  { %v4508_v37 = vadd.f32 %v2716_v36, %v488_v34  ;;  %v2718_v38 = vpop.f32.mrb[5].mxu1  ;;  %v4757_v36 = vld [vmem:[#allocation8 + $0x384] ss:$8 sps:$4 sm:$0xff]  }
 0x275   :  { %v4509_v15 = vadd.f32 %v2718_v38, %v492_v35  ;;  %v2720_v40 = vpop.f32.mrb[6].mxu1  ;;  %v4760_v38 = vld [vmem:[#allocation8 + $0x394] ss:$8 sps:$4 sm:$0xff]  }
 0x276   :  { %v4510_v44 = vadd.f32 %v2720_v40, %v488_v34  ;;  %v2722_v41 = vpop.f32.mrb[7].mxu1  ;;  %v2985_v43 = vmax.f32 %v4508_v37, 0.0  ;;  %v4754_v34 = vld [vmem:[#allocation8 + $0x374] ss:$8 sps:$4 sm:$0xff]   ;;  %v4755_v37 = vld [vmem:[#allocation8 + $0x380] ss:$8 sps:$4 sm:$0xff]  }
 0x277   :  { %v4511_v42 = vadd.f32 %v2722_v41, %v492_v35  ;;  %v2986_v46 = vmax.f32 %v4509_v15, 0.0  ;;  %v4752_v35 = vld [vmem:[#allocation8 + $0x370] ss:$8 sps:$4 sm:$0xff]   ;;  %v4763_v40 = vld [vmem:[#allocation8 + $0x3a4] ss:$8 sps:$4 sm:$0xff]  }
 0x278   :  { %v2993_v45 = vmax.f32 %v4510_v44, 0.0  ;;  %v4758_v15 = vld [vmem:[#allocation8 + $0x390] ss:$8 sps:$4 sm:$0xff]   ;;  %v4761_v44 = vld [vmem:[#allocation8 + $0x3a0] ss:$8 sps:$4 sm:$0xff]  }
 0x279   :  { %v2994_v47 = vmax.f32 %v4511_v42, 0.0  ;;  %v4766_v41 = vld [vmem:[#allocation8 + $0x3b4] ss:$8 sps:$4 sm:$0xff]   ;;  %v4764_v42 = vld [vmem:[#allocation8 + $0x3b0] ss:$8 sps:$4 sm:$0xff]  }
 0x27a   :  { %v3001_v3 = vpack.c.bf16 %v2993_v45, %v2985_v43  ;;  %v4769_v43 = vld [vmem:[#allocation8 + $0x3c4] ss:$8 sps:$4 sm:$0xff]   ;;  %v4767_v45 = vld [vmem:[#allocation8 + $0x3c0] ss:$8 sps:$4 sm:$0xff]  }
 0x27b   :  { %v3002_v48 = vpack.c.bf16 %v2994_v47, %v2986_v46  ;;  %v4772_v46 = vld [vmem:[#allocation8 + $0x3d4] ss:$8 sps:$4 sm:$0xff]   ;;  %v4770_v47 = vld [vmem:[#allocation8 + $0x3d0] ss:$8 sps:$4 sm:$0xff]  }
 0x27d   :  { %3862 = vmatprep.mubr.bf16.mxu0 %v3002_v48  ;;  %v4773_v48 = vld [vmem:[#allocation8 + $0x3e0] ss:$8 sps:$4 sm:$0xff]  }
 0x27e   :  { %3863 = vmatmul.mubr.bf16.vlgmr.msra.gmra.mrb[8].mxu0 %v3001_v3  ;;  %v4775_v3 = vld [vmem:[#allocation8 + $0x3e4] ss:$8 sps:$4 sm:$0xff]  }
 0x27f   :  { %3874 = vmatpush1.bf16.msra.mxu0 %v4683_v49  ;;  %3905 = vmatprep.mubr.bf16.mxu0 %v3004_v62  ;;  %v4710_v62 = vld [vmem:[#allocation8 + $0x290] ss:$8 sps:$4 sm:$0xff]   ;;  %v4778_v49 = vld [vmem:[#allocation8 + $0x3f4] ss:$8 sps:$4 sm:$0xff]  }
 0x280   :  { %3875 = vmatprep.subr.bf16.mxu0 %v4688_v50  ;;  %v4776_v50 = vld [vmem:[#allocation8 + $0x3f0] ss:$8 sps:$4 sm:$0xff]  }
 0x283   :  { %3876 = vmatpush1.bf16.msra.mxu0 %v4686_v24  ;;  %v503_v24 = vsub.s32 6, %v5068_v18 }
 0x284   :  { %3877 = vmatprep.subr.bf16.mxu0 %v4691_v12  ;;  %v507_v12 = vsub.s32 7, %v5068_v18 }
 0x287   :  { %3878 = vmatpush1.bf16.msra.mxu0 %v4689_v51  ;;  %v4789_v51 = vld [vmem:[#allocation7] sm:$0xff] }
 0x288   :  { %3879 = vmatprep.subr.bf16.mxu0 %v4694_v52  ;;  %v504_v52 = vrot.slane %v4789_v51, %v503_v24 }
 0x28b   :  { %3880 = vmatpush1.bf16.msra.mxu0 %v4692_v53  ;;  %v508_v53 = vrot.slane %v4789_v51, %v507_v12 }
 0x28c   :  { %3881 = vmatprep.subr.bf16.mxu0 %v4697_v2 }
 0x28f   :  { %3882 = vmatpush1.bf16.msra.mxu0 %v4695_v54 }
 0x290   :  { %3883 = vmatprep.subr.bf16.mxu0 %v4700_v55 }
 0x293   :  { %3884 = vmatpush1.bf16.msra.mxu0 %v4698_v56 }
 0x294   :  { %3885 = vmatprep.subr.bf16.mxu0 %v4703_v57 }
 0x297   :  { %3886 = vmatpush1.bf16.msra.mxu0 %v4701_v58 }
 0x298   :  { %3887 = vmatprep.subr.bf16.mxu0 %v4706_v5 }
 0x29b   :  { %3888 = vmatpush1.bf16.msra.mxu0 %v4704_v59 }
 0x29c   :  { %3889 = vmatprep.subr.bf16.mxu0 %v4709_v9 }
 0x29f   :  { %3890 = vmatpush1.bf16.msra.mxu0 %v4707_v11 }
 0x2a0   :  { %3891 = vmatprep.subr.bf16.mxu0 %v4712_v61 }
 0x2a3   :  { %3892 = vmatpush1.bf16.msra.mxu0 %v4710_v62 }
 0x2a4   :  { %3893 = vmatprep.subr.bf16.mxu0 %v4715_v63 }
 0x2a7   :  { %3894 = vmatpush1.bf16.msra.mxu0 %v4713_v0 }
 0x2a8   :  { %3895 = vmatprep.subr.bf16.mxu0 %v4718_v1  ;;  %v3135_v1 = vld [vmem:[#allocation10] sm:$0x3] }
 0x2ab   :  { %3896 = vmatpush1.bf16.msra.mxu0 %v4716_v4  ;;  %v3140_v4 = vrot.slane %v3135_v1, %v479_v22 }
 0x2ac   :  { %3897 = vmatprep.subr.bf16.mxu0 %v4721_v6  ;;  %v3144_v6 = vrot.slane %v3135_v1, %v483_v25 }
 0x2af   :  { %3898 = vmatpush1.bf16.msra.mxu0 %v4719_v7 }
 0x2b0   :  { %3899 = vmatprep.subr.bf16.mxu0 %v4724_v8 }
 0x2b3   :  { %3900 = vmatpush1.bf16.msra.mxu0 %v4722_v10 }
 0x2b4   :  { %3901 = vmatprep.subr.bf16.mxu0 %v4727_v13 }
 0x2b7   :  { %3902 = vmatpush1.bf16.msra.mxu0 %v4725_v14 }
 0x2b8   :  { %3903 = vmatprep.subr.bf16.mxu0 %v4730_v16 }
 0x2bb   :  { %3904 = vmatpush1.bf16.msra.mxu0 %v4728_v17 }
 0x2bc   :  { %3916 = vmatprep.subr.bf16.mxu0 %v4733_v39 }
 0x2be   :  { %3906 = vmatmul.mubr.bf16.vlgmr.msra.gmra.mrb[8].mxu0 %v5088_v60  ;;  %v4751_v60 = vld [vmem:[#allocation8 + $0x364] ss:$8 sps:$4 sm:$0xff]  }
 0x2bf   :  { %3917 = vmatpush1.bf16.msra.mxu0 %v4731_v19 }
 0x2c0   :  { %3918 = vmatprep.subr.bf16.mxu0 %v4736_v20 }
 0x2c3   :  { %3919 = vmatpush1.bf16.msra.mxu0 %v4734_v21 }
 0x2c4   :  { %3920 = vmatprep.subr.bf16.mxu0 %v4739_v23 }
 0x2c7   :  { %3921 = vmatpush1.bf16.msra.mxu0 %v4737_v26 }
 0x2c8   :  { %3922 = vmatprep.subr.bf16.mxu0 %v4742_v27 }
 0x2cb   :  { %3923 = vmatpush1.bf16.msra.mxu0 %v4740_v28 }
 0x2cc   :  { %3924 = vmatprep.subr.bf16.mxu0 %v4745_v29 }
 0x2cf   :  { %3925 = vmatpush1.bf16.msra.mxu0 %v4743_v30 }
 0x2d0   :  { %3926 = vmatprep.subr.bf16.mxu0 %v4748_v31 }
 0x2d3   :  { %3927 = vmatpush1.bf16.msra.mxu0 %v4746_v32 }
 0x2d4   :  { %3928 = vmatprep.subr.bf16.mxu0 %v4751_v60 }
 0x2d7   :  { %3929 = vmatpush1.bf16.msra.mxu0 %v4749_v33 }
 0x2d8   :  { %3930 = vmatprep.subr.bf16.mxu0 %v4754_v34 }
 0x2db   :  { %3931 = vmatpush1.bf16.msra.mxu0 %v4752_v35 }
 0x2dc   :  { %3932 = vmatprep.subr.bf16.mxu0 %v4757_v36 }
 0x2df   :  { %3933 = vmatpush1.bf16.msra.mxu0 %v4755_v37 }
 0x2e0   :  { %3934 = vmatprep.subr.bf16.mxu0 %v4760_v38 }
 0x2e3   :  { %3935 = vmatpush1.bf16.msra.mxu0 %v4758_v15 }
 0x2e4   :  { %3936 = vmatprep.subr.bf16.mxu0 %v4763_v40 }
 0x2e7   :  { %3937 = vmatpush1.bf16.msra.mxu0 %v4761_v44 }
 0x2e8   :  { %3938 = vmatprep.subr.bf16.mxu0 %v4766_v41 }
 0x2eb   :  { %3939 = vmatpush1.bf16.msra.mxu0 %v4764_v42 }
 0x2ec   :  { %3940 = vmatprep.subr.bf16.mxu0 %v4769_v43 }
 0x2ef   :  { %3941 = vmatpush1.bf16.msra.mxu0 %v4767_v45 }
 0x2f0   :  { %3942 = vmatprep.subr.bf16.mxu0 %v4772_v46 }
 0x2f3   :  { %3943 = vmatpush1.bf16.msra.mxu0 %v4770_v47 }
 0x2f4   :  { %3944 = vmatprep.subr.bf16.mxu0 %v4775_v3 }
 0x2f7   :  { %3945 = vmatpush1.bf16.msra.mxu0 %v4773_v48 }
 0x2f8   :  { %3946 = vmatprep.subr.bf16.mxu0 %v4778_v49 }
 0x2fb   :  { %3947 = vmatpush1.bf16.msra.mxu0 %v4776_v50 }
 0x333   :  { %v2974_v2 = vpop.f32.mrb[8].mxu1 }
 0x334   :  { %v4516_v54 = vadd.f32 %v2974_v2, %v504_v52  ;;  %v2976_v55 = vpop.f32.mrb[9].mxu1 }
 0x335   :  { %v4517_v56 = vadd.f32 %v2976_v55, %v508_v53  ;;  %v2978_v57 = vpop.f32.mrb[10].mxu1 }
 0x336   :  { %v4518_v58 = vadd.f32 %v2978_v57, %v504_v52  ;;  %v2980_v5 = vpop.f32.mrb[11].mxu1  ;;  %v2989_v9 = vmax.f32 %v4516_v54, 0.0 }
 0x337   :  { %v4519_v59 = vadd.f32 %v2980_v5, %v508_v53  ;;  %v2990_v61 = vmax.f32 %v4517_v56, 0.0 }
 0x338   :  { %v2997_v11 = vmax.f32 %v4518_v58, 0.0 }
 0x339   :  { %v2998_v62 = vmax.f32 %v4519_v59, 0.0 }
 0x33a   :  { %v3005_v63 = vpack.c.bf16 %v2997_v11, %v2989_v9 }
 0x33b   :  { %v3006_v0 = vpack.c.bf16 %v2998_v62, %v2990_v61 }
 0x33d   :  { %3948 = vmatprep.mubr.bf16.mxu0 %v3006_v0 }
 0x33e   :  { %3949 = vmatmul.mubr.bf16.vlgmr.msra.gmra.mrb[8].mxu0 %v3005_v63 }
 0x411   :  { %v3950_v7 = vpop.f32.mrb[8].mxu0 }
 0x412   :  { %v4520_v8 = vadd.f32 %v3950_v7, %v3140_v4  ;;  %v3952_v10 = vpop.f32.mrb[9].mxu0 }
 0x413   :  { %v4521_v13 = vadd.f32 %v3952_v10, %v3144_v6  ;;  %v3954_v14 = vpop.f32.mrb[10].mxu0 }
 0x414   :  { %3959 = vst [vmem:[#allocation11] sm:$0xff] %v4520_v8  ;;  %v4522_v16 = vadd.f32 %v3954_v14, %v3140_v4  ;;  %v3956_v17 = vpop.f32.mrb[11].mxu0 }
 0x415   :  { %3960 = vst [vmem:[#allocation11 + $0x8] sm:$0xff] %v4521_v13  ;;  %v4523_v39 = vadd.f32 %v3956_v17, %v3144_v6 }
 0x416   :  { %3961 = vst [vmem:[#allocation11 + $0x10] sm:$0xff] %v4522_v16 }
 0x417   :  { %3962 = vst [vmem:[#allocation11 + $0x18] sm:$0xff] %v4523_v39 }
 0x418   :  { %4911 = shalt.err (!%p4908_p2)
}
 0x419   :  { %s4912_s7 = scalar_lea.hbm %s5118_s5, 512 }
 0x41a   :  { %p4913_p3 = scmp.ne.s32.totalorder %s5118_s5, %s4912_s7  ;;  %p4916_p4 = scmp.lt.u32.totalorder %s4912_s7, %s5118_s5 }
 0x41c   :  { %p4918_p5 = pnand %p4916_p4, %p4913_p3 }
 0x41e   :  { %4921 = shalt.err (!%p4918_p5)
}
 0x41f   :  { %s4942_s12 = smov 256   ;;  %s4943_s13 = smov 16  }
 0x420   :  { %3974 = dma.vmem_to_hbm [thread:$0]  %s3969_s29, 512, %s5118_s5, [#allocation4], %s4942_s12, %s4942_s12, %s4943_s13  }
 0x421   :  { %4928 = dma.done.wait [#allocation4], 512  }
 0x422   :  { %4929 = vsyncadd [#allocation4], 4294966784 }
 0x423   :  { %3978 = vsyncpa [#allocation3], 1 }
 0x424   :  { %3979 = vsyncpa [#allocation6], 1 }
 0x425   :  { %3980 = vsyncpa [#allocation9], 1 }
 0x426   :  { %3981 = vsyncpa [#allocation4], 1 }

</bundles_post_ra>
